<compile_context>
chip_gen: v6e
topology: v6e:2x2x1
jax: 0.10.0
libtpu: 0.0.40
codegen_flags: <defaults>
</compile_context>

<pallas_src>
import functools

import jax
import jax.numpy as jnp
from jax.experimental import pallas as pl
from jax.experimental.pallas import tpu as pltpu


def _gelu_tanh(v):
    # tanh-approx GELU: one EUP tanh + ~4 VALU ops; |diff vs exact erf GELU| ~3e-4.
    c = 0.7978845608028654  # sqrt(2/pi)
    return 0.5 * v * (1.0 + jnp.tanh(c * (v + 0.044715 * v * v * v)))


def _mlgffn_kernel(x_ref, w1_ref, b1_ref, k3_ref, b3_ref, m3_ref,
                   k5_ref, b5_ref, m5_ref, w2_ref, b2_ref, o_ref,
                   flat3_ref, flat5_ref, *, H, W, bstack):
    HW = H * W
    C = x_ref.shape[0] // bstack
    hidden = w1_ref.shape[0]
    half = hidden // 2
    pad3 = W + 1
    pad5 = 2 * W + 2

    w1 = w1_ref[...]                            # (hidden, C)
    b1 = b1_ref[...]                            # (hidden, 1)
    w2 = w2_ref[...]                            # (C, 2*hidden)
    b2 = b2_ref[...]                            # (C, 1)
    k3 = k3_ref[...]                            # (half, 9)
    b3 = b3_ref[...]
    m3 = m3_ref[...]                            # (3, HW)
    k5 = k5_ref[...]                            # (half, 25)
    b5 = b5_ref[...]
    m5 = m5_ref[...]                            # (5, HW)

    # Zero the halo columns of the padded dwconv staging buffers once; the
    # interior [pad, pad+HW) is fully overwritten for every batch below.
    flat3_ref[:, 0:pad3] = jnp.zeros((half, pad3), jnp.float32)
    flat3_ref[:, pad3 + HW:2 * pad3 + HW] = jnp.zeros((half, pad3), jnp.float32)
    flat5_ref[:, 0:pad5] = jnp.zeros((half, pad5), jnp.float32)
    flat5_ref[:, pad5 + HW:2 * pad5 + HW] = jnp.zeros((half, pad5), jnp.float32)

    def dwconv(inp, flat_ref, kern, bias, cmask, ksz, pad):
        # Stage one zero-padded flat copy in VMEM scratch; each tap becomes a
        # static unaligned window load (vld / XLU rotate, both idle slots)
        # instead of a materialized per-tap VMEM copy on the VALU path.
        flat_ref[:, pad:pad + HW] = inp
        p = ksz // 2
        out = jnp.zeros((half, HW), jnp.float32)
        for dw in range(ksz):                   # static unrolled taps
            part = jnp.zeros((half, HW), jnp.float32)
            for dh in range(ksz):
                s = (dh - p) * W + (dw - p)     # flat source offset of this tap
                shifted = flat_ref[:, pad + s: pad + s + HW]
                part = part + shifted * kern[:, dh * ksz + dw: dh * ksz + dw + 1]
            out = out + part * cmask[dw:dw + 1, :]   # zero row-wrapped columns
        return out + bias

    outs = []
    for b in range(bstack):                     # static batch-stack loop
        # ---- fc1: VPU broadcast-MACs over the tiny contracting dim (C) ----
        y = jnp.zeros((hidden, HW), jnp.float32)
        for k in range(C):
            xk = x_ref[b * C + k: b * C + k + 1, :].astype(jnp.float32)   # (1, HW)
            y = y + w1[:, k:k + 1] * xk
        y = y + b1                              # (hidden, HW)

        # ---- depthwise SAME convs + GELU (tanh approx) ----
        z1 = _gelu_tanh(dwconv(y[:half, :], flat3_ref, k3, b3, m3, 3, pad3))
        z2 = _gelu_tanh(dwconv(y[half:, :], flat5_ref, k5, b5, m5, 5, pad5))

        # ---- fc2 over the local halves (VPU broadcast-MACs) ----
        acc = jnp.zeros((C, HW), jnp.float32)
        for j in range(half):
            acc = acc + w2[:, j:j + 1] * z1[j:j + 1, :]
        for j in range(half):
            acc = acc + w2[:, half + j:half + j + 1] * z2[j:j + 1, :]

        # ---- global branch folded via linearity:
        #      mean_hw(W_g @ y) == W_g @ mean_hw(y)  -> (C, 1) rank-1 correction
        ymean = jnp.mean(y, axis=1, keepdims=True)      # (hidden, 1) XLU reduce
        gterm = jnp.zeros((C, 1), jnp.float32)
        for j in range(hidden):
            gterm = gterm + w2[:, hidden + j:hidden + j + 1] * ymean[j:j + 1, :]

        outs.append(acc + gterm + b2)           # (C, HW)

    # single dense (bstack*C, HW) store
    o_ref[...] = jnp.concatenate(outs, axis=0).astype(o_ref.dtype)


def _col_masks(H, W, ksz):
    """Per-column-offset validity masks (float 0/1), shape (ksz, H*W)."""
    p = ksz // 2
    col = jnp.arange(W, dtype=jnp.int32)
    rows = []
    for dw in range(ksz):
        valid = ((col + dw - p) >= 0) & ((col + dw - p) <= W - 1)
        rows.append(jnp.tile(valid.astype(jnp.float32), H))
    return jnp.stack(rows, axis=0)


@jax.jit
def mlgffn_pallas(x, params):
    B, H, W, C = x.shape
    HW = H * W
    hidden = params["w1"].shape[1]
    half = hidden // 2
    bstack = 2 if B % 2 == 0 else 1
    pad3, pad5 = W + 1, 2 * W + 2

    # XLA-side layout prep: channels-first, spatial flattened onto the lane dim,
    # `bstack` consecutive batches stacked on the sublane axis.
    x_chw = jnp.transpose(x, (0, 3, 1, 2)).reshape(B // bstack, bstack * C, HW)
    w1t = params["w1"].T                         # (hidden, C)
    b1c = params["b1"].reshape(hidden, 1)
    k3t = params["k3"].T                         # (half, 9)
    b3c = params["b3"].reshape(half, 1)
    k5t = params["k5"].T                         # (half, 25)
    b5c = params["b5"].reshape(half, 1)
    w2t = params["w2"].T                         # (C, 2*hidden)
    b2c = params["b2"].reshape(C, 1)
    m3 = _col_masks(H, W, 3)                     # (3, HW)
    m5 = _col_masks(H, W, 5)                     # (5, HW)

    def const_spec(shape):
        return pl.BlockSpec(shape, lambda g: (0,) * len(shape))

    n_inputs = 11
    out_chw = pl.pallas_call(
        functools.partial(_mlgffn_kernel, H=H, W=W, bstack=bstack),
        out_shape=jax.ShapeDtypeStruct((B // bstack, bstack * C, HW), x.dtype),
        grid_spec=pltpu.PrefetchScalarGridSpec(
            num_scalar_prefetch=0,
            # One stacked pair of batches per grid step; "parallel" lets v7x's
            # two TensorCores each take a step when B > 2.
            grid=(B // bstack,),
            in_specs=[
                pl.BlockSpec((None, bstack * C, HW), lambda g: (g, 0, 0)),
                const_spec((hidden, C)),
                const_spec((hidden, 1)),
                const_spec((half, 9)),
                const_spec((half, 1)),
                const_spec((3, HW)),
                const_spec((half, 25)),
                const_spec((half, 1)),
                const_spec((5, HW)),
                const_spec((C, 2 * hidden)),
                const_spec((C, 1)),
            ],
            out_specs=pl.BlockSpec((None, bstack * C, HW), lambda g: (g, 0, 0)),
            scratch_shapes=[
                pltpu.VMEM((half, HW + 2 * pad3), jnp.float32),   # 3x3 flat pad
                pltpu.VMEM((half, HW + 2 * pad5), jnp.float32),   # 5x5 flat pad
            ],
        ),
        compiler_params=pltpu.CompilerParams(
            dimension_semantics=("parallel",),
            # Fold the NHWC -> (B//2, 2C, HW) transpose/reshape into the
            # pallas_call input DMA instead of a standalone XLA transpose op.
            allow_input_fusion=[True] + [False] * (n_inputs - 1),
        ),
    )(x_chw, w1t, b1c, k3t, b3c, m3, k5t, b5c, m5, w2t, b2c)

    # back to NHWC (the PyTorch forward returns (B, H, W, dim))
    return jnp.transpose(out_chw.reshape(B, C, H, W), (0, 2, 3, 1))


def mlgffn_reference(x, params):
    """Pure-JAX reference (plain XLA) mirroring the PyTorch forward (exact erf GELU)."""
    B, H, W, C = x.shape
    hidden = params["w1"].shape[1]
    half = hidden // 2

    y = jnp.einsum("bhwc,cd->bhwd", x, params["w1"]) + params["b1"][0]

    def dw(a, kflat, b, ksz):
        kern = kflat.reshape(ksz, ksz, 1, half)                  # HWIO depthwise
        out = jax.lax.conv_general_dilated(
            a, kern, window_strides=(1, 1), padding="SAME",
            dimension_numbers=("NHWC", "HWIO", "NHWC"),
            feature_group_count=half)
        return out + b[0]

    def gelu(v):
        return 0.5 * v * (1.0 + jax.scipy.special.erf(v / jnp.sqrt(2.0)))

    z1 = gelu(dw(y[..., :half], params["k3"], params["b3"], 3))
    z2 = gelu(dw(y[..., half:], params["k5"], params["b5"], 5))
    g = jnp.broadcast_to(jnp.mean(y, axis=(1, 2), keepdims=True), y.shape)
    z = jnp.concatenate([z1, z2, g], axis=-1)
    return jnp.einsum("bhwd,dc->bhwc", z, params["w2"]) + params["b2"][0]


if __name__ == "__main__":
    B, H, W, C = 2, 16, 16, 4       # dim=4, expansion_factor=4
    hidden = C * 4                  # 16
    half = hidden // 2              # 8

    key = jax.random.PRNGKey(0)
    ks = jax.random.split(key, 10)
    params = {
        "w1": jax.random.normal(ks[0], (C, hidden), jnp.float32) * 0.1,
        "b1": jax.random.normal(ks[1], (1, hidden), jnp.float32) * 0.1,
        "k3": jax.random.normal(ks[2], (9, half), jnp.float32) * 0.1,    # dwconv3x3 taps (dh*3+dw, ch)
        "b3": jax.random.normal(ks[3], (1, half), jnp.float32) * 0.1,
        "k5": jax.random.normal(ks[4], (25, half), jnp.float32) * 0.1,   # dwconv5x5 taps (dh*5+dw, ch)
        "b5": jax.random.normal(ks[5], (1, half), jnp.float32) * 0.1,
        "w2": jax.random.normal(ks[6], (2 * hidden, C), jnp.float32) * 0.1,
        "b2": jax.random.normal(ks[7], (1, C), jnp.float32) * 0.1,
    }
    x = jax.random.normal(ks[8], (B, H, W, C), jnp.float32)

    out = jax.block_until_ready(mlgffn_pallas(x, params))
    ref = jax.block_until_ready(mlgffn_reference(x, params))

    assert out.shape == (B, H, W, C)
    assert jnp.allclose(out, ref, atol=2e-2, rtol=2e-2), \
        f"max abs diff {jnp.max(jnp.abs(out - ref))}"
    print("KERNEL_OK")
</pallas_src>

<mosaic_0001>
module attributes {stable_mosaic.version = 11 : i64} {
  func.func @_mlgffn_kernel(%arg0: i32, %arg1: memref<1x8x256xf32, #tpu.memory_space<vmem>>, %arg2: memref<16x4xf32, #tpu.memory_space<vmem>>, %arg3: memref<16x1xf32, #tpu.memory_space<vmem>>, %arg4: memref<8x9xf32, #tpu.memory_space<vmem>>, %arg5: memref<8x1xf32, #tpu.memory_space<vmem>>, %arg6: memref<3x256xf32, #tpu.memory_space<vmem>>, %arg7: memref<8x25xf32, #tpu.memory_space<vmem>>, %arg8: memref<8x1xf32, #tpu.memory_space<vmem>>, %arg9: memref<5x256xf32, #tpu.memory_space<vmem>>, %arg10: memref<4x32xf32, #tpu.memory_space<vmem>>, %arg11: memref<4x1xf32, #tpu.memory_space<vmem>>, %arg12: memref<1x8x256xf32, #tpu.memory_space<vmem>>, %arg13: memref<8x290xf32, #tpu.memory_space<vmem>>, %arg14: memref<8x324xf32, #tpu.memory_space<vmem>>) attributes {dimension_semantics = [#tpu.dimension_semantics<parallel>], iteration_bounds = array<i64: 1>, scalar_prefetch = 0 : i64, scratch_operands = 2 : i64, tpu.core_type = #tpu.core_type<tc>, window_params = [{transform_indices = @transform_0, window_bounds = array<i64: 1, 8, 256>}, {pipeline_mode = #tpu.pipeline_mode<synchronous>, transform_indices = @transform_1, window_bounds = array<i64: 16, 4>}, {pipeline_mode = #tpu.pipeline_mode<synchronous>, transform_indices = @transform_2, window_bounds = array<i64: 16, 1>}, {pipeline_mode = #tpu.pipeline_mode<synchronous>, transform_indices = @transform_3, window_bounds = array<i64: 8, 9>}, {pipeline_mode = #tpu.pipeline_mode<synchronous>, transform_indices = @transform_4, window_bounds = array<i64: 8, 1>}, {pipeline_mode = #tpu.pipeline_mode<synchronous>, transform_indices = @transform_5, window_bounds = array<i64: 3, 256>}, {pipeline_mode = #tpu.pipeline_mode<synchronous>, transform_indices = @transform_6, window_bounds = array<i64: 8, 25>}, {pipeline_mode = #tpu.pipeline_mode<synchronous>, transform_indices = @transform_7, window_bounds = array<i64: 8, 1>}, {pipeline_mode = #tpu.pipeline_mode<synchronous>, transform_indices = @transform_8, window_bounds = array<i64: 5, 256>}, {pipeline_mode = #tpu.pipeline_mode<synchronous>, transform_indices = @transform_9, window_bounds = array<i64: 4, 32>}, {pipeline_mode = #tpu.pipeline_mode<synchronous>, transform_indices = @transform_10, window_bounds = array<i64: 4, 1>}, {transform_indices = @transform_11, window_bounds = array<i64: 1, 8, 256>}]} {
    %c0 = arith.constant 0 : index
    %c0_0 = arith.constant 0 : index
    %0 = vector.load %arg2[%c0, %c0_0] : memref<16x4xf32, #tpu.memory_space<vmem>>, vector<16x4xf32>
    %c0_1 = arith.constant 0 : index
    %c0_2 = arith.constant 0 : index
    %1 = vector.load %arg3[%c0_1, %c0_2] : memref<16x1xf32, #tpu.memory_space<vmem>>, vector<16x1xf32>
    %c0_3 = arith.constant 0 : index
    %c0_4 = arith.constant 0 : index
    %2 = vector.load %arg10[%c0_3, %c0_4] : memref<4x32xf32, #tpu.memory_space<vmem>>, vector<4x32xf32>
    %c0_5 = arith.constant 0 : index
    %c0_6 = arith.constant 0 : index
    %3 = vector.load %arg11[%c0_5, %c0_6] : memref<4x1xf32, #tpu.memory_space<vmem>>, vector<4x1xf32>
    %c0_7 = arith.constant 0 : index
    %c0_8 = arith.constant 0 : index
    %4 = vector.load %arg4[%c0_7, %c0_8] : memref<8x9xf32, #tpu.memory_space<vmem>>, vector<8x9xf32>
    %c0_9 = arith.constant 0 : index
    %c0_10 = arith.constant 0 : index
    %5 = vector.load %arg5[%c0_9, %c0_10] : memref<8x1xf32, #tpu.memory_space<vmem>>, vector<8x1xf32>
    %c0_11 = arith.constant 0 : index
    %c0_12 = arith.constant 0 : index
    %6 = vector.load %arg6[%c0_11, %c0_12] : memref<3x256xf32, #tpu.memory_space<vmem>>, vector<3x256xf32>
    %c0_13 = arith.constant 0 : index
    %c0_14 = arith.constant 0 : index
    %7 = vector.load %arg7[%c0_13, %c0_14] : memref<8x25xf32, #tpu.memory_space<vmem>>, vector<8x25xf32>
    %c0_15 = arith.constant 0 : index
    %c0_16 = arith.constant 0 : index
    %8 = vector.load %arg8[%c0_15, %c0_16] : memref<8x1xf32, #tpu.memory_space<vmem>>, vector<8x1xf32>
    %c0_17 = arith.constant 0 : index
    %c0_18 = arith.constant 0 : index
    %9 = vector.load %arg9[%c0_17, %c0_18] : memref<5x256xf32, #tpu.memory_space<vmem>>, vector<5x256xf32>
    %cst = arith.constant 0.000000e+00 : f32
    %10 = vector.broadcast %cst : f32 to vector<8x17xf32>
    %c0_19 = arith.constant 0 : index
    %c0_20 = arith.constant 0 : index
    %11 = vector.load %arg13[%c0_19, %c0_20] : memref<8x290xf32, #tpu.memory_space<vmem>>, vector<8x17xf32>
    tpu.vector_store %arg13[%c0_19, %c0_20], %10 {strides = array<i32>} : memref<8x290xf32, #tpu.memory_space<vmem>>, vector<8x17xf32>,
    %cst_21 = arith.constant 0.000000e+00 : f32
    %12 = vector.broadcast %cst_21 : f32 to vector<8x17xf32>
    %c0_22 = arith.constant 0 : index
    %c273 = arith.constant 273 : index
    %13 = vector.load %arg13[%c0_22, %c273] : memref<8x290xf32, #tpu.memory_space<vmem>>, vector<8x17xf32>
    tpu.vector_store %arg13[%c0_22, %c273], %12 {strides = array<i32>} : memref<8x290xf32, #tpu.memory_space<vmem>>, vector<8x17xf32>,
    %cst_23 = arith.constant 0.000000e+00 : f32
    %14 = vector.broadcast %cst_23 : f32 to vector<8x34xf32>
    %c0_24 = arith.constant 0 : index
    %c0_25 = arith.constant 0 : index
    %15 = vector.load %arg14[%c0_24, %c0_25] : memref<8x324xf32, #tpu.memory_space<vmem>>, vector<8x34xf32>
    tpu.vector_store %arg14[%c0_24, %c0_25], %14 {strides = array<i32>} : memref<8x324xf32, #tpu.memory_space<vmem>>, vector<8x34xf32>,
    %cst_26 = arith.constant 0.000000e+00 : f32
    %16 = vector.broadcast %cst_26 : f32 to vector<8x34xf32>
    %c0_27 = arith.constant 0 : index
    %c290 = arith.constant 290 : index
    %17 = vector.load %arg14[%c0_27, %c290] : memref<8x324xf32, #tpu.memory_space<vmem>>, vector<8x34xf32>
    tpu.vector_store %arg14[%c0_27, %c290], %16 {strides = array<i32>} : memref<8x324xf32, #tpu.memory_space<vmem>>, vector<8x34xf32>,
    %cst_28 = arith.constant 0.000000e+00 : f32
    %18 = vector.broadcast %cst_28 : f32 to vector<16x256xf32>
    %c0_29 = arith.constant 0 : index
    %c0_30 = arith.constant 0 : index
    %c0_31 = arith.constant 0 : index
    %19 = vector.load %arg1[%c0_29, %c0_30, %c0_31] : memref<1x8x256xf32, #tpu.memory_space<vmem>>, vector<1x1x256xf32>
    %20 = vector.shape_cast %19 : vector<1x1x256xf32> to vector<1x256xf32>
    %21 = vector.extract_strided_slice %0 {offsets = [0, 0], sizes = [16, 1], strides = [1, 1]} : vector<16x4xf32> to vector<16x1xf32>
    %22 = vector.broadcast %21 : vector<16x1xf32> to vector<16x256xf32>
    %23 = vector.broadcast %20 : vector<1x256xf32> to vector<16x256xf32>
    %24 = arith.mulf %22, %23 : vector<16x256xf32>
    %25 = arith.addf %18, %24 : vector<16x256xf32>
    %c0_32 = arith.constant 0 : index
    %c1 = arith.constant 1 : index
    %c0_33 = arith.constant 0 : index
    %26 = vector.load %arg1[%c0_32, %c1, %c0_33] : memref<1x8x256xf32, #tpu.memory_space<vmem>>, vector<1x1x256xf32>
    %27 = vector.shape_cast %26 : vector<1x1x256xf32> to vector<1x256xf32>
    %28 = vector.extract_strided_slice %0 {offsets = [0, 1], sizes = [16, 1], strides = [1, 1]} : vector<16x4xf32> to vector<16x1xf32>
    %29 = vector.broadcast %28 : vector<16x1xf32> to vector<16x256xf32>
    %30 = vector.broadcast %27 : vector<1x256xf32> to vector<16x256xf32>
    %31 = arith.mulf %29, %30 : vector<16x256xf32>
    %32 = arith.addf %25, %31 : vector<16x256xf32>
    %c0_34 = arith.constant 0 : index
    %c2 = arith.constant 2 : index
    %c0_35 = arith.constant 0 : index
    %33 = vector.load %arg1[%c0_34, %c2, %c0_35] : memref<1x8x256xf32, #tpu.memory_space<vmem>>, vector<1x1x256xf32>
    %34 = vector.shape_cast %33 : vector<1x1x256xf32> to vector<1x256xf32>
    %35 = vector.extract_strided_slice %0 {offsets = [0, 2], sizes = [16, 1], strides = [1, 1]} : vector<16x4xf32> to vector<16x1xf32>
    %36 = vector.broadcast %35 : vector<16x1xf32> to vector<16x256xf32>
    %37 = vector.broadcast %34 : vector<1x256xf32> to vector<16x256xf32>
    %38 = arith.mulf %36, %37 : vector<16x256xf32>
    %39 = arith.addf %32, %38 : vector<16x256xf32>
    %c0_36 = arith.constant 0 : index
    %c3 = arith.constant 3 : index
    %c0_37 = arith.constant 0 : index
    %40 = vector.load %arg1[%c0_36, %c3, %c0_37] : memref<1x8x256xf32, #tpu.memory_space<vmem>>, vector<1x1x256xf32>
    %41 = vector.shape_cast %40 : vector<1x1x256xf32> to vector<1x256xf32>
    %42 = vector.extract_strided_slice %0 {offsets = [0, 3], sizes = [16, 1], strides = [1, 1]} : vector<16x4xf32> to vector<16x1xf32>
    %43 = vector.broadcast %42 : vector<16x1xf32> to vector<16x256xf32>
    %44 = vector.broadcast %41 : vector<1x256xf32> to vector<16x256xf32>
    %45 = arith.mulf %43, %44 : vector<16x256xf32>
    %46 = arith.addf %39, %45 : vector<16x256xf32>
    %47 = vector.broadcast %1 : vector<16x1xf32> to vector<16x256xf32>
    %48 = arith.addf %46, %47 : vector<16x256xf32>
    %49 = vector.extract_strided_slice %48 {offsets = [0, 0], sizes = [8, 256], strides = [1, 1]} : vector<16x256xf32> to vector<8x256xf32>
    %c0_38 = arith.constant 0 : index
    %c17 = arith.constant 17 : index
    %50 = vector.load %arg13[%c0_38, %c17] : memref<8x290xf32, #tpu.memory_space<vmem>>, vector<8x256xf32>
    tpu.vector_store %arg13[%c0_38, %c17], %49 {strides = array<i32>} : memref<8x290xf32, #tpu.memory_space<vmem>>, vector<8x256xf32>,
    %cst_39 = arith.constant 0.000000e+00 : f32
    %51 = vector.broadcast %cst_39 : f32 to vector<8x256xf32>
    %cst_40 = arith.constant 0.000000e+00 : f32
    %52 = vector.broadcast %cst_40 : f32 to vector<8x256xf32>
    %c0_41 = arith.constant 0 : index
    %c0_42 = arith.constant 0 : index
    %53 = vector.load %arg13[%c0_41, %c0_42] : memref<8x290xf32, #tpu.memory_space<vmem>>, vector<8x256xf32>
    %54 = vector.extract_strided_slice %4 {offsets = [0, 0], sizes = [8, 1], strides = [1, 1]} : vector<8x9xf32> to vector<8x1xf32>
    %55 = vector.broadcast %54 : vector<8x1xf32> to vector<8x256xf32>
    %56 = arith.mulf %53, %55 : vector<8x256xf32>
    %57 = arith.addf %52, %56 : vector<8x256xf32>
    %c0_43 = arith.constant 0 : index
    %c16 = arith.constant 16 : index
    %58 = vector.load %arg13[%c0_43, %c16] : memref<8x290xf32, #tpu.memory_space<vmem>>, vector<8x256xf32>
    %59 = vector.extract_strided_slice %4 {offsets = [0, 3], sizes = [8, 1], strides = [1, 1]} : vector<8x9xf32> to vector<8x1xf32>
    %60 = vector.broadcast %59 : vector<8x1xf32> to vector<8x256xf32>
    %61 = arith.mulf %58, %60 : vector<8x256xf32>
    %62 = arith.addf %57, %61 : vector<8x256xf32>
    %c0_44 = arith.constant 0 : index
    %c32 = arith.constant 32 : index
    %63 = vector.load %arg13[%c0_44, %c32] : memref<8x290xf32, #tpu.memory_space<vmem>>, vector<8x256xf32>
    %64 = vector.extract_strided_slice %4 {offsets = [0, 6], sizes = [8, 1], strides = [1, 1]} : vector<8x9xf32> to vector<8x1xf32>
    %65 = vector.broadcast %64 : vector<8x1xf32> to vector<8x256xf32>
    %66 = arith.mulf %63, %65 : vector<8x256xf32>
    %67 = arith.addf %62, %66 : vector<8x256xf32>
    %68 = vector.extract_strided_slice %6 {offsets = [0, 0], sizes = [1, 256], strides = [1, 1]} : vector<3x256xf32> to vector<1x256xf32>
    %69 = vector.broadcast %68 : vector<1x256xf32> to vector<8x256xf32>
    %70 = arith.mulf %67, %69 : vector<8x256xf32>
    %71 = arith.addf %51, %70 : vector<8x256xf32>
    %cst_45 = arith.constant 0.000000e+00 : f32
    %72 = vector.broadcast %cst_45 : f32 to vector<8x256xf32>
    %c0_46 = arith.constant 0 : index
    %c1_47 = arith.constant 1 : index
    %73 = vector.load %arg13[%c0_46, %c1_47] : memref<8x290xf32, #tpu.memory_space<vmem>>, vector<8x256xf32>
    %74 = vector.extract_strided_slice %4 {offsets = [0, 1], sizes = [8, 1], strides = [1, 1]} : vector<8x9xf32> to vector<8x1xf32>
    %75 = vector.broadcast %74 : vector<8x1xf32> to vector<8x256xf32>
    %76 = arith.mulf %73, %75 : vector<8x256xf32>
    %77 = arith.addf %72, %76 : vector<8x256xf32>
    %c0_48 = arith.constant 0 : index
    %c17_49 = arith.constant 17 : index
    %78 = vector.load %arg13[%c0_48, %c17_49] : memref<8x290xf32, #tpu.memory_space<vmem>>, vector<8x256xf32>
    %79 = vector.extract_strided_slice %4 {offsets = [0, 4], sizes = [8, 1], strides = [1, 1]} : vector<8x9xf32> to vector<8x1xf32>
    %80 = vector.broadcast %79 : vector<8x1xf32> to vector<8x256xf32>
    %81 = arith.mulf %78, %80 : vector<8x256xf32>
    %82 = arith.addf %77, %81 : vector<8x256xf32>
    %c0_50 = arith.constant 0 : index
    %c33 = arith.constant 33 : index
    %83 = vector.load %arg13[%c0_50, %c33] : memref<8x290xf32, #tpu.memory_space<vmem>>, vector<8x256xf32>
    %84 = vector.extract_strided_slice %4 {offsets = [0, 7], sizes = [8, 1], strides = [1, 1]} : vector<8x9xf32> to vector<8x1xf32>
    %85 = vector.broadcast %84 : vector<8x1xf32> to vector<8x256xf32>
    %86 = arith.mulf %83, %85 : vector<8x256xf32>
    %87 = arith.addf %82, %86 : vector<8x256xf32>
    %88 = vector.extract_strided_slice %6 {offsets = [1, 0], sizes = [1, 256], strides = [1, 1]} : vector<3x256xf32> to vector<1x256xf32>
    %89 = vector.broadcast %88 : vector<1x256xf32> to vector<8x256xf32>
    %90 = arith.mulf %87, %89 : vector<8x256xf32>
    %91 = arith.addf %71, %90 : vector<8x256xf32>
    %cst_51 = arith.constant 0.000000e+00 : f32
    %92 = vector.broadcast %cst_51 : f32 to vector<8x256xf32>
    %c0_52 = arith.constant 0 : index
    %c2_53 = arith.constant 2 : index
    %93 = vector.load %arg13[%c0_52, %c2_53] : memref<8x290xf32, #tpu.memory_space<vmem>>, vector<8x256xf32>
    %94 = vector.extract_strided_slice %4 {offsets = [0, 2], sizes = [8, 1], strides = [1, 1]} : vector<8x9xf32> to vector<8x1xf32>
    %95 = vector.broadcast %94 : vector<8x1xf32> to vector<8x256xf32>
    %96 = arith.mulf %93, %95 : vector<8x256xf32>
    %97 = arith.addf %92, %96 : vector<8x256xf32>
    %c0_54 = arith.constant 0 : index
    %c18 = arith.constant 18 : index
    %98 = vector.load %arg13[%c0_54, %c18] : memref<8x290xf32, #tpu.memory_space<vmem>>, vector<8x256xf32>
    %99 = vector.extract_strided_slice %4 {offsets = [0, 5], sizes = [8, 1], strides = [1, 1]} : vector<8x9xf32> to vector<8x1xf32>
    %100 = vector.broadcast %99 : vector<8x1xf32> to vector<8x256xf32>
    %101 = arith.mulf %98, %100 : vector<8x256xf32>
    %102 = arith.addf %97, %101 : vector<8x256xf32>
    %c0_55 = arith.constant 0 : index
    %c34 = arith.constant 34 : index
    %103 = vector.load %arg13[%c0_55, %c34] : memref<8x290xf32, #tpu.memory_space<vmem>>, vector<8x256xf32>
    %104 = vector.extract_strided_slice %4 {offsets = [0, 8], sizes = [8, 1], strides = [1, 1]} : vector<8x9xf32> to vector<8x1xf32>
    %105 = vector.broadcast %104 : vector<8x1xf32> to vector<8x256xf32>
    %106 = arith.mulf %103, %105 : vector<8x256xf32>
    %107 = arith.addf %102, %106 : vector<8x256xf32>
    %108 = vector.extract_strided_slice %6 {offsets = [2, 0], sizes = [1, 256], strides = [1, 1]} : vector<3x256xf32> to vector<1x256xf32>
    %109 = vector.broadcast %108 : vector<1x256xf32> to vector<8x256xf32>
    %110 = arith.mulf %107, %109 : vector<8x256xf32>
    %111 = arith.addf %91, %110 : vector<8x256xf32>
    %112 = vector.broadcast %5 : vector<8x1xf32> to vector<8x256xf32>
    %113 = arith.addf %111, %112 : vector<8x256xf32>
    %cst_56 = arith.constant 5.000000e-01 : f32
    %114 = vector.broadcast %cst_56 : f32 to vector<8x256xf32>
    %115 = arith.mulf %114, %113 : vector<8x256xf32>
    %cst_57 = arith.constant 4.471500e-02 : f32
    %116 = vector.broadcast %cst_57 : f32 to vector<8x256xf32>
    %117 = arith.mulf %116, %113 : vector<8x256xf32>
    %118 = arith.mulf %117, %113 : vector<8x256xf32>
    %119 = arith.mulf %118, %113 : vector<8x256xf32>
    %120 = arith.addf %113, %119 : vector<8x256xf32>
    %cst_58 = arith.constant 0.797884583 : f32
    %121 = vector.broadcast %cst_58 : f32 to vector<8x256xf32>
    %122 = arith.mulf %121, %120 : vector<8x256xf32>
    %123 = math.tanh %122 : vector<8x256xf32>
    %cst_59 = arith.constant 1.000000e+00 : f32
    %124 = vector.broadcast %cst_59 : f32 to vector<8x256xf32>
    %125 = arith.addf %124, %123 : vector<8x256xf32>
    %126 = arith.mulf %115, %125 : vector<8x256xf32>
    %127 = vector.extract_strided_slice %48 {offsets = [8, 0], sizes = [8, 256], strides = [1, 1]} : vector<16x256xf32> to vector<8x256xf32>
    %c0_60 = arith.constant 0 : index
    %c34_61 = arith.constant 34 : index
    %128 = vector.load %arg14[%c0_60, %c34_61] : memref<8x324xf32, #tpu.memory_space<vmem>>, vector<8x256xf32>
    tpu.vector_store %arg14[%c0_60, %c34_61], %127 {strides = array<i32>} : memref<8x324xf32, #tpu.memory_space<vmem>>, vector<8x256xf32>,
    %cst_62 = arith.constant 0.000000e+00 : f32
    %129 = vector.broadcast %cst_62 : f32 to vector<8x256xf32>
    %cst_63 = arith.constant 0.000000e+00 : f32
    %130 = vector.broadcast %cst_63 : f32 to vector<8x256xf32>
    %c0_64 = arith.constant 0 : index
    %c0_65 = arith.constant 0 : index
    %131 = vector.load %arg14[%c0_64, %c0_65] : memref<8x324xf32, #tpu.memory_space<vmem>>, vector<8x256xf32>
    %132 = vector.extract_strided_slice %7 {offsets = [0, 0], sizes = [8, 1], strides = [1, 1]} : vector<8x25xf32> to vector<8x1xf32>
    %133 = vector.broadcast %132 : vector<8x1xf32> to vector<8x256xf32>
    %134 = arith.mulf %131, %133 : vector<8x256xf32>
    %135 = arith.addf %130, %134 : vector<8x256xf32>
    %c0_66 = arith.constant 0 : index
    %c16_67 = arith.constant 16 : index
    %136 = vector.load %arg14[%c0_66, %c16_67] : memref<8x324xf32, #tpu.memory_space<vmem>>, vector<8x256xf32>
    %137 = vector.extract_strided_slice %7 {offsets = [0, 5], sizes = [8, 1], strides = [1, 1]} : vector<8x25xf32> to vector<8x1xf32>
    %138 = vector.broadcast %137 : vector<8x1xf32> to vector<8x256xf32>
    %139 = arith.mulf %136, %138 : vector<8x256xf32>
    %140 = arith.addf %135, %139 : vector<8x256xf32>
    %c0_68 = arith.constant 0 : index
    %c32_69 = arith.constant 32 : index
    %141 = vector.load %arg14[%c0_68, %c32_69] : memref<8x324xf32, #tpu.memory_space<vmem>>, vector<8x256xf32>
    %142 = vector.extract_strided_slice %7 {offsets = [0, 10], sizes = [8, 1], strides = [1, 1]} : vector<8x25xf32> to vector<8x1xf32>
    %143 = vector.broadcast %142 : vector<8x1xf32> to vector<8x256xf32>
    %144 = arith.mulf %141, %143 : vector<8x256xf32>
    %145 = arith.addf %140, %144 : vector<8x256xf32>
    %c0_70 = arith.constant 0 : index
    %c48 = arith.constant 48 : index
    %146 = vector.load %arg14[%c0_70, %c48] : memref<8x324xf32, #tpu.memory_space<vmem>>, vector<8x256xf32>
    %147 = vector.extract_strided_slice %7 {offsets = [0, 15], sizes = [8, 1], strides = [1, 1]} : vector<8x25xf32> to vector<8x1xf32>
    %148 = vector.broadcast %147 : vector<8x1xf32> to vector<8x256xf32>
    %149 = arith.mulf %146, %148 : vector<8x256xf32>
    %150 = arith.addf %145, %149 : vector<8x256xf32>
    %c0_71 = arith.constant 0 : index
    %c64 = arith.constant 64 : index
    %151 = vector.load %arg14[%c0_71, %c64] : memref<8x324xf32, #tpu.memory_space<vmem>>, vector<8x256xf32>
    %152 = vector.extract_strided_slice %7 {offsets = [0, 20], sizes = [8, 1], strides = [1, 1]} : vector<8x25xf32> to vector<8x1xf32>
    %153 = vector.broadcast %152 : vector<8x1xf32> to vector<8x256xf32>
    %154 = arith.mulf %151, %153 : vector<8x256xf32>
    %155 = arith.addf %150, %154 : vector<8x256xf32>
    %156 = vector.extract_strided_slice %9 {offsets = [0, 0], sizes = [1, 256], strides = [1, 1]} : vector<5x256xf32> to vector<1x256xf32>
    %157 = vector.broadcast %156 : vector<1x256xf32> to vector<8x256xf32>
    %158 = arith.mulf %155, %157 : vector<8x256xf32>
    %159 = arith.addf %129, %158 : vector<8x256xf32>
    %cst_72 = arith.constant 0.000000e+00 : f32
    %160 = vector.broadcast %cst_72 : f32 to vector<8x256xf32>
    %c0_73 = arith.constant 0 : index
    %c1_74 = arith.constant 1 : index
    %161 = vector.load %arg14[%c0_73, %c1_74] : memref<8x324xf32, #tpu.memory_space<vmem>>, vector<8x256xf32>
    %162 = vector.extract_strided_slice %7 {offsets = [0, 1], sizes = [8, 1], strides = [1, 1]} : vector<8x25xf32> to vector<8x1xf32>
    %163 = vector.broadcast %162 : vector<8x1xf32> to vector<8x256xf32>
    %164 = arith.mulf %161, %163 : vector<8x256xf32>
    %165 = arith.addf %160, %164 : vector<8x256xf32>
    %c0_75 = arith.constant 0 : index
    %c17_76 = arith.constant 17 : index
    %166 = vector.load %arg14[%c0_75, %c17_76] : memref<8x324xf32, #tpu.memory_space<vmem>>, vector<8x256xf32>
    %167 = vector.extract_strided_slice %7 {offsets = [0, 6], sizes = [8, 1], strides = [1, 1]} : vector<8x25xf32> to vector<8x1xf32>
    %168 = vector.broadcast %167 : vector<8x1xf32> to vector<8x256xf32>
    %169 = arith.mulf %166, %168 : vector<8x256xf32>
    %170 = arith.addf %165, %169 : vector<8x256xf32>
    %c0_77 = arith.constant 0 : index
    %c33_78 = arith.constant 33 : index
    %171 = vector.load %arg14[%c0_77, %c33_78] : memref<8x324xf32, #tpu.memory_space<vmem>>, vector<8x256xf32>
    %172 = vector.extract_strided_slice %7 {offsets = [0, 11], sizes = [8, 1], strides = [1, 1]} : vector<8x25xf32> to vector<8x1xf32>
    %173 = vector.broadcast %172 : vector<8x1xf32> to vector<8x256xf32>
    %174 = arith.mulf %171, %173 : vector<8x256xf32>
    %175 = arith.addf %170, %174 : vector<8x256xf32>
    %c0_79 = arith.constant 0 : index
    %c49 = arith.constant 49 : index
    %176 = vector.load %arg14[%c0_79, %c49] : memref<8x324xf32, #tpu.memory_space<vmem>>, vector<8x256xf32>
    %177 = vector.extract_strided_slice %7 {offsets = [0, 16], sizes = [8, 1], strides = [1, 1]} : vector<8x25xf32> to vector<8x1xf32>
    %178 = vector.broadcast %177 : vector<8x1xf32> to vector<8x256xf32>
    %179 = arith.mulf %176, %178 : vector<8x256xf32>
    %180 = arith.addf %175, %179 : vector<8x256xf32>
    %c0_80 = arith.constant 0 : index
    %c65 = arith.constant 65 : index
    %181 = vector.load %arg14[%c0_80, %c65] : memref<8x324xf32, #tpu.memory_space<vmem>>, vector<8x256xf32>
    %182 = vector.extract_strided_slice %7 {offsets = [0, 21], sizes = [8, 1], strides = [1, 1]} : vector<8x25xf32> to vector<8x1xf32>
    %183 = vector.broadcast %182 : vector<8x1xf32> to vector<8x256xf32>
    %184 = arith.mulf %181, %183 : vector<8x256xf32>
    %185 = arith.addf %180, %184 : vector<8x256xf32>
    %186 = vector.extract_strided_slice %9 {offsets = [1, 0], sizes = [1, 256], strides = [1, 1]} : vector<5x256xf32> to vector<1x256xf32>
    %187 = vector.broadcast %186 : vector<1x256xf32> to vector<8x256xf32>
    %188 = arith.mulf %185, %187 : vector<8x256xf32>
    %189 = arith.addf %159, %188 : vector<8x256xf32>
    %cst_81 = arith.constant 0.000000e+00 : f32
    %190 = vector.broadcast %cst_81 : f32 to vector<8x256xf32>
    %c0_82 = arith.constant 0 : index
    %c2_83 = arith.constant 2 : index
    %191 = vector.load %arg14[%c0_82, %c2_83] : memref<8x324xf32, #tpu.memory_space<vmem>>, vector<8x256xf32>
    %192 = vector.extract_strided_slice %7 {offsets = [0, 2], sizes = [8, 1], strides = [1, 1]} : vector<8x25xf32> to vector<8x1xf32>
    %193 = vector.broadcast %192 : vector<8x1xf32> to vector<8x256xf32>
    %194 = arith.mulf %191, %193 : vector<8x256xf32>
    %195 = arith.addf %190, %194 : vector<8x256xf32>
    %c0_84 = arith.constant 0 : index
    %c18_85 = arith.constant 18 : index
    %196 = vector.load %arg14[%c0_84, %c18_85] : memref<8x324xf32, #tpu.memory_space<vmem>>, vector<8x256xf32>
    %197 = vector.extract_strided_slice %7 {offsets = [0, 7], sizes = [8, 1], strides = [1, 1]} : vector<8x25xf32> to vector<8x1xf32>
    %198 = vector.broadcast %197 : vector<8x1xf32> to vector<8x256xf32>
    %199 = arith.mulf %196, %198 : vector<8x256xf32>
    %200 = arith.addf %195, %199 : vector<8x256xf32>
    %c0_86 = arith.constant 0 : index
    %c34_87 = arith.constant 34 : index
    %201 = vector.load %arg14[%c0_86, %c34_87] : memref<8x324xf32, #tpu.memory_space<vmem>>, vector<8x256xf32>
    %202 = vector.extract_strided_slice %7 {offsets = [0, 12], sizes = [8, 1], strides = [1, 1]} : vector<8x25xf32> to vector<8x1xf32>
    %203 = vector.broadcast %202 : vector<8x1xf32> to vector<8x256xf32>
    %204 = arith.mulf %201, %203 : vector<8x256xf32>
    %205 = arith.addf %200, %204 : vector<8x256xf32>
    %c0_88 = arith.constant 0 : index
    %c50 = arith.constant 50 : index
    %206 = vector.load %arg14[%c0_88, %c50] : memref<8x324xf32, #tpu.memory_space<vmem>>, vector<8x256xf32>
    %207 = vector.extract_strided_slice %7 {offsets = [0, 17], sizes = [8, 1], strides = [1, 1]} : vector<8x25xf32> to vector<8x1xf32>
    %208 = vector.broadcast %207 : vector<8x1xf32> to vector<8x256xf32>
    %209 = arith.mulf %206, %208 : vector<8x256xf32>
    %210 = arith.addf %205, %209 : vector<8x256xf32>
    %c0_89 = arith.constant 0 : index
    %c66 = arith.constant 66 : index
    %211 = vector.load %arg14[%c0_89, %c66] : memref<8x324xf32, #tpu.memory_space<vmem>>, vector<8x256xf32>
    %212 = vector.extract_strided_slice %7 {offsets = [0, 22], sizes = [8, 1], strides = [1, 1]} : vector<8x25xf32> to vector<8x1xf32>
    %213 = vector.broadcast %212 : vector<8x1xf32> to vector<8x256xf32>
    %214 = arith.mulf %211, %213 : vector<8x256xf32>
    %215 = arith.addf %210, %214 : vector<8x256xf32>
    %216 = vector.extract_strided_slice %9 {offsets = [2, 0], sizes = [1, 256], strides = [1, 1]} : vector<5x256xf32> to vector<1x256xf32>
    %217 = vector.broadcast %216 : vector<1x256xf32> to vector<8x256xf32>
    %218 = arith.mulf %215, %217 : vector<8x256xf32>
    %219 = arith.addf %189, %218 : vector<8x256xf32>
    %cst_90 = arith.constant 0.000000e+00 : f32
    %220 = vector.broadcast %cst_90 : f32 to vector<8x256xf32>
    %c0_91 = arith.constant 0 : index
    %c3_92 = arith.constant 3 : index
    %221 = vector.load %arg14[%c0_91, %c3_92] : memref<8x324xf32, #tpu.memory_space<vmem>>, vector<8x256xf32>
    %222 = vector.extract_strided_slice %7 {offsets = [0, 3], sizes = [8, 1], strides = [1, 1]} : vector<8x25xf32> to vector<8x1xf32>
    %223 = vector.broadcast %222 : vector<8x1xf32> to vector<8x256xf32>
    %224 = arith.mulf %221, %223 : vector<8x256xf32>
    %225 = arith.addf %220, %224 : vector<8x256xf32>
    %c0_93 = arith.constant 0 : index
    %c19 = arith.constant 19 : index
    %226 = vector.load %arg14[%c0_93, %c19] : memref<8x324xf32, #tpu.memory_space<vmem>>, vector<8x256xf32>
    %227 = vector.extract_strided_slice %7 {offsets = [0, 8], sizes = [8, 1], strides = [1, 1]} : vector<8x25xf32> to vector<8x1xf32>
    %228 = vector.broadcast %227 : vector<8x1xf32> to vector<8x256xf32>
    %229 = arith.mulf %226, %228 : vector<8x256xf32>
    %230 = arith.addf %225, %229 : vector<8x256xf32>
    %c0_94 = arith.constant 0 : index
    %c35 = arith.constant 35 : index
    %231 = vector.load %arg14[%c0_94, %c35] : memref<8x324xf32, #tpu.memory_space<vmem>>, vector<8x256xf32>
    %232 = vector.extract_strided_slice %7 {offsets = [0, 13], sizes = [8, 1], strides = [1, 1]} : vector<8x25xf32> to vector<8x1xf32>
    %233 = vector.broadcast %232 : vector<8x1xf32> to vector<8x256xf32>
    %234 = arith.mulf %231, %233 : vector<8x256xf32>
    %235 = arith.addf %230, %234 : vector<8x256xf32>
    %c0_95 = arith.constant 0 : index
    %c51 = arith.constant 51 : index
    %236 = vector.load %arg14[%c0_95, %c51] : memref<8x324xf32, #tpu.memory_space<vmem>>, vector<8x256xf32>
    %237 = vector.extract_strided_slice %7 {offsets = [0, 18], sizes = [8, 1], strides = [1, 1]} : vector<8x25xf32> to vector<8x1xf32>
    %238 = vector.broadcast %237 : vector<8x1xf32> to vector<8x256xf32>
    %239 = arith.mulf %236, %238 : vector<8x256xf32>
    %240 = arith.addf %235, %239 : vector<8x256xf32>
    %c0_96 = arith.constant 0 : index
    %c67 = arith.constant 67 : index
    %241 = vector.load %arg14[%c0_96, %c67] : memref<8x324xf32, #tpu.memory_space<vmem>>, vector<8x256xf32>
    %242 = vector.extract_strided_slice %7 {offsets = [0, 23], sizes = [8, 1], strides = [1, 1]} : vector<8x25xf32> to vector<8x1xf32>
    %243 = vector.broadcast %242 : vector<8x1xf32> to vector<8x256xf32>
    %244 = arith.mulf %241, %243 : vector<8x256xf32>
    %245 = arith.addf %240, %244 : vector<8x256xf32>
    %246 = vector.extract_strided_slice %9 {offsets = [3, 0], sizes = [1, 256], strides = [1, 1]} : vector<5x256xf32> to vector<1x256xf32>
    %247 = vector.broadcast %246 : vector<1x256xf32> to vector<8x256xf32>
    %248 = arith.mulf %245, %247 : vector<8x256xf32>
    %249 = arith.addf %219, %248 : vector<8x256xf32>
    %cst_97 = arith.constant 0.000000e+00 : f32
    %250 = vector.broadcast %cst_97 : f32 to vector<8x256xf32>
    %c0_98 = arith.constant 0 : index
    %c4 = arith.constant 4 : index
    %251 = vector.load %arg14[%c0_98, %c4] : memref<8x324xf32, #tpu.memory_space<vmem>>, vector<8x256xf32>
    %252 = vector.extract_strided_slice %7 {offsets = [0, 4], sizes = [8, 1], strides = [1, 1]} : vector<8x25xf32> to vector<8x1xf32>
    %253 = vector.broadcast %252 : vector<8x1xf32> to vector<8x256xf32>
    %254 = arith.mulf %251, %253 : vector<8x256xf32>
    %255 = arith.addf %250, %254 : vector<8x256xf32>
    %c0_99 = arith.constant 0 : index
    %c20 = arith.constant 20 : index
    %256 = vector.load %arg14[%c0_99, %c20] : memref<8x324xf32, #tpu.memory_space<vmem>>, vector<8x256xf32>
    %257 = vector.extract_strided_slice %7 {offsets = [0, 9], sizes = [8, 1], strides = [1, 1]} : vector<8x25xf32> to vector<8x1xf32>
    %258 = vector.broadcast %257 : vector<8x1xf32> to vector<8x256xf32>
    %259 = arith.mulf %256, %258 : vector<8x256xf32>
    %260 = arith.addf %255, %259 : vector<8x256xf32>
    %c0_100 = arith.constant 0 : index
    %c36 = arith.constant 36 : index
    %261 = vector.load %arg14[%c0_100, %c36] : memref<8x324xf32, #tpu.memory_space<vmem>>, vector<8x256xf32>
    %262 = vector.extract_strided_slice %7 {offsets = [0, 14], sizes = [8, 1], strides = [1, 1]} : vector<8x25xf32> to vector<8x1xf32>
    %263 = vector.broadcast %262 : vector<8x1xf32> to vector<8x256xf32>
    %264 = arith.mulf %261, %263 : vector<8x256xf32>
    %265 = arith.addf %260, %264 : vector<8x256xf32>
    %c0_101 = arith.constant 0 : index
    %c52 = arith.constant 52 : index
    %266 = vector.load %arg14[%c0_101, %c52] : memref<8x324xf32, #tpu.memory_space<vmem>>, vector<8x256xf32>
    %267 = vector.extract_strided_slice %7 {offsets = [0, 19], sizes = [8, 1], strides = [1, 1]} : vector<8x25xf32> to vector<8x1xf32>
    %268 = vector.broadcast %267 : vector<8x1xf32> to vector<8x256xf32>
    %269 = arith.mulf %266, %268 : vector<8x256xf32>
    %270 = arith.addf %265, %269 : vector<8x256xf32>
    %c0_102 = arith.constant 0 : index
    %c68 = arith.constant 68 : index
    %271 = vector.load %arg14[%c0_102, %c68] : memref<8x324xf32, #tpu.memory_space<vmem>>, vector<8x256xf32>
    %272 = vector.extract_strided_slice %7 {offsets = [0, 24], sizes = [8, 1], strides = [1, 1]} : vector<8x25xf32> to vector<8x1xf32>
    %273 = vector.broadcast %272 : vector<8x1xf32> to vector<8x256xf32>
    %274 = arith.mulf %271, %273 : vector<8x256xf32>
    %275 = arith.addf %270, %274 : vector<8x256xf32>
    %276 = vector.extract_strided_slice %9 {offsets = [4, 0], sizes = [1, 256], strides = [1, 1]} : vector<5x256xf32> to vector<1x256xf32>
    %277 = vector.broadcast %276 : vector<1x256xf32> to vector<8x256xf32>
    %278 = arith.mulf %275, %277 : vector<8x256xf32>
    %279 = arith.addf %249, %278 : vector<8x256xf32>
    %280 = vector.broadcast %8 : vector<8x1xf32> to vector<8x256xf32>
    %281 = arith.addf %279, %280 : vector<8x256xf32>
    %cst_103 = arith.constant 5.000000e-01 : f32
    %282 = vector.broadcast %cst_103 : f32 to vector<8x256xf32>
    %283 = arith.mulf %282, %281 : vector<8x256xf32>
    %cst_104 = arith.constant 4.471500e-02 : f32
    %284 = vector.broadcast %cst_104 : f32 to vector<8x256xf32>
    %285 = arith.mulf %284, %281 : vector<8x256xf32>
    %286 = arith.mulf %285, %281 : vector<8x256xf32>
    %287 = arith.mulf %286, %281 : vector<8x256xf32>
    %288 = arith.addf %281, %287 : vector<8x256xf32>
    %cst_105 = arith.constant 0.797884583 : f32
    %289 = vector.broadcast %cst_105 : f32 to vector<8x256xf32>
    %290 = arith.mulf %289, %288 : vector<8x256xf32>
    %291 = math.tanh %290 : vector<8x256xf32>
    %cst_106 = arith.constant 1.000000e+00 : f32
    %292 = vector.broadcast %cst_106 : f32 to vector<8x256xf32>
    %293 = arith.addf %292, %291 : vector<8x256xf32>
    %294 = arith.mulf %283, %293 : vector<8x256xf32>
    %cst_107 = arith.constant 0.000000e+00 : f32
    %295 = vector.broadcast %cst_107 : f32 to vector<4x256xf32>
    %296 = vector.extract_strided_slice %2 {offsets = [0, 0], sizes = [4, 1], strides = [1, 1]} : vector<4x32xf32> to vector<4x1xf32>
    %297 = vector.extract_strided_slice %126 {offsets = [0, 0], sizes = [1, 256], strides = [1, 1]} : vector<8x256xf32> to vector<1x256xf32>
    %298 = vector.broadcast %296 : vector<4x1xf32> to vector<4x256xf32>
    %299 = vector.broadcast %297 : vector<1x256xf32> to vector<4x256xf32>
    %300 = arith.mulf %298, %299 : vector<4x256xf32>
    %301 = arith.addf %295, %300 : vector<4x256xf32>
    %302 = vector.extract_strided_slice %2 {offsets = [0, 1], sizes = [4, 1], strides = [1, 1]} : vector<4x32xf32> to vector<4x1xf32>
    %303 = vector.extract_strided_slice %126 {offsets = [1, 0], sizes = [1, 256], strides = [1, 1]} : vector<8x256xf32> to vector<1x256xf32>
    %304 = vector.broadcast %302 : vector<4x1xf32> to vector<4x256xf32>
    %305 = vector.broadcast %303 : vector<1x256xf32> to vector<4x256xf32>
    %306 = arith.mulf %304, %305 : vector<4x256xf32>
    %307 = arith.addf %301, %306 : vector<4x256xf32>
    %308 = vector.extract_strided_slice %2 {offsets = [0, 2], sizes = [4, 1], strides = [1, 1]} : vector<4x32xf32> to vector<4x1xf32>
    %309 = vector.extract_strided_slice %126 {offsets = [2, 0], sizes = [1, 256], strides = [1, 1]} : vector<8x256xf32> to vector<1x256xf32>
    %310 = vector.broadcast %308 : vector<4x1xf32> to vector<4x256xf32>
    %311 = vector.broadcast %309 : vector<1x256xf32> to vector<4x256xf32>
    %312 = arith.mulf %310, %311 : vector<4x256xf32>
    %313 = arith.addf %307, %312 : vector<4x256xf32>
    %314 = vector.extract_strided_slice %2 {offsets = [0, 3], sizes = [4, 1], strides = [1, 1]} : vector<4x32xf32> to vector<4x1xf32>
    %315 = vector.extract_strided_slice %126 {offsets = [3, 0], sizes = [1, 256], strides = [1, 1]} : vector<8x256xf32> to vector<1x256xf32>
    %316 = vector.broadcast %314 : vector<4x1xf32> to vector<4x256xf32>
    %317 = vector.broadcast %315 : vector<1x256xf32> to vector<4x256xf32>
    %318 = arith.mulf %316, %317 : vector<4x256xf32>
    %319 = arith.addf %313, %318 : vector<4x256xf32>
    %320 = vector.extract_strided_slice %2 {offsets = [0, 4], sizes = [4, 1], strides = [1, 1]} : vector<4x32xf32> to vector<4x1xf32>
    %321 = vector.extract_strided_slice %126 {offsets = [4, 0], sizes = [1, 256], strides = [1, 1]} : vector<8x256xf32> to vector<1x256xf32>
    %322 = vector.broadcast %320 : vector<4x1xf32> to vector<4x256xf32>
    %323 = vector.broadcast %321 : vector<1x256xf32> to vector<4x256xf32>
    %324 = arith.mulf %322, %323 : vector<4x256xf32>
    %325 = arith.addf %319, %324 : vector<4x256xf32>
    %326 = vector.extract_strided_slice %2 {offsets = [0, 5], sizes = [4, 1], strides = [1, 1]} : vector<4x32xf32> to vector<4x1xf32>
    %327 = vector.extract_strided_slice %126 {offsets = [5, 0], sizes = [1, 256], strides = [1, 1]} : vector<8x256xf32> to vector<1x256xf32>
    %328 = vector.broadcast %326 : vector<4x1xf32> to vector<4x256xf32>
    %329 = vector.broadcast %327 : vector<1x256xf32> to vector<4x256xf32>
    %330 = arith.mulf %328, %329 : vector<4x256xf32>
    %331 = arith.addf %325, %330 : vector<4x256xf32>
    %332 = vector.extract_strided_slice %2 {offsets = [0, 6], sizes = [4, 1], strides = [1, 1]} : vector<4x32xf32> to vector<4x1xf32>
    %333 = vector.extract_strided_slice %126 {offsets = [6, 0], sizes = [1, 256], strides = [1, 1]} : vector<8x256xf32> to vector<1x256xf32>
    %334 = vector.broadcast %332 : vector<4x1xf32> to vector<4x256xf32>
    %335 = vector.broadcast %333 : vector<1x256xf32> to vector<4x256xf32>
    %336 = arith.mulf %334, %335 : vector<4x256xf32>
    %337 = arith.addf %331, %336 : vector<4x256xf32>
    %338 = vector.extract_strided_slice %2 {offsets = [0, 7], sizes = [4, 1], strides = [1, 1]} : vector<4x32xf32> to vector<4x1xf32>
    %339 = vector.extract_strided_slice %126 {offsets = [7, 0], sizes = [1, 256], strides = [1, 1]} : vector<8x256xf32> to vector<1x256xf32>
    %340 = vector.broadcast %338 : vector<4x1xf32> to vector<4x256xf32>
    %341 = vector.broadcast %339 : vector<1x256xf32> to vector<4x256xf32>
    %342 = arith.mulf %340, %341 : vector<4x256xf32>
    %343 = arith.addf %337, %342 : vector<4x256xf32>
    %344 = vector.extract_strided_slice %2 {offsets = [0, 8], sizes = [4, 1], strides = [1, 1]} : vector<4x32xf32> to vector<4x1xf32>
    %345 = vector.extract_strided_slice %294 {offsets = [0, 0], sizes = [1, 256], strides = [1, 1]} : vector<8x256xf32> to vector<1x256xf32>
    %346 = vector.broadcast %344 : vector<4x1xf32> to vector<4x256xf32>
    %347 = vector.broadcast %345 : vector<1x256xf32> to vector<4x256xf32>
    %348 = arith.mulf %346, %347 : vector<4x256xf32>
    %349 = arith.addf %343, %348 : vector<4x256xf32>
    %350 = vector.extract_strided_slice %2 {offsets = [0, 9], sizes = [4, 1], strides = [1, 1]} : vector<4x32xf32> to vector<4x1xf32>
    %351 = vector.extract_strided_slice %294 {offsets = [1, 0], sizes = [1, 256], strides = [1, 1]} : vector<8x256xf32> to vector<1x256xf32>
    %352 = vector.broadcast %350 : vector<4x1xf32> to vector<4x256xf32>
    %353 = vector.broadcast %351 : vector<1x256xf32> to vector<4x256xf32>
    %354 = arith.mulf %352, %353 : vector<4x256xf32>
    %355 = arith.addf %349, %354 : vector<4x256xf32>
    %356 = vector.extract_strided_slice %2 {offsets = [0, 10], sizes = [4, 1], strides = [1, 1]} : vector<4x32xf32> to vector<4x1xf32>
    %357 = vector.extract_strided_slice %294 {offsets = [2, 0], sizes = [1, 256], strides = [1, 1]} : vector<8x256xf32> to vector<1x256xf32>
    %358 = vector.broadcast %356 : vector<4x1xf32> to vector<4x256xf32>
    %359 = vector.broadcast %357 : vector<1x256xf32> to vector<4x256xf32>
    %360 = arith.mulf %358, %359 : vector<4x256xf32>
    %361 = arith.addf %355, %360 : vector<4x256xf32>
    %362 = vector.extract_strided_slice %2 {offsets = [0, 11], sizes = [4, 1], strides = [1, 1]} : vector<4x32xf32> to vector<4x1xf32>
    %363 = vector.extract_strided_slice %294 {offsets = [3, 0], sizes = [1, 256], strides = [1, 1]} : vector<8x256xf32> to vector<1x256xf32>
    %364 = vector.broadcast %362 : vector<4x1xf32> to vector<4x256xf32>
    %365 = vector.broadcast %363 : vector<1x256xf32> to vector<4x256xf32>
    %366 = arith.mulf %364, %365 : vector<4x256xf32>
    %367 = arith.addf %361, %366 : vector<4x256xf32>
    %368 = vector.extract_strided_slice %2 {offsets = [0, 12], sizes = [4, 1], strides = [1, 1]} : vector<4x32xf32> to vector<4x1xf32>
    %369 = vector.extract_strided_slice %294 {offsets = [4, 0], sizes = [1, 256], strides = [1, 1]} : vector<8x256xf32> to vector<1x256xf32>
    %370 = vector.broadcast %368 : vector<4x1xf32> to vector<4x256xf32>
    %371 = vector.broadcast %369 : vector<1x256xf32> to vector<4x256xf32>
    %372 = arith.mulf %370, %371 : vector<4x256xf32>
    %373 = arith.addf %367, %372 : vector<4x256xf32>
    %374 = vector.extract_strided_slice %2 {offsets = [0, 13], sizes = [4, 1], strides = [1, 1]} : vector<4x32xf32> to vector<4x1xf32>
    %375 = vector.extract_strided_slice %294 {offsets = [5, 0], sizes = [1, 256], strides = [1, 1]} : vector<8x256xf32> to vector<1x256xf32>
    %376 = vector.broadcast %374 : vector<4x1xf32> to vector<4x256xf32>
    %377 = vector.broadcast %375 : vector<1x256xf32> to vector<4x256xf32>
    %378 = arith.mulf %376, %377 : vector<4x256xf32>
    %379 = arith.addf %373, %378 : vector<4x256xf32>
    %380 = vector.extract_strided_slice %2 {offsets = [0, 14], sizes = [4, 1], strides = [1, 1]} : vector<4x32xf32> to vector<4x1xf32>
    %381 = vector.extract_strided_slice %294 {offsets = [6, 0], sizes = [1, 256], strides = [1, 1]} : vector<8x256xf32> to vector<1x256xf32>
    %382 = vector.broadcast %380 : vector<4x1xf32> to vector<4x256xf32>
    %383 = vector.broadcast %381 : vector<1x256xf32> to vector<4x256xf32>
    %384 = arith.mulf %382, %383 : vector<4x256xf32>
    %385 = arith.addf %379, %384 : vector<4x256xf32>
    %386 = vector.extract_strided_slice %2 {offsets = [0, 15], sizes = [4, 1], strides = [1, 1]} : vector<4x32xf32> to vector<4x1xf32>
    %387 = vector.extract_strided_slice %294 {offsets = [7, 0], sizes = [1, 256], strides = [1, 1]} : vector<8x256xf32> to vector<1x256xf32>
    %388 = vector.broadcast %386 : vector<4x1xf32> to vector<4x256xf32>
    %389 = vector.broadcast %387 : vector<1x256xf32> to vector<4x256xf32>
    %390 = arith.mulf %388, %389 : vector<4x256xf32>
    %391 = arith.addf %385, %390 : vector<4x256xf32>
    %cst_108 = arith.constant dense<0.000000e+00> : vector<16xf32>
    %392 = vector.multi_reduction <add>, %48, %cst_108 [1] : vector<16x256xf32> to vector<16xf32>
    %393 = vector.shape_cast %392 : vector<16xf32> to vector<16x1xf32>
    %cst_109 = arith.constant 2.560000e+02 : f32
    %394 = vector.broadcast %cst_109 : f32 to vector<16x1xf32>
    %395 = arith.divf %393, %394 : vector<16x1xf32>
    %cst_110 = arith.constant 0.000000e+00 : f32
    %396 = vector.broadcast %cst_110 : f32 to vector<4x1xf32>
    %397 = vector.extract_strided_slice %2 {offsets = [0, 16], sizes = [4, 1], strides = [1, 1]} : vector<4x32xf32> to vector<4x1xf32>
    %398 = vector.extract_strided_slice %395 {offsets = [0, 0], sizes = [1, 1], strides = [1, 1]} : vector<16x1xf32> to vector<1x1xf32>
    %399 = vector.broadcast %398 : vector<1x1xf32> to vector<4x1xf32>
    %400 = arith.mulf %397, %399 : vector<4x1xf32>
    %401 = arith.addf %396, %400 : vector<4x1xf32>
    %402 = vector.extract_strided_slice %2 {offsets = [0, 17], sizes = [4, 1], strides = [1, 1]} : vector<4x32xf32> to vector<4x1xf32>
    %403 = vector.extract_strided_slice %395 {offsets = [1, 0], sizes = [1, 1], strides = [1, 1]} : vector<16x1xf32> to vector<1x1xf32>
    %404 = vector.broadcast %403 : vector<1x1xf32> to vector<4x1xf32>
    %405 = arith.mulf %402, %404 : vector<4x1xf32>
    %406 = arith.addf %401, %405 : vector<4x1xf32>
    %407 = vector.extract_strided_slice %2 {offsets = [0, 18], sizes = [4, 1], strides = [1, 1]} : vector<4x32xf32> to vector<4x1xf32>
    %408 = vector.extract_strided_slice %395 {offsets = [2, 0], sizes = [1, 1], strides = [1, 1]} : vector<16x1xf32> to vector<1x1xf32>
    %409 = vector.broadcast %408 : vector<1x1xf32> to vector<4x1xf32>
    %410 = arith.mulf %407, %409 : vector<4x1xf32>
    %411 = arith.addf %406, %410 : vector<4x1xf32>
    %412 = vector.extract_strided_slice %2 {offsets = [0, 19], sizes = [4, 1], strides = [1, 1]} : vector<4x32xf32> to vector<4x1xf32>
    %413 = vector.extract_strided_slice %395 {offsets = [3, 0], sizes = [1, 1], strides = [1, 1]} : vector<16x1xf32> to vector<1x1xf32>
    %414 = vector.broadcast %413 : vector<1x1xf32> to vector<4x1xf32>
    %415 = arith.mulf %412, %414 : vector<4x1xf32>
    %416 = arith.addf %411, %415 : vector<4x1xf32>
    %417 = vector.extract_strided_slice %2 {offsets = [0, 20], sizes = [4, 1], strides = [1, 1]} : vector<4x32xf32> to vector<4x1xf32>
    %418 = vector.extract_strided_slice %395 {offsets = [4, 0], sizes = [1, 1], strides = [1, 1]} : vector<16x1xf32> to vector<1x1xf32>
    %419 = vector.broadcast %418 : vector<1x1xf32> to vector<4x1xf32>
    %420 = arith.mulf %417, %419 : vector<4x1xf32>
    %421 = arith.addf %416, %420 : vector<4x1xf32>
    %422 = vector.extract_strided_slice %2 {offsets = [0, 21], sizes = [4, 1], strides = [1, 1]} : vector<4x32xf32> to vector<4x1xf32>
    %423 = vector.extract_strided_slice %395 {offsets = [5, 0], sizes = [1, 1], strides = [1, 1]} : vector<16x1xf32> to vector<1x1xf32>
    %424 = vector.broadcast %423 : vector<1x1xf32> to vector<4x1xf32>
    %425 = arith.mulf %422, %424 : vector<4x1xf32>
    %426 = arith.addf %421, %425 : vector<4x1xf32>
    %427 = vector.extract_strided_slice %2 {offsets = [0, 22], sizes = [4, 1], strides = [1, 1]} : vector<4x32xf32> to vector<4x1xf32>
    %428 = vector.extract_strided_slice %395 {offsets = [6, 0], sizes = [1, 1], strides = [1, 1]} : vector<16x1xf32> to vector<1x1xf32>
    %429 = vector.broadcast %428 : vector<1x1xf32> to vector<4x1xf32>
    %430 = arith.mulf %427, %429 : vector<4x1xf32>
    %431 = arith.addf %426, %430 : vector<4x1xf32>
    %432 = vector.extract_strided_slice %2 {offsets = [0, 23], sizes = [4, 1], strides = [1, 1]} : vector<4x32xf32> to vector<4x1xf32>
    %433 = vector.extract_strided_slice %395 {offsets = [7, 0], sizes = [1, 1], strides = [1, 1]} : vector<16x1xf32> to vector<1x1xf32>
    %434 = vector.broadcast %433 : vector<1x1xf32> to vector<4x1xf32>
    %435 = arith.mulf %432, %434 : vector<4x1xf32>
    %436 = arith.addf %431, %435 : vector<4x1xf32>
    %437 = vector.extract_strided_slice %2 {offsets = [0, 24], sizes = [4, 1], strides = [1, 1]} : vector<4x32xf32> to vector<4x1xf32>
    %438 = vector.extract_strided_slice %395 {offsets = [8, 0], sizes = [1, 1], strides = [1, 1]} : vector<16x1xf32> to vector<1x1xf32>
    %439 = vector.broadcast %438 : vector<1x1xf32> to vector<4x1xf32>
    %440 = arith.mulf %437, %439 : vector<4x1xf32>
    %441 = arith.addf %436, %440 : vector<4x1xf32>
    %442 = vector.extract_strided_slice %2 {offsets = [0, 25], sizes = [4, 1], strides = [1, 1]} : vector<4x32xf32> to vector<4x1xf32>
    %443 = vector.extract_strided_slice %395 {offsets = [9, 0], sizes = [1, 1], strides = [1, 1]} : vector<16x1xf32> to vector<1x1xf32>
    %444 = vector.broadcast %443 : vector<1x1xf32> to vector<4x1xf32>
    %445 = arith.mulf %442, %444 : vector<4x1xf32>
    %446 = arith.addf %441, %445 : vector<4x1xf32>
    %447 = vector.extract_strided_slice %2 {offsets = [0, 26], sizes = [4, 1], strides = [1, 1]} : vector<4x32xf32> to vector<4x1xf32>
    %448 = vector.extract_strided_slice %395 {offsets = [10, 0], sizes = [1, 1], strides = [1, 1]} : vector<16x1xf32> to vector<1x1xf32>
    %449 = vector.broadcast %448 : vector<1x1xf32> to vector<4x1xf32>
    %450 = arith.mulf %447, %449 : vector<4x1xf32>
    %451 = arith.addf %446, %450 : vector<4x1xf32>
    %452 = vector.extract_strided_slice %2 {offsets = [0, 27], sizes = [4, 1], strides = [1, 1]} : vector<4x32xf32> to vector<4x1xf32>
    %453 = vector.extract_strided_slice %395 {offsets = [11, 0], sizes = [1, 1], strides = [1, 1]} : vector<16x1xf32> to vector<1x1xf32>
    %454 = vector.broadcast %453 : vector<1x1xf32> to vector<4x1xf32>
    %455 = arith.mulf %452, %454 : vector<4x1xf32>
    %456 = arith.addf %451, %455 : vector<4x1xf32>
    %457 = vector.extract_strided_slice %2 {offsets = [0, 28], sizes = [4, 1], strides = [1, 1]} : vector<4x32xf32> to vector<4x1xf32>
    %458 = vector.extract_strided_slice %395 {offsets = [12, 0], sizes = [1, 1], strides = [1, 1]} : vector<16x1xf32> to vector<1x1xf32>
    %459 = vector.broadcast %458 : vector<1x1xf32> to vector<4x1xf32>
    %460 = arith.mulf %457, %459 : vector<4x1xf32>
    %461 = arith.addf %456, %460 : vector<4x1xf32>
    %462 = vector.extract_strided_slice %2 {offsets = [0, 29], sizes = [4, 1], strides = [1, 1]} : vector<4x32xf32> to vector<4x1xf32>
    %463 = vector.extract_strided_slice %395 {offsets = [13, 0], sizes = [1, 1], strides = [1, 1]} : vector<16x1xf32> to vector<1x1xf32>
    %464 = vector.broadcast %463 : vector<1x1xf32> to vector<4x1xf32>
    %465 = arith.mulf %462, %464 : vector<4x1xf32>
    %466 = arith.addf %461, %465 : vector<4x1xf32>
    %467 = vector.extract_strided_slice %2 {offsets = [0, 30], sizes = [4, 1], strides = [1, 1]} : vector<4x32xf32> to vector<4x1xf32>
    %468 = vector.extract_strided_slice %395 {offsets = [14, 0], sizes = [1, 1], strides = [1, 1]} : vector<16x1xf32> to vector<1x1xf32>
    %469 = vector.broadcast %468 : vector<1x1xf32> to vector<4x1xf32>
    %470 = arith.mulf %467, %469 : vector<4x1xf32>
    %471 = arith.addf %466, %470 : vector<4x1xf32>
    %472 = vector.extract_strided_slice %2 {offsets = [0, 31], sizes = [4, 1], strides = [1, 1]} : vector<4x32xf32> to vector<4x1xf32>
    %473 = vector.extract_strided_slice %395 {offsets = [15, 0], sizes = [1, 1], strides = [1, 1]} : vector<16x1xf32> to vector<1x1xf32>
    %474 = vector.broadcast %473 : vector<1x1xf32> to vector<4x1xf32>
    %475 = arith.mulf %472, %474 : vector<4x1xf32>
    %476 = arith.addf %471, %475 : vector<4x1xf32>
    %477 = vector.broadcast %476 : vector<4x1xf32> to vector<4x256xf32>
    %478 = arith.addf %391, %477 : vector<4x256xf32>
    %479 = vector.broadcast %3 : vector<4x1xf32> to vector<4x256xf32>
    %480 = arith.addf %478, %479 : vector<4x256xf32>
    %cst_111 = arith.constant 0.000000e+00 : f32
    %481 = vector.broadcast %cst_111 : f32 to vector<16x256xf32>
    %c0_112 = arith.constant 0 : index
    %c4_113 = arith.constant 4 : index
    %c0_114 = arith.constant 0 : index
    %482 = vector.load %arg1[%c0_112, %c4_113, %c0_114] : memref<1x8x256xf32, #tpu.memory_space<vmem>>, vector<1x1x256xf32>
    %483 = vector.shape_cast %482 : vector<1x1x256xf32> to vector<1x256xf32>
    %484 = vector.extract_strided_slice %0 {offsets = [0, 0], sizes = [16, 1], strides = [1, 1]} : vector<16x4xf32> to vector<16x1xf32>
    %485 = vector.broadcast %484 : vector<16x1xf32> to vector<16x256xf32>
    %486 = vector.broadcast %483 : vector<1x256xf32> to vector<16x256xf32>
    %487 = arith.mulf %485, %486 : vector<16x256xf32>
    %488 = arith.addf %481, %487 : vector<16x256xf32>
    %c0_115 = arith.constant 0 : index
    %c5 = arith.constant 5 : index
    %c0_116 = arith.constant 0 : index
    %489 = vector.load %arg1[%c0_115, %c5, %c0_116] : memref<1x8x256xf32, #tpu.memory_space<vmem>>, vector<1x1x256xf32>
    %490 = vector.shape_cast %489 : vector<1x1x256xf32> to vector<1x256xf32>
    %491 = vector.extract_strided_slice %0 {offsets = [0, 1], sizes = [16, 1], strides = [1, 1]} : vector<16x4xf32> to vector<16x1xf32>
    %492 = vector.broadcast %491 : vector<16x1xf32> to vector<16x256xf32>
    %493 = vector.broadcast %490 : vector<1x256xf32> to vector<16x256xf32>
    %494 = arith.mulf %492, %493 : vector<16x256xf32>
    %495 = arith.addf %488, %494 : vector<16x256xf32>
    %c0_117 = arith.constant 0 : index
    %c6 = arith.constant 6 : index
    %c0_118 = arith.constant 0 : index
    %496 = vector.load %arg1[%c0_117, %c6, %c0_118] : memref<1x8x256xf32, #tpu.memory_space<vmem>>, vector<1x1x256xf32>
    %497 = vector.shape_cast %496 : vector<1x1x256xf32> to vector<1x256xf32>
    %498 = vector.extract_strided_slice %0 {offsets = [0, 2], sizes = [16, 1], strides = [1, 1]} : vector<16x4xf32> to vector<16x1xf32>
    %499 = vector.broadcast %498 : vector<16x1xf32> to vector<16x256xf32>
    %500 = vector.broadcast %497 : vector<1x256xf32> to vector<16x256xf32>
    %501 = arith.mulf %499, %500 : vector<16x256xf32>
    %502 = arith.addf %495, %501 : vector<16x256xf32>
    %c0_119 = arith.constant 0 : index
    %c7 = arith.constant 7 : index
    %c0_120 = arith.constant 0 : index
    %503 = vector.load %arg1[%c0_119, %c7, %c0_120] : memref<1x8x256xf32, #tpu.memory_space<vmem>>, vector<1x1x256xf32>
    %504 = vector.shape_cast %503 : vector<1x1x256xf32> to vector<1x256xf32>
    %505 = vector.extract_strided_slice %0 {offsets = [0, 3], sizes = [16, 1], strides = [1, 1]} : vector<16x4xf32> to vector<16x1xf32>
    %506 = vector.broadcast %505 : vector<16x1xf32> to vector<16x256xf32>
    %507 = vector.broadcast %504 : vector<1x256xf32> to vector<16x256xf32>
    %508 = arith.mulf %506, %507 : vector<16x256xf32>
    %509 = arith.addf %502, %508 : vector<16x256xf32>
    %510 = vector.broadcast %1 : vector<16x1xf32> to vector<16x256xf32>
    %511 = arith.addf %509, %510 : vector<16x256xf32>
    %512 = vector.extract_strided_slice %511 {offsets = [0, 0], sizes = [8, 256], strides = [1, 1]} : vector<16x256xf32> to vector<8x256xf32>
    %c0_121 = arith.constant 0 : index
    %c17_122 = arith.constant 17 : index
    %513 = vector.load %arg13[%c0_121, %c17_122] : memref<8x290xf32, #tpu.memory_space<vmem>>, vector<8x256xf32>
    tpu.vector_store %arg13[%c0_121, %c17_122], %512 {strides = array<i32>} : memref<8x290xf32, #tpu.memory_space<vmem>>, vector<8x256xf32>,
    %cst_123 = arith.constant 0.000000e+00 : f32
    %514 = vector.broadcast %cst_123 : f32 to vector<8x256xf32>
    %cst_124 = arith.constant 0.000000e+00 : f32
    %515 = vector.broadcast %cst_124 : f32 to vector<8x256xf32>
    %c0_125 = arith.constant 0 : index
    %c0_126 = arith.constant 0 : index
    %516 = vector.load %arg13[%c0_125, %c0_126] : memref<8x290xf32, #tpu.memory_space<vmem>>, vector<8x256xf32>
    %517 = vector.extract_strided_slice %4 {offsets = [0, 0], sizes = [8, 1], strides = [1, 1]} : vector<8x9xf32> to vector<8x1xf32>
    %518 = vector.broadcast %517 : vector<8x1xf32> to vector<8x256xf32>
    %519 = arith.mulf %516, %518 : vector<8x256xf32>
    %520 = arith.addf %515, %519 : vector<8x256xf32>
    %c0_127 = arith.constant 0 : index
    %c16_128 = arith.constant 16 : index
    %521 = vector.load %arg13[%c0_127, %c16_128] : memref<8x290xf32, #tpu.memory_space<vmem>>, vector<8x256xf32>
    %522 = vector.extract_strided_slice %4 {offsets = [0, 3], sizes = [8, 1], strides = [1, 1]} : vector<8x9xf32> to vector<8x1xf32>
    %523 = vector.broadcast %522 : vector<8x1xf32> to vector<8x256xf32>
    %524 = arith.mulf %521, %523 : vector<8x256xf32>
    %525 = arith.addf %520, %524 : vector<8x256xf32>
    %c0_129 = arith.constant 0 : index
    %c32_130 = arith.constant 32 : index
    %526 = vector.load %arg13[%c0_129, %c32_130] : memref<8x290xf32, #tpu.memory_space<vmem>>, vector<8x256xf32>
    %527 = vector.extract_strided_slice %4 {offsets = [0, 6], sizes = [8, 1], strides = [1, 1]} : vector<8x9xf32> to vector<8x1xf32>
    %528 = vector.broadcast %527 : vector<8x1xf32> to vector<8x256xf32>
    %529 = arith.mulf %526, %528 : vector<8x256xf32>
    %530 = arith.addf %525, %529 : vector<8x256xf32>
    %531 = vector.extract_strided_slice %6 {offsets = [0, 0], sizes = [1, 256], strides = [1, 1]} : vector<3x256xf32> to vector<1x256xf32>
    %532 = vector.broadcast %531 : vector<1x256xf32> to vector<8x256xf32>
    %533 = arith.mulf %530, %532 : vector<8x256xf32>
    %534 = arith.addf %514, %533 : vector<8x256xf32>
    %cst_131 = arith.constant 0.000000e+00 : f32
    %535 = vector.broadcast %cst_131 : f32 to vector<8x256xf32>
    %c0_132 = arith.constant 0 : index
    %c1_133 = arith.constant 1 : index
    %536 = vector.load %arg13[%c0_132, %c1_133] : memref<8x290xf32, #tpu.memory_space<vmem>>, vector<8x256xf32>
    %537 = vector.extract_strided_slice %4 {offsets = [0, 1], sizes = [8, 1], strides = [1, 1]} : vector<8x9xf32> to vector<8x1xf32>
    %538 = vector.broadcast %537 : vector<8x1xf32> to vector<8x256xf32>
    %539 = arith.mulf %536, %538 : vector<8x256xf32>
    %540 = arith.addf %535, %539 : vector<8x256xf32>
    %c0_134 = arith.constant 0 : index
    %c17_135 = arith.constant 17 : index
    %541 = vector.load %arg13[%c0_134, %c17_135] : memref<8x290xf32, #tpu.memory_space<vmem>>, vector<8x256xf32>
    %542 = vector.extract_strided_slice %4 {offsets = [0, 4], sizes = [8, 1], strides = [1, 1]} : vector<8x9xf32> to vector<8x1xf32>
    %543 = vector.broadcast %542 : vector<8x1xf32> to vector<8x256xf32>
    %544 = arith.mulf %541, %543 : vector<8x256xf32>
    %545 = arith.addf %540, %544 : vector<8x256xf32>
    %c0_136 = arith.constant 0 : index
    %c33_137 = arith.constant 33 : index
    %546 = vector.load %arg13[%c0_136, %c33_137] : memref<8x290xf32, #tpu.memory_space<vmem>>, vector<8x256xf32>
    %547 = vector.extract_strided_slice %4 {offsets = [0, 7], sizes = [8, 1], strides = [1, 1]} : vector<8x9xf32> to vector<8x1xf32>
    %548 = vector.broadcast %547 : vector<8x1xf32> to vector<8x256xf32>
    %549 = arith.mulf %546, %548 : vector<8x256xf32>
    %550 = arith.addf %545, %549 : vector<8x256xf32>
    %551 = vector.extract_strided_slice %6 {offsets = [1, 0], sizes = [1, 256], strides = [1, 1]} : vector<3x256xf32> to vector<1x256xf32>
    %552 = vector.broadcast %551 : vector<1x256xf32> to vector<8x256xf32>
    %553 = arith.mulf %550, %552 : vector<8x256xf32>
    %554 = arith.addf %534, %553 : vector<8x256xf32>
    %cst_138 = arith.constant 0.000000e+00 : f32
    %555 = vector.broadcast %cst_138 : f32 to vector<8x256xf32>
    %c0_139 = arith.constant 0 : index
    %c2_140 = arith.constant 2 : index
    %556 = vector.load %arg13[%c0_139, %c2_140] : memref<8x290xf32, #tpu.memory_space<vmem>>, vector<8x256xf32>
    %557 = vector.extract_strided_slice %4 {offsets = [0, 2], sizes = [8, 1], strides = [1, 1]} : vector<8x9xf32> to vector<8x1xf32>
    %558 = vector.broadcast %557 : vector<8x1xf32> to vector<8x256xf32>
    %559 = arith.mulf %556, %558 : vector<8x256xf32>
    %560 = arith.addf %555, %559 : vector<8x256xf32>
    %c0_141 = arith.constant 0 : index
    %c18_142 = arith.constant 18 : index
    %561 = vector.load %arg13[%c0_141, %c18_142] : memref<8x290xf32, #tpu.memory_space<vmem>>, vector<8x256xf32>
    %562 = vector.extract_strided_slice %4 {offsets = [0, 5], sizes = [8, 1], strides = [1, 1]} : vector<8x9xf32> to vector<8x1xf32>
    %563 = vector.broadcast %562 : vector<8x1xf32> to vector<8x256xf32>
    %564 = arith.mulf %561, %563 : vector<8x256xf32>
    %565 = arith.addf %560, %564 : vector<8x256xf32>
    %c0_143 = arith.constant 0 : index
    %c34_144 = arith.constant 34 : index
    %566 = vector.load %arg13[%c0_143, %c34_144] : memref<8x290xf32, #tpu.memory_space<vmem>>, vector<8x256xf32>
    %567 = vector.extract_strided_slice %4 {offsets = [0, 8], sizes = [8, 1], strides = [1, 1]} : vector<8x9xf32> to vector<8x1xf32>
    %568 = vector.broadcast %567 : vector<8x1xf32> to vector<8x256xf32>
    %569 = arith.mulf %566, %568 : vector<8x256xf32>
    %570 = arith.addf %565, %569 : vector<8x256xf32>
    %571 = vector.extract_strided_slice %6 {offsets = [2, 0], sizes = [1, 256], strides = [1, 1]} : vector<3x256xf32> to vector<1x256xf32>
    %572 = vector.broadcast %571 : vector<1x256xf32> to vector<8x256xf32>
    %573 = arith.mulf %570, %572 : vector<8x256xf32>
    %574 = arith.addf %554, %573 : vector<8x256xf32>
    %575 = vector.broadcast %5 : vector<8x1xf32> to vector<8x256xf32>
    %576 = arith.addf %574, %575 : vector<8x256xf32>
    %cst_145 = arith.constant 5.000000e-01 : f32
    %577 = vector.broadcast %cst_145 : f32 to vector<8x256xf32>
    %578 = arith.mulf %577, %576 : vector<8x256xf32>
    %cst_146 = arith.constant 4.471500e-02 : f32
    %579 = vector.broadcast %cst_146 : f32 to vector<8x256xf32>
    %580 = arith.mulf %579, %576 : vector<8x256xf32>
    %581 = arith.mulf %580, %576 : vector<8x256xf32>
    %582 = arith.mulf %581, %576 : vector<8x256xf32>
    %583 = arith.addf %576, %582 : vector<8x256xf32>
    %cst_147 = arith.constant 0.797884583 : f32
    %584 = vector.broadcast %cst_147 : f32 to vector<8x256xf32>
    %585 = arith.mulf %584, %583 : vector<8x256xf32>
    %586 = math.tanh %585 : vector<8x256xf32>
    %cst_148 = arith.constant 1.000000e+00 : f32
    %587 = vector.broadcast %cst_148 : f32 to vector<8x256xf32>
    %588 = arith.addf %587, %586 : vector<8x256xf32>
    %589 = arith.mulf %578, %588 : vector<8x256xf32>
    %590 = vector.extract_strided_slice %511 {offsets = [8, 0], sizes = [8, 256], strides = [1, 1]} : vector<16x256xf32> to vector<8x256xf32>
    %c0_149 = arith.constant 0 : index
    %c34_150 = arith.constant 34 : index
    %591 = vector.load %arg14[%c0_149, %c34_150] : memref<8x324xf32, #tpu.memory_space<vmem>>, vector<8x256xf32>
    tpu.vector_store %arg14[%c0_149, %c34_150], %590 {strides = array<i32>} : memref<8x324xf32, #tpu.memory_space<vmem>>, vector<8x256xf32>,
    %cst_151 = arith.constant 0.000000e+00 : f32
    %592 = vector.broadcast %cst_151 : f32 to vector<8x256xf32>
    %cst_152 = arith.constant 0.000000e+00 : f32
    %593 = vector.broadcast %cst_152 : f32 to vector<8x256xf32>
    %c0_153 = arith.constant 0 : index
    %c0_154 = arith.constant 0 : index
    %594 = vector.load %arg14[%c0_153, %c0_154] : memref<8x324xf32, #tpu.memory_space<vmem>>, vector<8x256xf32>
    %595 = vector.extract_strided_slice %7 {offsets = [0, 0], sizes = [8, 1], strides = [1, 1]} : vector<8x25xf32> to vector<8x1xf32>
    %596 = vector.broadcast %595 : vector<8x1xf32> to vector<8x256xf32>
    %597 = arith.mulf %594, %596 : vector<8x256xf32>
    %598 = arith.addf %593, %597 : vector<8x256xf32>
    %c0_155 = arith.constant 0 : index
    %c16_156 = arith.constant 16 : index
    %599 = vector.load %arg14[%c0_155, %c16_156] : memref<8x324xf32, #tpu.memory_space<vmem>>, vector<8x256xf32>
    %600 = vector.extract_strided_slice %7 {offsets = [0, 5], sizes = [8, 1], strides = [1, 1]} : vector<8x25xf32> to vector<8x1xf32>
    %601 = vector.broadcast %600 : vector<8x1xf32> to vector<8x256xf32>
    %602 = arith.mulf %599, %601 : vector<8x256xf32>
    %603 = arith.addf %598, %602 : vector<8x256xf32>
    %c0_157 = arith.constant 0 : index
    %c32_158 = arith.constant 32 : index
    %604 = vector.load %arg14[%c0_157, %c32_158] : memref<8x324xf32, #tpu.memory_space<vmem>>, vector<8x256xf32>
    %605 = vector.extract_strided_slice %7 {offsets = [0, 10], sizes = [8, 1], strides = [1, 1]} : vector<8x25xf32> to vector<8x1xf32>
    %606 = vector.broadcast %605 : vector<8x1xf32> to vector<8x256xf32>
    %607 = arith.mulf %604, %606 : vector<8x256xf32>
    %608 = arith.addf %603, %607 : vector<8x256xf32>
    %c0_159 = arith.constant 0 : index
    %c48_160 = arith.constant 48 : index
    %609 = vector.load %arg14[%c0_159, %c48_160] : memref<8x324xf32, #tpu.memory_space<vmem>>, vector<8x256xf32>
    %610 = vector.extract_strided_slice %7 {offsets = [0, 15], sizes = [8, 1], strides = [1, 1]} : vector<8x25xf32> to vector<8x1xf32>
    %611 = vector.broadcast %610 : vector<8x1xf32> to vector<8x256xf32>
    %612 = arith.mulf %609, %611 : vector<8x256xf32>
    %613 = arith.addf %608, %612 : vector<8x256xf32>
    %c0_161 = arith.constant 0 : index
    %c64_162 = arith.constant 64 : index
    %614 = vector.load %arg14[%c0_161, %c64_162] : memref<8x324xf32, #tpu.memory_space<vmem>>, vector<8x256xf32>
    %615 = vector.extract_strided_slice %7 {offsets = [0, 20], sizes = [8, 1], strides = [1, 1]} : vector<8x25xf32> to vector<8x1xf32>
    %616 = vector.broadcast %615 : vector<8x1xf32> to vector<8x256xf32>
    %617 = arith.mulf %614, %616 : vector<8x256xf32>
    %618 = arith.addf %613, %617 : vector<8x256xf32>
    %619 = vector.extract_strided_slice %9 {offsets = [0, 0], sizes = [1, 256], strides = [1, 1]} : vector<5x256xf32> to vector<1x256xf32>
    %620 = vector.broadcast %619 : vector<1x256xf32> to vector<8x256xf32>
    %621 = arith.mulf %618, %620 : vector<8x256xf32>
    %622 = arith.addf %592, %621 : vector<8x256xf32>
    %cst_163 = arith.constant 0.000000e+00 : f32
    %623 = vector.broadcast %cst_163 : f32 to vector<8x256xf32>
    %c0_164 = arith.constant 0 : index
    %c1_165 = arith.constant 1 : index
    %624 = vector.load %arg14[%c0_164, %c1_165] : memref<8x324xf32, #tpu.memory_space<vmem>>, vector<8x256xf32>
    %625 = vector.extract_strided_slice %7 {offsets = [0, 1], sizes = [8, 1], strides = [1, 1]} : vector<8x25xf32> to vector<8x1xf32>
    %626 = vector.broadcast %625 : vector<8x1xf32> to vector<8x256xf32>
    %627 = arith.mulf %624, %626 : vector<8x256xf32>
    %628 = arith.addf %623, %627 : vector<8x256xf32>
    %c0_166 = arith.constant 0 : index
    %c17_167 = arith.constant 17 : index
    %629 = vector.load %arg14[%c0_166, %c17_167] : memref<8x324xf32, #tpu.memory_space<vmem>>, vector<8x256xf32>
    %630 = vector.extract_strided_slice %7 {offsets = [0, 6], sizes = [8, 1], strides = [1, 1]} : vector<8x25xf32> to vector<8x1xf32>
    %631 = vector.broadcast %630 : vector<8x1xf32> to vector<8x256xf32>
    %632 = arith.mulf %629, %631 : vector<8x256xf32>
    %633 = arith.addf %628, %632 : vector<8x256xf32>
    %c0_168 = arith.constant 0 : index
    %c33_169 = arith.constant 33 : index
    %634 = vector.load %arg14[%c0_168, %c33_169] : memref<8x324xf32, #tpu.memory_space<vmem>>, vector<8x256xf32>
    %635 = vector.extract_strided_slice %7 {offsets = [0, 11], sizes = [8, 1], strides = [1, 1]} : vector<8x25xf32> to vector<8x1xf32>
    %636 = vector.broadcast %635 : vector<8x1xf32> to vector<8x256xf32>
    %637 = arith.mulf %634, %636 : vector<8x256xf32>
    %638 = arith.addf %633, %637 : vector<8x256xf32>
    %c0_170 = arith.constant 0 : index
    %c49_171 = arith.constant 49 : index
    %639 = vector.load %arg14[%c0_170, %c49_171] : memref<8x324xf32, #tpu.memory_space<vmem>>, vector<8x256xf32>
    %640 = vector.extract_strided_slice %7 {offsets = [0, 16], sizes = [8, 1], strides = [1, 1]} : vector<8x25xf32> to vector<8x1xf32>
    %641 = vector.broadcast %640 : vector<8x1xf32> to vector<8x256xf32>
    %642 = arith.mulf %639, %641 : vector<8x256xf32>
    %643 = arith.addf %638, %642 : vector<8x256xf32>
    %c0_172 = arith.constant 0 : index
    %c65_173 = arith.constant 65 : index
    %644 = vector.load %arg14[%c0_172, %c65_173] : memref<8x324xf32, #tpu.memory_space<vmem>>, vector<8x256xf32>
    %645 = vector.extract_strided_slice %7 {offsets = [0, 21], sizes = [8, 1], strides = [1, 1]} : vector<8x25xf32> to vector<8x1xf32>
    %646 = vector.broadcast %645 : vector<8x1xf32> to vector<8x256xf32>
    %647 = arith.mulf %644, %646 : vector<8x256xf32>
    %648 = arith.addf %643, %647 : vector<8x256xf32>
    %649 = vector.extract_strided_slice %9 {offsets = [1, 0], sizes = [1, 256], strides = [1, 1]} : vector<5x256xf32> to vector<1x256xf32>
    %650 = vector.broadcast %649 : vector<1x256xf32> to vector<8x256xf32>
    %651 = arith.mulf %648, %650 : vector<8x256xf32>
    %652 = arith.addf %622, %651 : vector<8x256xf32>
    %cst_174 = arith.constant 0.000000e+00 : f32
    %653 = vector.broadcast %cst_174 : f32 to vector<8x256xf32>
    %c0_175 = arith.constant 0 : index
    %c2_176 = arith.constant 2 : index
    %654 = vector.load %arg14[%c0_175, %c2_176] : memref<8x324xf32, #tpu.memory_space<vmem>>, vector<8x256xf32>
    %655 = vector.extract_strided_slice %7 {offsets = [0, 2], sizes = [8, 1], strides = [1, 1]} : vector<8x25xf32> to vector<8x1xf32>
    %656 = vector.broadcast %655 : vector<8x1xf32> to vector<8x256xf32>
    %657 = arith.mulf %654, %656 : vector<8x256xf32>
    %658 = arith.addf %653, %657 : vector<8x256xf32>
    %c0_177 = arith.constant 0 : index
    %c18_178 = arith.constant 18 : index
    %659 = vector.load %arg14[%c0_177, %c18_178] : memref<8x324xf32, #tpu.memory_space<vmem>>, vector<8x256xf32>
    %660 = vector.extract_strided_slice %7 {offsets = [0, 7], sizes = [8, 1], strides = [1, 1]} : vector<8x25xf32> to vector<8x1xf32>
    %661 = vector.broadcast %660 : vector<8x1xf32> to vector<8x256xf32>
    %662 = arith.mulf %659, %661 : vector<8x256xf32>
    %663 = arith.addf %658, %662 : vector<8x256xf32>
    %c0_179 = arith.constant 0 : index
    %c34_180 = arith.constant 34 : index
    %664 = vector.load %arg14[%c0_179, %c34_180] : memref<8x324xf32, #tpu.memory_space<vmem>>, vector<8x256xf32>
    %665 = vector.extract_strided_slice %7 {offsets = [0, 12], sizes = [8, 1], strides = [1, 1]} : vector<8x25xf32> to vector<8x1xf32>
    %666 = vector.broadcast %665 : vector<8x1xf32> to vector<8x256xf32>
    %667 = arith.mulf %664, %666 : vector<8x256xf32>
    %668 = arith.addf %663, %667 : vector<8x256xf32>
    %c0_181 = arith.constant 0 : index
    %c50_182 = arith.constant 50 : index
    %669 = vector.load %arg14[%c0_181, %c50_182] : memref<8x324xf32, #tpu.memory_space<vmem>>, vector<8x256xf32>
    %670 = vector.extract_strided_slice %7 {offsets = [0, 17], sizes = [8, 1], strides = [1, 1]} : vector<8x25xf32> to vector<8x1xf32>
    %671 = vector.broadcast %670 : vector<8x1xf32> to vector<8x256xf32>
    %672 = arith.mulf %669, %671 : vector<8x256xf32>
    %673 = arith.addf %668, %672 : vector<8x256xf32>
    %c0_183 = arith.constant 0 : index
    %c66_184 = arith.constant 66 : index
    %674 = vector.load %arg14[%c0_183, %c66_184] : memref<8x324xf32, #tpu.memory_space<vmem>>, vector<8x256xf32>
    %675 = vector.extract_strided_slice %7 {offsets = [0, 22], sizes = [8, 1], strides = [1, 1]} : vector<8x25xf32> to vector<8x1xf32>
    %676 = vector.broadcast %675 : vector<8x1xf32> to vector<8x256xf32>
    %677 = arith.mulf %674, %676 : vector<8x256xf32>
    %678 = arith.addf %673, %677 : vector<8x256xf32>
    %679 = vector.extract_strided_slice %9 {offsets = [2, 0], sizes = [1, 256], strides = [1, 1]} : vector<5x256xf32> to vector<1x256xf32>
    %680 = vector.broadcast %679 : vector<1x256xf32> to vector<8x256xf32>
    %681 = arith.mulf %678, %680 : vector<8x256xf32>
    %682 = arith.addf %652, %681 : vector<8x256xf32>
    %cst_185 = arith.constant 0.000000e+00 : f32
    %683 = vector.broadcast %cst_185 : f32 to vector<8x256xf32>
    %c0_186 = arith.constant 0 : index
    %c3_187 = arith.constant 3 : index
    %684 = vector.load %arg14[%c0_186, %c3_187] : memref<8x324xf32, #tpu.memory_space<vmem>>, vector<8x256xf32>
    %685 = vector.extract_strided_slice %7 {offsets = [0, 3], sizes = [8, 1], strides = [1, 1]} : vector<8x25xf32> to vector<8x1xf32>
    %686 = vector.broadcast %685 : vector<8x1xf32> to vector<8x256xf32>
    %687 = arith.mulf %684, %686 : vector<8x256xf32>
    %688 = arith.addf %683, %687 : vector<8x256xf32>
    %c0_188 = arith.constant 0 : index
    %c19_189 = arith.constant 19 : index
    %689 = vector.load %arg14[%c0_188, %c19_189] : memref<8x324xf32, #tpu.memory_space<vmem>>, vector<8x256xf32>
    %690 = vector.extract_strided_slice %7 {offsets = [0, 8], sizes = [8, 1], strides = [1, 1]} : vector<8x25xf32> to vector<8x1xf32>
    %691 = vector.broadcast %690 : vector<8x1xf32> to vector<8x256xf32>
    %692 = arith.mulf %689, %691 : vector<8x256xf32>
    %693 = arith.addf %688, %692 : vector<8x256xf32>
    %c0_190 = arith.constant 0 : index
    %c35_191 = arith.constant 35 : index
    %694 = vector.load %arg14[%c0_190, %c35_191] : memref<8x324xf32, #tpu.memory_space<vmem>>, vector<8x256xf32>
    %695 = vector.extract_strided_slice %7 {offsets = [0, 13], sizes = [8, 1], strides = [1, 1]} : vector<8x25xf32> to vector<8x1xf32>
    %696 = vector.broadcast %695 : vector<8x1xf32> to vector<8x256xf32>
    %697 = arith.mulf %694, %696 : vector<8x256xf32>
    %698 = arith.addf %693, %697 : vector<8x256xf32>
    %c0_192 = arith.constant 0 : index
    %c51_193 = arith.constant 51 : index
    %699 = vector.load %arg14[%c0_192, %c51_193] : memref<8x324xf32, #tpu.memory_space<vmem>>, vector<8x256xf32>
    %700 = vector.extract_strided_slice %7 {offsets = [0, 18], sizes = [8, 1], strides = [1, 1]} : vector<8x25xf32> to vector<8x1xf32>
    %701 = vector.broadcast %700 : vector<8x1xf32> to vector<8x256xf32>
    %702 = arith.mulf %699, %701 : vector<8x256xf32>
    %703 = arith.addf %698, %702 : vector<8x256xf32>
    %c0_194 = arith.constant 0 : index
    %c67_195 = arith.constant 67 : index
    %704 = vector.load %arg14[%c0_194, %c67_195] : memref<8x324xf32, #tpu.memory_space<vmem>>, vector<8x256xf32>
    %705 = vector.extract_strided_slice %7 {offsets = [0, 23], sizes = [8, 1], strides = [1, 1]} : vector<8x25xf32> to vector<8x1xf32>
    %706 = vector.broadcast %705 : vector<8x1xf32> to vector<8x256xf32>
    %707 = arith.mulf %704, %706 : vector<8x256xf32>
    %708 = arith.addf %703, %707 : vector<8x256xf32>
    %709 = vector.extract_strided_slice %9 {offsets = [3, 0], sizes = [1, 256], strides = [1, 1]} : vector<5x256xf32> to vector<1x256xf32>
    %710 = vector.broadcast %709 : vector<1x256xf32> to vector<8x256xf32>
    %711 = arith.mulf %708, %710 : vector<8x256xf32>
    %712 = arith.addf %682, %711 : vector<8x256xf32>
    %cst_196 = arith.constant 0.000000e+00 : f32
    %713 = vector.broadcast %cst_196 : f32 to vector<8x256xf32>
    %c0_197 = arith.constant 0 : index
    %c4_198 = arith.constant 4 : index
    %714 = vector.load %arg14[%c0_197, %c4_198] : memref<8x324xf32, #tpu.memory_space<vmem>>, vector<8x256xf32>
    %715 = vector.extract_strided_slice %7 {offsets = [0, 4], sizes = [8, 1], strides = [1, 1]} : vector<8x25xf32> to vector<8x1xf32>
    %716 = vector.broadcast %715 : vector<8x1xf32> to vector<8x256xf32>
    %717 = arith.mulf %714, %716 : vector<8x256xf32>
    %718 = arith.addf %713, %717 : vector<8x256xf32>
    %c0_199 = arith.constant 0 : index
    %c20_200 = arith.constant 20 : index
    %719 = vector.load %arg14[%c0_199, %c20_200] : memref<8x324xf32, #tpu.memory_space<vmem>>, vector<8x256xf32>
    %720 = vector.extract_strided_slice %7 {offsets = [0, 9], sizes = [8, 1], strides = [1, 1]} : vector<8x25xf32> to vector<8x1xf32>
    %721 = vector.broadcast %720 : vector<8x1xf32> to vector<8x256xf32>
    %722 = arith.mulf %719, %721 : vector<8x256xf32>
    %723 = arith.addf %718, %722 : vector<8x256xf32>
    %c0_201 = arith.constant 0 : index
    %c36_202 = arith.constant 36 : index
    %724 = vector.load %arg14[%c0_201, %c36_202] : memref<8x324xf32, #tpu.memory_space<vmem>>, vector<8x256xf32>
    %725 = vector.extract_strided_slice %7 {offsets = [0, 14], sizes = [8, 1], strides = [1, 1]} : vector<8x25xf32> to vector<8x1xf32>
    %726 = vector.broadcast %725 : vector<8x1xf32> to vector<8x256xf32>
    %727 = arith.mulf %724, %726 : vector<8x256xf32>
    %728 = arith.addf %723, %727 : vector<8x256xf32>
    %c0_203 = arith.constant 0 : index
    %c52_204 = arith.constant 52 : index
    %729 = vector.load %arg14[%c0_203, %c52_204] : memref<8x324xf32, #tpu.memory_space<vmem>>, vector<8x256xf32>
    %730 = vector.extract_strided_slice %7 {offsets = [0, 19], sizes = [8, 1], strides = [1, 1]} : vector<8x25xf32> to vector<8x1xf32>
    %731 = vector.broadcast %730 : vector<8x1xf32> to vector<8x256xf32>
    %732 = arith.mulf %729, %731 : vector<8x256xf32>
    %733 = arith.addf %728, %732 : vector<8x256xf32>
    %c0_205 = arith.constant 0 : index
    %c68_206 = arith.constant 68 : index
    %734 = vector.load %arg14[%c0_205, %c68_206] : memref<8x324xf32, #tpu.memory_space<vmem>>, vector<8x256xf32>
    %735 = vector.extract_strided_slice %7 {offsets = [0, 24], sizes = [8, 1], strides = [1, 1]} : vector<8x25xf32> to vector<8x1xf32>
    %736 = vector.broadcast %735 : vector<8x1xf32> to vector<8x256xf32>
    %737 = arith.mulf %734, %736 : vector<8x256xf32>
    %738 = arith.addf %733, %737 : vector<8x256xf32>
    %739 = vector.extract_strided_slice %9 {offsets = [4, 0], sizes = [1, 256], strides = [1, 1]} : vector<5x256xf32> to vector<1x256xf32>
    %740 = vector.broadcast %739 : vector<1x256xf32> to vector<8x256xf32>
    %741 = arith.mulf %738, %740 : vector<8x256xf32>
    %742 = arith.addf %712, %741 : vector<8x256xf32>
    %743 = vector.broadcast %8 : vector<8x1xf32> to vector<8x256xf32>
    %744 = arith.addf %742, %743 : vector<8x256xf32>
    %cst_207 = arith.constant 5.000000e-01 : f32
    %745 = vector.broadcast %cst_207 : f32 to vector<8x256xf32>
    %746 = arith.mulf %745, %744 : vector<8x256xf32>
    %cst_208 = arith.constant 4.471500e-02 : f32
    %747 = vector.broadcast %cst_208 : f32 to vector<8x256xf32>
    %748 = arith.mulf %747, %744 : vector<8x256xf32>
    %749 = arith.mulf %748, %744 : vector<8x256xf32>
    %750 = arith.mulf %749, %744 : vector<8x256xf32>
    %751 = arith.addf %744, %750 : vector<8x256xf32>
    %cst_209 = arith.constant 0.797884583 : f32
    %752 = vector.broadcast %cst_209 : f32 to vector<8x256xf32>
    %753 = arith.mulf %752, %751 : vector<8x256xf32>
    %754 = math.tanh %753 : vector<8x256xf32>
    %cst_210 = arith.constant 1.000000e+00 : f32
    %755 = vector.broadcast %cst_210 : f32 to vector<8x256xf32>
    %756 = arith.addf %755, %754 : vector<8x256xf32>
    %757 = arith.mulf %746, %756 : vector<8x256xf32>
    %cst_211 = arith.constant 0.000000e+00 : f32
    %758 = vector.broadcast %cst_211 : f32 to vector<4x256xf32>
    %759 = vector.extract_strided_slice %2 {offsets = [0, 0], sizes = [4, 1], strides = [1, 1]} : vector<4x32xf32> to vector<4x1xf32>
    %760 = vector.extract_strided_slice %589 {offsets = [0, 0], sizes = [1, 256], strides = [1, 1]} : vector<8x256xf32> to vector<1x256xf32>
    %761 = vector.broadcast %759 : vector<4x1xf32> to vector<4x256xf32>
    %762 = vector.broadcast %760 : vector<1x256xf32> to vector<4x256xf32>
    %763 = arith.mulf %761, %762 : vector<4x256xf32>
    %764 = arith.addf %758, %763 : vector<4x256xf32>
    %765 = vector.extract_strided_slice %2 {offsets = [0, 1], sizes = [4, 1], strides = [1, 1]} : vector<4x32xf32> to vector<4x1xf32>
    %766 = vector.extract_strided_slice %589 {offsets = [1, 0], sizes = [1, 256], strides = [1, 1]} : vector<8x256xf32> to vector<1x256xf32>
    %767 = vector.broadcast %765 : vector<4x1xf32> to vector<4x256xf32>
    %768 = vector.broadcast %766 : vector<1x256xf32> to vector<4x256xf32>
    %769 = arith.mulf %767, %768 : vector<4x256xf32>
    %770 = arith.addf %764, %769 : vector<4x256xf32>
    %771 = vector.extract_strided_slice %2 {offsets = [0, 2], sizes = [4, 1], strides = [1, 1]} : vector<4x32xf32> to vector<4x1xf32>
    %772 = vector.extract_strided_slice %589 {offsets = [2, 0], sizes = [1, 256], strides = [1, 1]} : vector<8x256xf32> to vector<1x256xf32>
    %773 = vector.broadcast %771 : vector<4x1xf32> to vector<4x256xf32>
    %774 = vector.broadcast %772 : vector<1x256xf32> to vector<4x256xf32>
    %775 = arith.mulf %773, %774 : vector<4x256xf32>
    %776 = arith.addf %770, %775 : vector<4x256xf32>
    %777 = vector.extract_strided_slice %2 {offsets = [0, 3], sizes = [4, 1], strides = [1, 1]} : vector<4x32xf32> to vector<4x1xf32>
    %778 = vector.extract_strided_slice %589 {offsets = [3, 0], sizes = [1, 256], strides = [1, 1]} : vector<8x256xf32> to vector<1x256xf32>
    %779 = vector.broadcast %777 : vector<4x1xf32> to vector<4x256xf32>
    %780 = vector.broadcast %778 : vector<1x256xf32> to vector<4x256xf32>
    %781 = arith.mulf %779, %780 : vector<4x256xf32>
    %782 = arith.addf %776, %781 : vector<4x256xf32>
    %783 = vector.extract_strided_slice %2 {offsets = [0, 4], sizes = [4, 1], strides = [1, 1]} : vector<4x32xf32> to vector<4x1xf32>
    %784 = vector.extract_strided_slice %589 {offsets = [4, 0], sizes = [1, 256], strides = [1, 1]} : vector<8x256xf32> to vector<1x256xf32>
    %785 = vector.broadcast %783 : vector<4x1xf32> to vector<4x256xf32>
    %786 = vector.broadcast %784 : vector<1x256xf32> to vector<4x256xf32>
    %787 = arith.mulf %785, %786 : vector<4x256xf32>
    %788 = arith.addf %782, %787 : vector<4x256xf32>
    %789 = vector.extract_strided_slice %2 {offsets = [0, 5], sizes = [4, 1], strides = [1, 1]} : vector<4x32xf32> to vector<4x1xf32>
    %790 = vector.extract_strided_slice %589 {offsets = [5, 0], sizes = [1, 256], strides = [1, 1]} : vector<8x256xf32> to vector<1x256xf32>
    %791 = vector.broadcast %789 : vector<4x1xf32> to vector<4x256xf32>
    %792 = vector.broadcast %790 : vector<1x256xf32> to vector<4x256xf32>
    %793 = arith.mulf %791, %792 : vector<4x256xf32>
    %794 = arith.addf %788, %793 : vector<4x256xf32>
    %795 = vector.extract_strided_slice %2 {offsets = [0, 6], sizes = [4, 1], strides = [1, 1]} : vector<4x32xf32> to vector<4x1xf32>
    %796 = vector.extract_strided_slice %589 {offsets = [6, 0], sizes = [1, 256], strides = [1, 1]} : vector<8x256xf32> to vector<1x256xf32>
    %797 = vector.broadcast %795 : vector<4x1xf32> to vector<4x256xf32>
    %798 = vector.broadcast %796 : vector<1x256xf32> to vector<4x256xf32>
    %799 = arith.mulf %797, %798 : vector<4x256xf32>
    %800 = arith.addf %794, %799 : vector<4x256xf32>
    %801 = vector.extract_strided_slice %2 {offsets = [0, 7], sizes = [4, 1], strides = [1, 1]} : vector<4x32xf32> to vector<4x1xf32>
    %802 = vector.extract_strided_slice %589 {offsets = [7, 0], sizes = [1, 256], strides = [1, 1]} : vector<8x256xf32> to vector<1x256xf32>
    %803 = vector.broadcast %801 : vector<4x1xf32> to vector<4x256xf32>
    %804 = vector.broadcast %802 : vector<1x256xf32> to vector<4x256xf32>
    %805 = arith.mulf %803, %804 : vector<4x256xf32>
    %806 = arith.addf %800, %805 : vector<4x256xf32>
    %807 = vector.extract_strided_slice %2 {offsets = [0, 8], sizes = [4, 1], strides = [1, 1]} : vector<4x32xf32> to vector<4x1xf32>
    %808 = vector.extract_strided_slice %757 {offsets = [0, 0], sizes = [1, 256], strides = [1, 1]} : vector<8x256xf32> to vector<1x256xf32>
    %809 = vector.broadcast %807 : vector<4x1xf32> to vector<4x256xf32>
    %810 = vector.broadcast %808 : vector<1x256xf32> to vector<4x256xf32>
    %811 = arith.mulf %809, %810 : vector<4x256xf32>
    %812 = arith.addf %806, %811 : vector<4x256xf32>
    %813 = vector.extract_strided_slice %2 {offsets = [0, 9], sizes = [4, 1], strides = [1, 1]} : vector<4x32xf32> to vector<4x1xf32>
    %814 = vector.extract_strided_slice %757 {offsets = [1, 0], sizes = [1, 256], strides = [1, 1]} : vector<8x256xf32> to vector<1x256xf32>
    %815 = vector.broadcast %813 : vector<4x1xf32> to vector<4x256xf32>
    %816 = vector.broadcast %814 : vector<1x256xf32> to vector<4x256xf32>
    %817 = arith.mulf %815, %816 : vector<4x256xf32>
    %818 = arith.addf %812, %817 : vector<4x256xf32>
    %819 = vector.extract_strided_slice %2 {offsets = [0, 10], sizes = [4, 1], strides = [1, 1]} : vector<4x32xf32> to vector<4x1xf32>
    %820 = vector.extract_strided_slice %757 {offsets = [2, 0], sizes = [1, 256], strides = [1, 1]} : vector<8x256xf32> to vector<1x256xf32>
    %821 = vector.broadcast %819 : vector<4x1xf32> to vector<4x256xf32>
    %822 = vector.broadcast %820 : vector<1x256xf32> to vector<4x256xf32>
    %823 = arith.mulf %821, %822 : vector<4x256xf32>
    %824 = arith.addf %818, %823 : vector<4x256xf32>
    %825 = vector.extract_strided_slice %2 {offsets = [0, 11], sizes = [4, 1], strides = [1, 1]} : vector<4x32xf32> to vector<4x1xf32>
    %826 = vector.extract_strided_slice %757 {offsets = [3, 0], sizes = [1, 256], strides = [1, 1]} : vector<8x256xf32> to vector<1x256xf32>
    %827 = vector.broadcast %825 : vector<4x1xf32> to vector<4x256xf32>
    %828 = vector.broadcast %826 : vector<1x256xf32> to vector<4x256xf32>
    %829 = arith.mulf %827, %828 : vector<4x256xf32>
    %830 = arith.addf %824, %829 : vector<4x256xf32>
    %831 = vector.extract_strided_slice %2 {offsets = [0, 12], sizes = [4, 1], strides = [1, 1]} : vector<4x32xf32> to vector<4x1xf32>
    %832 = vector.extract_strided_slice %757 {offsets = [4, 0], sizes = [1, 256], strides = [1, 1]} : vector<8x256xf32> to vector<1x256xf32>
    %833 = vector.broadcast %831 : vector<4x1xf32> to vector<4x256xf32>
    %834 = vector.broadcast %832 : vector<1x256xf32> to vector<4x256xf32>
    %835 = arith.mulf %833, %834 : vector<4x256xf32>
    %836 = arith.addf %830, %835 : vector<4x256xf32>
    %837 = vector.extract_strided_slice %2 {offsets = [0, 13], sizes = [4, 1], strides = [1, 1]} : vector<4x32xf32> to vector<4x1xf32>
    %838 = vector.extract_strided_slice %757 {offsets = [5, 0], sizes = [1, 256], strides = [1, 1]} : vector<8x256xf32> to vector<1x256xf32>
    %839 = vector.broadcast %837 : vector<4x1xf32> to vector<4x256xf32>
    %840 = vector.broadcast %838 : vector<1x256xf32> to vector<4x256xf32>
    %841 = arith.mulf %839, %840 : vector<4x256xf32>
    %842 = arith.addf %836, %841 : vector<4x256xf32>
    %843 = vector.extract_strided_slice %2 {offsets = [0, 14], sizes = [4, 1], strides = [1, 1]} : vector<4x32xf32> to vector<4x1xf32>
    %844 = vector.extract_strided_slice %757 {offsets = [6, 0], sizes = [1, 256], strides = [1, 1]} : vector<8x256xf32> to vector<1x256xf32>
    %845 = vector.broadcast %843 : vector<4x1xf32> to vector<4x256xf32>
    %846 = vector.broadcast %844 : vector<1x256xf32> to vector<4x256xf32>
    %847 = arith.mulf %845, %846 : vector<4x256xf32>
    %848 = arith.addf %842, %847 : vector<4x256xf32>
    %849 = vector.extract_strided_slice %2 {offsets = [0, 15], sizes = [4, 1], strides = [1, 1]} : vector<4x32xf32> to vector<4x1xf32>
    %850 = vector.extract_strided_slice %757 {offsets = [7, 0], sizes = [1, 256], strides = [1, 1]} : vector<8x256xf32> to vector<1x256xf32>
    %851 = vector.broadcast %849 : vector<4x1xf32> to vector<4x256xf32>
    %852 = vector.broadcast %850 : vector<1x256xf32> to vector<4x256xf32>
    %853 = arith.mulf %851, %852 : vector<4x256xf32>
    %854 = arith.addf %848, %853 : vector<4x256xf32>
    %cst_212 = arith.constant dense<0.000000e+00> : vector<16xf32>
    %855 = vector.multi_reduction <add>, %511, %cst_212 [1] : vector<16x256xf32> to vector<16xf32>
    %856 = vector.shape_cast %855 : vector<16xf32> to vector<16x1xf32>
    %cst_213 = arith.constant 2.560000e+02 : f32
    %857 = vector.broadcast %cst_213 : f32 to vector<16x1xf32>
    %858 = arith.divf %856, %857 : vector<16x1xf32>
    %cst_214 = arith.constant 0.000000e+00 : f32
    %859 = vector.broadcast %cst_214 : f32 to vector<4x1xf32>
    %860 = vector.extract_strided_slice %2 {offsets = [0, 16], sizes = [4, 1], strides = [1, 1]} : vector<4x32xf32> to vector<4x1xf32>
    %861 = vector.extract_strided_slice %858 {offsets = [0, 0], sizes = [1, 1], strides = [1, 1]} : vector<16x1xf32> to vector<1x1xf32>
    %862 = vector.broadcast %861 : vector<1x1xf32> to vector<4x1xf32>
    %863 = arith.mulf %860, %862 : vector<4x1xf32>
    %864 = arith.addf %859, %863 : vector<4x1xf32>
    %865 = vector.extract_strided_slice %2 {offsets = [0, 17], sizes = [4, 1], strides = [1, 1]} : vector<4x32xf32> to vector<4x1xf32>
    %866 = vector.extract_strided_slice %858 {offsets = [1, 0], sizes = [1, 1], strides = [1, 1]} : vector<16x1xf32> to vector<1x1xf32>
    %867 = vector.broadcast %866 : vector<1x1xf32> to vector<4x1xf32>
    %868 = arith.mulf %865, %867 : vector<4x1xf32>
    %869 = arith.addf %864, %868 : vector<4x1xf32>
    %870 = vector.extract_strided_slice %2 {offsets = [0, 18], sizes = [4, 1], strides = [1, 1]} : vector<4x32xf32> to vector<4x1xf32>
    %871 = vector.extract_strided_slice %858 {offsets = [2, 0], sizes = [1, 1], strides = [1, 1]} : vector<16x1xf32> to vector<1x1xf32>
    %872 = vector.broadcast %871 : vector<1x1xf32> to vector<4x1xf32>
    %873 = arith.mulf %870, %872 : vector<4x1xf32>
    %874 = arith.addf %869, %873 : vector<4x1xf32>
    %875 = vector.extract_strided_slice %2 {offsets = [0, 19], sizes = [4, 1], strides = [1, 1]} : vector<4x32xf32> to vector<4x1xf32>
    %876 = vector.extract_strided_slice %858 {offsets = [3, 0], sizes = [1, 1], strides = [1, 1]} : vector<16x1xf32> to vector<1x1xf32>
    %877 = vector.broadcast %876 : vector<1x1xf32> to vector<4x1xf32>
    %878 = arith.mulf %875, %877 : vector<4x1xf32>
    %879 = arith.addf %874, %878 : vector<4x1xf32>
    %880 = vector.extract_strided_slice %2 {offsets = [0, 20], sizes = [4, 1], strides = [1, 1]} : vector<4x32xf32> to vector<4x1xf32>
    %881 = vector.extract_strided_slice %858 {offsets = [4, 0], sizes = [1, 1], strides = [1, 1]} : vector<16x1xf32> to vector<1x1xf32>
    %882 = vector.broadcast %881 : vector<1x1xf32> to vector<4x1xf32>
    %883 = arith.mulf %880, %882 : vector<4x1xf32>
    %884 = arith.addf %879, %883 : vector<4x1xf32>
    %885 = vector.extract_strided_slice %2 {offsets = [0, 21], sizes = [4, 1], strides = [1, 1]} : vector<4x32xf32> to vector<4x1xf32>
    %886 = vector.extract_strided_slice %858 {offsets = [5, 0], sizes = [1, 1], strides = [1, 1]} : vector<16x1xf32> to vector<1x1xf32>
    %887 = vector.broadcast %886 : vector<1x1xf32> to vector<4x1xf32>
    %888 = arith.mulf %885, %887 : vector<4x1xf32>
    %889 = arith.addf %884, %888 : vector<4x1xf32>
    %890 = vector.extract_strided_slice %2 {offsets = [0, 22], sizes = [4, 1], strides = [1, 1]} : vector<4x32xf32> to vector<4x1xf32>
    %891 = vector.extract_strided_slice %858 {offsets = [6, 0], sizes = [1, 1], strides = [1, 1]} : vector<16x1xf32> to vector<1x1xf32>
    %892 = vector.broadcast %891 : vector<1x1xf32> to vector<4x1xf32>
    %893 = arith.mulf %890, %892 : vector<4x1xf32>
    %894 = arith.addf %889, %893 : vector<4x1xf32>
    %895 = vector.extract_strided_slice %2 {offsets = [0, 23], sizes = [4, 1], strides = [1, 1]} : vector<4x32xf32> to vector<4x1xf32>
    %896 = vector.extract_strided_slice %858 {offsets = [7, 0], sizes = [1, 1], strides = [1, 1]} : vector<16x1xf32> to vector<1x1xf32>
    %897 = vector.broadcast %896 : vector<1x1xf32> to vector<4x1xf32>
    %898 = arith.mulf %895, %897 : vector<4x1xf32>
    %899 = arith.addf %894, %898 : vector<4x1xf32>
    %900 = vector.extract_strided_slice %2 {offsets = [0, 24], sizes = [4, 1], strides = [1, 1]} : vector<4x32xf32> to vector<4x1xf32>
    %901 = vector.extract_strided_slice %858 {offsets = [8, 0], sizes = [1, 1], strides = [1, 1]} : vector<16x1xf32> to vector<1x1xf32>
    %902 = vector.broadcast %901 : vector<1x1xf32> to vector<4x1xf32>
    %903 = arith.mulf %900, %902 : vector<4x1xf32>
    %904 = arith.addf %899, %903 : vector<4x1xf32>
    %905 = vector.extract_strided_slice %2 {offsets = [0, 25], sizes = [4, 1], strides = [1, 1]} : vector<4x32xf32> to vector<4x1xf32>
    %906 = vector.extract_strided_slice %858 {offsets = [9, 0], sizes = [1, 1], strides = [1, 1]} : vector<16x1xf32> to vector<1x1xf32>
    %907 = vector.broadcast %906 : vector<1x1xf32> to vector<4x1xf32>
    %908 = arith.mulf %905, %907 : vector<4x1xf32>
    %909 = arith.addf %904, %908 : vector<4x1xf32>
    %910 = vector.extract_strided_slice %2 {offsets = [0, 26], sizes = [4, 1], strides = [1, 1]} : vector<4x32xf32> to vector<4x1xf32>
    %911 = vector.extract_strided_slice %858 {offsets = [10, 0], sizes = [1, 1], strides = [1, 1]} : vector<16x1xf32> to vector<1x1xf32>
    %912 = vector.broadcast %911 : vector<1x1xf32> to vector<4x1xf32>
    %913 = arith.mulf %910, %912 : vector<4x1xf32>
    %914 = arith.addf %909, %913 : vector<4x1xf32>
    %915 = vector.extract_strided_slice %2 {offsets = [0, 27], sizes = [4, 1], strides = [1, 1]} : vector<4x32xf32> to vector<4x1xf32>
    %916 = vector.extract_strided_slice %858 {offsets = [11, 0], sizes = [1, 1], strides = [1, 1]} : vector<16x1xf32> to vector<1x1xf32>
    %917 = vector.broadcast %916 : vector<1x1xf32> to vector<4x1xf32>
    %918 = arith.mulf %915, %917 : vector<4x1xf32>
    %919 = arith.addf %914, %918 : vector<4x1xf32>
    %920 = vector.extract_strided_slice %2 {offsets = [0, 28], sizes = [4, 1], strides = [1, 1]} : vector<4x32xf32> to vector<4x1xf32>
    %921 = vector.extract_strided_slice %858 {offsets = [12, 0], sizes = [1, 1], strides = [1, 1]} : vector<16x1xf32> to vector<1x1xf32>
    %922 = vector.broadcast %921 : vector<1x1xf32> to vector<4x1xf32>
    %923 = arith.mulf %920, %922 : vector<4x1xf32>
    %924 = arith.addf %919, %923 : vector<4x1xf32>
    %925 = vector.extract_strided_slice %2 {offsets = [0, 29], sizes = [4, 1], strides = [1, 1]} : vector<4x32xf32> to vector<4x1xf32>
    %926 = vector.extract_strided_slice %858 {offsets = [13, 0], sizes = [1, 1], strides = [1, 1]} : vector<16x1xf32> to vector<1x1xf32>
    %927 = vector.broadcast %926 : vector<1x1xf32> to vector<4x1xf32>
    %928 = arith.mulf %925, %927 : vector<4x1xf32>
    %929 = arith.addf %924, %928 : vector<4x1xf32>
    %930 = vector.extract_strided_slice %2 {offsets = [0, 30], sizes = [4, 1], strides = [1, 1]} : vector<4x32xf32> to vector<4x1xf32>
    %931 = vector.extract_strided_slice %858 {offsets = [14, 0], sizes = [1, 1], strides = [1, 1]} : vector<16x1xf32> to vector<1x1xf32>
    %932 = vector.broadcast %931 : vector<1x1xf32> to vector<4x1xf32>
    %933 = arith.mulf %930, %932 : vector<4x1xf32>
    %934 = arith.addf %929, %933 : vector<4x1xf32>
    %935 = vector.extract_strided_slice %2 {offsets = [0, 31], sizes = [4, 1], strides = [1, 1]} : vector<4x32xf32> to vector<4x1xf32>
    %936 = vector.extract_strided_slice %858 {offsets = [15, 0], sizes = [1, 1], strides = [1, 1]} : vector<16x1xf32> to vector<1x1xf32>
    %937 = vector.broadcast %936 : vector<1x1xf32> to vector<4x1xf32>
    %938 = arith.mulf %935, %937 : vector<4x1xf32>
    %939 = arith.addf %934, %938 : vector<4x1xf32>
    %940 = vector.broadcast %939 : vector<4x1xf32> to vector<4x256xf32>
    %941 = arith.addf %854, %940 : vector<4x256xf32>
    %942 = vector.broadcast %3 : vector<4x1xf32> to vector<4x256xf32>
    %943 = arith.addf %941, %942 : vector<4x256xf32>
    %944 = tpu.concatenate %480, %943 in 0 : vector<4x256xf32>, vector<4x256xf32> -> vector<8x256xf32>
    %c0_215 = arith.constant 0 : index
    %c0_216 = arith.constant 0 : index
    %c0_217 = arith.constant 0 : index
    %945 = vector.load %arg12[%c0_215, %c0_216, %c0_217] : memref<1x8x256xf32, #tpu.memory_space<vmem>>, vector<1x8x256xf32>
    %946 = vector.shape_cast %945 : vector<1x8x256xf32> to vector<8x256xf32>
    %947 = vector.shape_cast %944 : vector<8x256xf32> to vector<1x8x256xf32>
    tpu.vector_store %arg12[%c0_215, %c0_216, %c0_217], %947 {strides = array<i32>} : memref<1x8x256xf32, #tpu.memory_space<vmem>>, vector<1x8x256xf32>,
    return
  }
  func.func @transform_0(%arg0: i32) -> (i32, i32, i32) {
    %c0_i32 = arith.constant 0 : i32
    %c0_i32_0 = arith.constant 0 : i32
    %c0_i32_1 = arith.constant 0 : i32
    return %arg0, %c0_i32, %c0_i32_0 : i32, i32, i32
  }
  func.func @transform_1(%arg0: i32) -> (i32, i32) {
    %c0_i32 = arith.constant 0 : i32
    %c0_i32_0 = arith.constant 0 : i32
    %c0_i32_1 = arith.constant 0 : i32
    return %c0_i32, %c0_i32_0 : i32, i32
  }
  func.func @transform_2(%arg0: i32) -> (i32, i32) {
    %c0_i32 = arith.constant 0 : i32
    %c0_i32_0 = arith.constant 0 : i32
    %c0_i32_1 = arith.constant 0 : i32
    return %c0_i32, %c0_i32_0 : i32, i32
  }
  func.func @transform_3(%arg0: i32) -> (i32, i32) {
    %c0_i32 = arith.constant 0 : i32
    %c0_i32_0 = arith.constant 0 : i32
    %c0_i32_1 = arith.constant 0 : i32
    return %c0_i32, %c0_i32_0 : i32, i32
  }
  func.func @transform_4(%arg0: i32) -> (i32, i32) {
    %c0_i32 = arith.constant 0 : i32
    %c0_i32_0 = arith.constant 0 : i32
    %c0_i32_1 = arith.constant 0 : i32
    return %c0_i32, %c0_i32_0 : i32, i32
  }
  func.func @transform_5(%arg0: i32) -> (i32, i32) {
    %c0_i32 = arith.constant 0 : i32
    %c0_i32_0 = arith.constant 0 : i32
    %c0_i32_1 = arith.constant 0 : i32
    return %c0_i32, %c0_i32_0 : i32, i32
  }
  func.func @transform_6(%arg0: i32) -> (i32, i32) {
    %c0_i32 = arith.constant 0 : i32
    %c0_i32_0 = arith.constant 0 : i32
    %c0_i32_1 = arith.constant 0 : i32
    return %c0_i32, %c0_i32_0 : i32, i32
  }
  func.func @transform_7(%arg0: i32) -> (i32, i32) {
    %c0_i32 = arith.constant 0 : i32
    %c0_i32_0 = arith.constant 0 : i32
    %c0_i32_1 = arith.constant 0 : i32
    return %c0_i32, %c0_i32_0 : i32, i32
  }
  func.func @transform_8(%arg0: i32) -> (i32, i32) {
    %c0_i32 = arith.constant 0 : i32
    %c0_i32_0 = arith.constant 0 : i32
    %c0_i32_1 = arith.constant 0 : i32
    return %c0_i32, %c0_i32_0 : i32, i32
  }
  func.func @transform_9(%arg0: i32) -> (i32, i32) {
    %c0_i32 = arith.constant 0 : i32
    %c0_i32_0 = arith.constant 0 : i32
    %c0_i32_1 = arith.constant 0 : i32
    return %c0_i32, %c0_i32_0 : i32, i32
  }
  func.func @transform_10(%arg0: i32) -> (i32, i32) {
    %c0_i32 = arith.constant 0 : i32
    %c0_i32_0 = arith.constant 0 : i32
    %c0_i32_1 = arith.constant 0 : i32
    return %c0_i32, %c0_i32_0 : i32, i32
  }
  func.func @transform_11(%arg0: i32) -> (i32, i32, i32) {
    %c0_i32 = arith.constant 0 : i32
    %c0_i32_0 = arith.constant 0 : i32
    %c0_i32_1 = arith.constant 0 : i32
    return %arg0, %c0_i32, %c0_i32_0 : i32, i32, i32
  }
}

</mosaic_0001>

<bundles_post_ra>
// kernel: tile.74
= control target key start
LH: loop header
LB: loop body
LE: loop exit
PB: predicated region body
PF: predicated region fallthrough
CT: control target
= control target key end

     0   :  { %s28_s0 = inlined_call_operand.vmem [shape: f32[16], index: 0, kind: input, shape index: {}]   ;;  %s29_s1 = inlined_call_operand.vmem [shape: f32[16,16], index: 1, kind: output, shape index: {}]  }
   0x1   :  { %v4_v0 = vld [vmem:[%s28_s0] ss:$0 sm:$0xff] }
   0x2   :  { %5 = vst [vmem:[%s29_s1] sm:$0xff] %v4_v0  ;;  %8 = vst [vmem:[%s29_s1 + $0x8] sm:$0xff] %v4_v0 }

// kernel: tile.79
= control target key start
LH: loop header
LB: loop body
LE: loop exit
PB: predicated region body
PF: predicated region fallthrough
CT: control target
= control target key end

     0   :  { %s7_s6 = smov 3  ;;  %s21_s9 = smov 3  ;;  %vm4_vm0 = vcmask 130048   ;;  %vm11_vm1 = vcmask 1048448   ;;  %vm18_vm2 = vcmask 917248   ;;  %vm25_vm3 = vcmask 786048   ;;  %s131_s0 = inlined_call_operand.vmem [shape: f32[16,16], index: 0, kind: input, shape index: {}]   ;;  %s132_s1 = inlined_call_operand.vmem [shape: f32[1,256], index: 1, kind: output, shape index: {}]  }
   0x1   :  { %v69_v0 = vld [vmem:[%s131_s0 + $0x7] ss:$8 sm:%s7_s6]   ;;  %s84_s10 = smov 112   ;;  %v71_v1 = vld [vmem:[%s131_s0 + $0x5] ss:$8 sm:%s21_s9]   ;;  %s14_s13 = smov 3 }
   0x2   :  { %9 = vrot.lane.b32.xlu0 %v69_v0, %s84_s10  ;;  %s85_s14 = smov 80   ;;  %v70_v2 = vld [vmem:[%s131_s0 + $0x6] ss:$8 sm:%s14_s13]   ;;  %s28_s17 = smov 3  ;;  %vm32_vm4 = vcmask 654848   ;;  %vm39_vm5 = vcmask 523648  }
   0x3   :  { %23 = vrot.lane.b32.xlu1 %v71_v1, %s85_s14  ;;  %v72_v3 = vld [vmem:[%s131_s0 + $0x4] ss:$8 sm:%s28_s17]   ;;  %s35_s20 = smov 3  ;;  %s42_s21 = smov 3  ;;  %vm46_vm6 = vcmask 392448   ;;  %vm53_vm7 = vcmask 261248  }
   0x4   :  { %s86_s22 = smov 96   ;;  %s87_s23 = smov 64   ;;  %v73_v4 = vld [vmem:[%s131_s0 + $0x3] ss:$8 sm:%s35_s20]   ;;  %v74_v5 = vld [vmem:[%s131_s0 + $0x2] ss:$8 sm:%s42_s21]  }
   0x5   :  { %s2_s26 = smov 3  ;;  %s49_s29 = smov 3 }
   0x6   :  { %16 = vrot.lane.b32.xlu0 %v70_v2, %s86_s22  ;;  %v3_v6 = vld [vmem:[%s131_s0] ss:$8 sm:%s2_s26]   ;;  %s88_s3 = smov 48   ;;  %s89_s4 = smov 32  }
   0x7   :  { %30 = vrot.lane.b32.xlu1 %v72_v3, %s87_s23  ;;  %5 = vst.msk [vmem:[#allocation0] ss:$8 sm:$0x3] %vm4_vm0, %v3_v6   ;;  %v75_v7 = vld [vmem:[%s131_s0 + $0x1] ss:$8 sm:%s49_s29]   ;;  %s90_s0 = smov 16  }
   0xa   :  { %37 = vrot.lane.b32.xlu0 %v73_v4, %s88_s3 }
   0xb   :  { %44 = vrot.lane.b32.xlu1 %v74_v5, %s89_s4 }
   0xe   :  { %51 = vrot.lane.b32.xlu0 %v75_v7, %s90_s0 }
  0x74   :  { %v10_v8 = vpop.permute.xlu0 %9  }
  0x75   :  { %12 = vst.msk [vmem:[#allocation0] ss:$8 sm:$0x3] %vm11_vm1, %v10_v8   ;;  %v24_v9 = vpop.permute.xlu1 %23  }
  0x78   :  { %v17_v10 = vpop.permute.xlu0 %16  }
  0x79   :  { %19 = vst.msk [vmem:[#allocation0] ss:$8 sm:$0x3] %vm18_vm2, %v17_v10   ;;  %v31_v11 = vpop.permute.xlu1 %30  }
  0x7a   :  { %26 = vst.msk [vmem:[#allocation0] ss:$8 sm:$0x3] %vm25_vm3, %v24_v9  }
  0x7b   :  { %33 = vst.msk [vmem:[#allocation0] ss:$8 sm:$0x3] %vm32_vm4, %v31_v11  }
  0x7c   :  { %v38_v12 = vpop.permute.xlu0 %37  }
  0x7d   :  { %40 = vst.msk [vmem:[#allocation0] ss:$8 sm:$0x3] %vm39_vm5, %v38_v12   ;;  %v45_v13 = vpop.permute.xlu1 %44  }
  0x7e   :  { %47 = vst.msk [vmem:[#allocation0] ss:$8 sm:$0x3] %vm46_vm6, %v45_v13  }
  0x80   :  { %v52_v14 = vpop.permute.xlu0 %51  }
  0x81   :  { %54 = vst.msk [vmem:[#allocation0] ss:$8 sm:$0x3] %vm53_vm7, %v52_v14  }
  0x88   :  { %v59_v15 = vld [vmem:[#allocation0] sm:$0x1]  ;;  %v64_v16 = vld [vmem:[#allocation0 + $0x8] sm:$0x1] }
  0x89   :  { %62 = vst [vmem:[%s132_s1] sm:$0x1] %v59_v15  ;;  %76 = vst [vmem:[%s132_s1 + $0x1] sm:$0x1] %v64_v16 }

// kernel: mlgffn_pallas.1
= control target key start
LH: loop header
LB: loop body
LE: loop exit
PB: predicated region body
PF: predicated region fallthrough
CT: control target
= control target key end

     0   :  { %v5381_v0 = vmov 1   ;;  %v5382_v1 = vmov 0   ;;  %v71_v3 = vlaneseq  ;;  %v5384_v10 = vmov 2   ;;  %s3040_s29 = smov 2   ;;  %s3048_s14 = smov 3   ;;  %s5355_s1 = inlined_call_operand.vmem [shape: f32[16,4], index: 1, kind: input, shape index: {}]   ;;  %s5356_s5 = inlined_call_operand.vmem [shape: f32[3,256], index: 5, kind: input, shape index: {}]   ;;  %s5357_s3 = inlined_call_operand.vmem [shape: f32[8,9], index: 3, kind: input, shape index: {}]   ;;  %s5358_s2 = inlined_call_operand.vmem [shape: f32[16,1], index: 2, kind: input, shape index: {}]   ;;  %s5359_s6 = inlined_call_operand.vmem [shape: f32[8,25], index: 6, kind: input, shape index: {}]   ;;  %s5360_s8 = inlined_call_operand.vmem [shape: f32[5,256], index: 8, kind: input, shape index: {}]   ;;  %s5361_s0 = inlined_call_operand.vmem [shape: f32[1,8,256], index: 0, kind: input, shape index: {}]   ;;  %s5362_s9 = inlined_call_operand.vmem [shape: f32[4,32], index: 9, kind: input, shape index: {}]   ;;  %s5363_s4 = inlined_call_operand.vmem [shape: f32[8,1], index: 4, kind: input, shape index: {}]   ;;  %s5364_s7 = inlined_call_operand.vmem [shape: f32[8,1], index: 7, kind: input, shape index: {}]   ;;  %s5365_s10 = inlined_call_operand.vmem [shape: f32[4,1], index: 10, kind: input, shape index: {}]   ;;  %s5366_s11 = inlined_call_operand.vmem [shape: f32[1,8,256], index: 11, kind: output, shape index: {}]  }
   0x1   :  { %2954 = vset.pattern.permute.xlu1 %v5381_v0  ;;  %2953 = vset.pattern.permute.xlu0 %v5382_v1  ;;  %v38_v2 = vld [vmem:[%s5355_s1] sm:$0xff]  ;;  %v39_v4 = vld [vmem:[%s5355_s1 + $0x8] sm:$0xff]  ;;  %v5379_v12 = vmov 3   ;;  %s3037_s1 = smov 1   ;;  %v5378_v13 = vmov 8   ;;  %v5375_v20 = vmov 6  }
   0x2   :  { %92 = vperm.xlu1 %2954, %v38_v2   ;;  %62 = vperm.xlu0 %2953, %v38_v2   ;;  %v3152_v5 = vshrl.u32 %v71_v3, 7  ;;  %v3157_v6 = vld [vmem:[%s5356_s5] sm:$0x77]  ;;  %v41_v19 = vld [vmem:[%s5358_s2 + $0x8] sm:$0xff]  ;;  %v5369_v26 = vmov 12   ;;  %v5374_v27 = vmov 7  }
   0x3   :  { %v3176_v14 = vld [vmem:[%s5357_s3] sm:$0xff]  ;;  %v3207_v23 = vld [vmem:[%s5360_s8 + $0x8] sm:$0x1f]  ;;  %v5380_v30 = vmov 5   ;;  %v5368_v33 = vmov 13   ;;  %v5370_v35 = vmov 10  }
   0x4   :  { %5529 = vst [vmem:[#allocation4_spill] sm:$0xff] %v3152_v5  ;;  %v3160_v7 = vsub.s32 5, %v3152_v5  ;;  %v3163_v8 = vsub.s32 1, %v3152_v5  ;;  %v3179_v15 = vsub.s32 6, %v3152_v5  ;;  %v40_v16 = vld [vmem:[%s5358_s2] sm:$0xff]  ;;  %v3187_v17 = vsub.s32 2, %v3152_v5 }
   0x5   :  { %v3202_v22 = vld [vmem:[%s5359_s6] sm:$0xff]  ;;  %v3239_v34 = vsub.s32 3, %v3152_v5  ;;  %v5377_v36 = vmov 4   ;;  %v5367_v38 = vmov 15   ;;  %v3049_v39 = vmov 20   ;;  %s3059_s30 = smov 17  }
   0x6   :  { %5530 = vst [vmem:[#allocation5_spill] sm:$0xff] %v3160_v7  ;;  %96 = vperm.xlu1 %2954, %v39_v4   ;;  %67 = vperm.xlu0 %2953, %v39_v4   ;;  %5531 = vst [vmem:[#allocation6_spill] sm:$0xff] %v3163_v8  ;;  %v352_v9 = vrot.slane %v3157_v6, %v3160_v7  ;;  %v458_v18 = vrot.slane %v3157_v6, %v3179_v15  ;;  %v5376_v40 = vmov 11   ;;  %v5371_v41 = vmov 16   ;;  %v3261_v42 = vld [vmem:[%s5360_s8] sm:$0x1f] }
   0x7   :  { %5532 = vst [vmem:[#allocation7_spill] sm:$0xff] %v3179_v15  ;;  %5533 = vst [vmem:[#allocation8_spill] sm:$0xff] %v3187_v17  ;;  %v767_v24 = vrot.slane %v3207_v23, %v3163_v8  ;;  %v348_v25 = vrot.slane %v3157_v6, %v3163_v8  ;;  %v454_v29 = vrot.slane %v3157_v6, %v3187_v17  ;;  %v3052_v43 = vmov 21   ;;  %v2899_v51 = vld [vmem:[%s5361_s0 + $0x5] ss:$8 sm:$0x3] }
   0x8   :  { %v362_v11 = vrot.slane %v352_v9, %v3163_v8  ;;  %v468_v21 = vrot.slane %v458_v18, %v3187_v17  ;;  %v909_v31 = vrot.slane %v3207_v23, %v3187_v17  ;;  %5534 = vst [vmem:[#allocation9_spill] sm:$0xff] %v3239_v34  ;;  %v1051_v37 = vrot.slane %v3207_v23, %v3239_v34  ;;  %v2895_v53 = vld [vmem:[%s5361_s0 + $0x1] ss:$8 sm:$0x3]  ;;  %s3060_s2 = smov 34   ;;  %s3062_s15 = smov 96  }
   0x9   :  { %v358_v28 = vrot.slane %v348_v25, %v3163_v8  ;;  %v464_v32 = vrot.slane %v454_v29, %v3187_v17  ;;  %v763_v44 = vrot.slane %v3261_v42, %v3163_v8  ;;  %v3053_v45 = vmov 17   ;;  %v2898_v54 = vld [vmem:[%s5361_s0 + $0x4] ss:$8 sm:$0x3]  ;;  %s3064_s16 = smov 80   ;;  %s3065_s17 = smov 64  }
   0xa   :  { %2956 = vset.pattern.permute.xlu1 %v5384_v10  ;;  %2955 = vset.pattern.permute.xlu0 %v5384_v10  ;;  %v3054_v46 = vmov 22   ;;  %v905_v47 = vrot.slane %v3261_v42, %v3187_v17  ;;  %v3055_v48 = vmov 18   ;;  %v3278_v49 = vsub.s32 0, %v3152_v5  ;;  %v59_v56 = vld [vmem:[%s5361_s0] ss:$8 sm:$0x3] }
   0xb   :  { %125 = vperm.xlu1 %2956, %v39_v4   ;;  %121 = vperm.xlu0 %2955, %v38_v2   ;;  %v3056_v55 = vmov 23   ;;  %v1047_v57 = vrot.slane %v3261_v42, %v3239_v34  ;;  %v2900_v59 = vld [vmem:[%s5361_s0 + $0x6] ss:$8 sm:$0x3]  ;;  %v107_v3 = vrot.slane %v2895_v53, %v3163_v8  ;;  %v78_v6 = vrot.slane %v59_v56, %v3163_v8  ;;  %s3068_s18 = smov 4   ;;  %s3069_s21 = smov 127  }
   0xc   :  { %5535 = vst [vmem:[#allocation10_spill] sm:$0xff] %v3278_v49  ;;  %v3300_v58 = vrot.slane %v2899_v51, %v3278_v49  ;;  %v3306_v60 = vrot.slane %v2895_v53, %v3278_v49  ;;  %v3309_v61 = vrot.slane %v2898_v54, %v3278_v49  ;;  %v5373_v18 = vmov 9   ;;  %s3070_s22 = smov 126   ;;  %s3072_s23 = smov 124  }
   0xd   :  { %vm51_vm0 = vcmask 138240   ;;  %v3058_v29 = vmov 0.0   ;;  %vm53_vm1 = vcmask 277640   ;;  %vm55_vm2 = vcmask 277504   ;;  %s3073_s24 = smov 123   ;;  %s3074_s25 = smov 122  }
   0xe   :  { %5538 = vst [vmem:[#allocation13_spill] sm:$0xff] %v3300_v58  ;;  %5539 = vst [vmem:[#allocation14_spill] sm:$0xff] %v3309_v61  ;;  %vm57_vm3 = vcmask 556304   ;;  %vm200_vm4 = vcmask 1047688   ;;  %vm534_vm5 = vcmask 1047824   ;;  %vm234_vm6 = vcmask 916480  }
   0xf   :  { %2957 = vset.pattern.permute.xlu1 %v5379_v12  ;;  %367 = vrot.lane.b32.xlu0 %v362_v11, %s3037_s1  ;;  %52 = vst.msk [vmem:[#allocation2] sm:$0xff] %vm51_vm0, %v3058_v29  ;;  %vm257_vm7 = vcmask 785408   ;;  %vm369_vm8 = vcmask 7168   ;;  %vm475_vm9 = vcmask 15360   ;;  %vm612_vm10 = vcmask 654336   ;;  %s3075_s26 = smov 121  }
  0x10   :  { %150 = vperm.xlu1 %2957, %v38_v2   ;;  %2963 = vset.pattern.permute.xlu0 %v5378_v13  ;;  %v2896_v2 = vld [vmem:[%s5361_s0 + $0x2] ss:$8 sm:$0x3]  ;;  %54 = vst.msk [vmem:[#allocation2 + $0x10] sm:$0xff] %vm53_vm1, %v3058_v29  ;;  %vm635_vm11 = vcmask 523264   ;;  %vm1058_vm12 = vcmask 23552  }
  0x11   :  { %56 = vst.msk [vmem:[#allocation3] sm:$0xff] %vm55_vm2, %v3058_v29  ;;  %vm1202_vm13 = vcmask 31744   ;;  %s3076_s27 = smov 120   ;;  %s3077_s28 = smov 119   ;;  %vm386_vm14 = vcmask 1039360   ;;  %vm492_vm15 = vcmask 1031168  }
  0x12   :  { %58 = vst.msk [vmem:[#allocation3 + $0x10] sm:$0xff] %vm57_vm3, %v3058_v29  ;;  %s3079_s13 = smov 117   ;;  %s3081_s20 = smov 115   ;;  %vm1219_vm1 = vcmask 1014784  }
  0x13   :  { %428 = vperm.xlu0 %2963, %v3176_v14  }
  0x14   :  { %2958 = vset.pattern.permute.xlu1 %v5382_v1 }
  0x15   :  { %178 = vperm.xlu1 %2958, %v40_v16   ;;  %v3327_v16 = vrot.slane %v2900_v59, %v3278_v49 }
  0x17   :  { %2964 = vset.pattern.permute.xlu0 %v5375_v20  ;;  %5542 = vst [vmem:[#allocation17_spill] sm:$0xff] %v3327_v16 }
  0x18   :  { %242 = vperm.xlu0 %2964, %v3176_v14  }
  0x19   :  { %183 = vperm.xlu1 %2958, %v41_v19   ;;  %v132_v19 = vrot.slane %v2896_v2, %v3278_v49 }
  0x1c   :  { %473 = vrot.lane.b32.xlu0 %v468_v21, %s3040_s29  ;;  %v136_v21 = vrot.slane %v2896_v2, %v3163_v8 }
  0x1d   :  { %2959 = vset.pattern.permute.xlu1 %v5379_v12 }
  0x1e   :  { %219 = vperm.xlu1 %2959, %v3176_v14  }
  0x20   :  { %665 = vperm.xlu0 %2964, %v3202_v22  }
  0x22   :  { %2960 = vset.pattern.permute.xlu1 %v5381_v0 }
  0x23   :  { %288 = vperm.xlu1 %2960, %v3176_v14  }
  0x24   :  { %772 = vrot.lane.b32.xlu0 %v767_v24, %s3037_s1 }
  0x25   :  { %2973 = vset.pattern.permute.xlu0 %v5369_v26 }
  0x27   :  { %2961 = vset.pattern.permute.xlu1 %v5374_v27 }
  0x28   :  { %322 = vperm.xlu1 %2961, %v3176_v14   ;;  %831 = vperm.xlu0 %2973, %v3202_v22  }
  0x2c   :  { %365 = vrot.lane.b32.xlu1 %v358_v28, %s3037_s1  ;;  %2974 = vset.pattern.permute.xlu0 %v5379_v12  ;;  %v2897_v28 = vld [vmem:[%s5361_s0 + $0x3] ss:$8 sm:$0x3] }
  0x2d   :  { %154 = vperm.xlu0 %2974, %v39_v4   ;;  %2962 = vset.pattern.permute.xlu1 %v5380_v30  ;;  %v74_v4 = vrot.slane %v59_v56, %v3278_v49 }
  0x30   :  { %404 = vperm.xlu1 %2962, %v3176_v14  }
  0x31   :  { %914 = vrot.lane.b32.xlu0 %v909_v31, %s3040_s29 }
  0x34   :  { %471 = vrot.lane.b32.xlu1 %v464_v32, %s3040_s29 }
  0x35   :  { %939 = vperm.xlu0 %2974, %v3202_v22  }
  0x38   :  { %553 = vperm.xlu1 %2962, %v3202_v22  }
  0x39   :  { %2978 = vset.pattern.permute.xlu0 %v5368_v33 }
  0x3a   :  { %973 = vperm.xlu0 %2978, %v3202_v22  }
  0x3c   :  { %2965 = vset.pattern.permute.xlu1 %v5370_v35 }
  0x3d   :  { %575 = vperm.xlu1 %2965, %v3202_v22  }
  0x3e   :  { %2979 = vset.pattern.permute.xlu0 %v5377_v36 }
  0x3f   :  { %298 = vperm.xlu0 %2979, %v3176_v14  }
  0x41   :  { %2966 = vset.pattern.permute.xlu1 %v5367_v38 }
  0x42   :  { %597 = vperm.xlu1 %2966, %v3202_v22  }
  0x43   :  { %1056 = vrot.lane.b32.xlu0 %v1051_v37, %s3048_s14 }
  0x46   :  { %2967 = vset.pattern.permute.xlu1 %v3049_v39 }
  0x47   :  { %620 = vperm.xlu1 %2967, %v3202_v22   ;;  %1083 = vperm.xlu0 %2979, %v3202_v22  }
  0x4b   :  { %2968 = vset.pattern.permute.xlu1 %v5381_v0 }
  0x4c   :  { %655 = vperm.xlu1 %2968, %v3202_v22  }
  0x50   :  { %2969 = vset.pattern.permute.xlu1 %v5376_v40 }
  0x51   :  { %689 = vperm.xlu1 %2969, %v3202_v22  }
  0x55   :  { %2970 = vset.pattern.permute.xlu1 %v5371_v41 }
  0x56   :  { %713 = vperm.xlu1 %2970, %v3202_v22  }
  0x5a   :  { %2971 = vset.pattern.permute.xlu1 %v3052_v43 }
  0x5b   :  { %737 = vperm.xlu1 %2971, %v3202_v22  }
  0x5f   :  { %770 = vrot.lane.b32.xlu1 %v763_v44, %s3037_s1  ;;  %s3071_s1 = smov 125  }
  0x60   :  { %2972 = vset.pattern.permute.xlu1 %v5374_v27 }
  0x63   :  { %807 = vperm.xlu1 %2972, %v3202_v22  }
  0x67   :  { %2975 = vset.pattern.permute.xlu1 %v3053_v45 }
  0x68   :  { %855 = vperm.xlu1 %2975, %v3202_v22  }
  0x6c   :  { %2976 = vset.pattern.permute.xlu1 %v3054_v46 }
  0x6d   :  { %879 = vperm.xlu1 %2976, %v3202_v22  }
  0x71   :  { %912 = vrot.lane.b32.xlu1 %v905_v47, %s3040_s29  ;;  %v165_v47 = vrot.slane %v2897_v28, %v3163_v8  ;;  %s5511_s29 = smov 118  }
  0x72   :  { %2977 = vset.pattern.permute.xlu1 %v5378_v13 }
  0x75   :  { %949 = vperm.xlu1 %2977, %v3202_v22  }
  0x79   :  { %2980 = vset.pattern.permute.xlu1 %v3055_v48  ;;  %v161_v48 = vrot.slane %v2897_v28, %v3278_v49 }
  0x7a   :  { %997 = vperm.xlu1 %2980, %v3202_v22  }
  0x7d   :  { %v3280_v50 = vpop.permute.xlu1 %92  ;;  %v3285_v52 = vpop.permute.xlu0 %62 }
  0x7e   :  { %5536 = vst [vmem:[#allocation11_spill] sm:$0xff] %v3280_v50  ;;  %5537 = vst [vmem:[#allocation12_spill] sm:$0xff] %v3285_v52  ;;  %2981 = vset.pattern.permute.xlu1 %v3056_v55  ;;  %v110_v24 = vmul.f32 %v3306_v60, %v3280_v50  ;;  %v111_v31 = vmul.f32 %v107_v3, %v3280_v50  ;;  %v81_v32 = vmul.f32 %v74_v4, %v3285_v52 }
  0x7f   :  { %1021 = vperm.xlu1 %2981, %v3202_v22   ;;  %v82_v37 = vmul.f32 %v78_v6, %v3285_v52 }
  0x80   :  { %v114_v55 = vadd.f32 %v110_v24, %v81_v32 }
  0x81   :  { %v3311_v62 = vpop.permute.xlu1 %96  ;;  %v3313_v63 = vpop.permute.xlu0 %67  ;;  %v115_v54 = vadd.f32 %v111_v31, %v82_v37 }
  0x82   :  { %5540 = vst [vmem:[#allocation15_spill] sm:$0xff] %v3311_v62  ;;  %5541 = vst [vmem:[#allocation16_spill] sm:$0xff] %v3313_v63  ;;  %v1723_v9 = vmul.f32 %v3300_v58, %v3311_v62  ;;  %v1702_v11 = vmul.f32 %v3309_v61, %v3313_v63 }
  0x83   :  { %1054 = vrot.lane.b32.xlu1 %v1047_v57, %s3048_s14  ;;  %s3061_s14 = smov 112  }
  0x84   :  { %2982 = vset.pattern.permute.xlu1 %v5373_v18  ;;  %v1727_v25 = vadd.f32 %v1723_v9, %v1702_v11 }
  0x86   :  { %v3341_v39 = vpop.permute.xlu1 %125  ;;  %v3343_v43 = vpop.permute.xlu0 %121 }
  0x87   :  { %5543 = vst [vmem:[#allocation18_spill] sm:$0xff] %v3341_v39  ;;  %5544 = vst [vmem:[#allocation19_spill] sm:$0xff] %v3343_v43  ;;  %v1744_v44 = vmul.f32 %v3327_v16, %v3341_v39  ;;  %1093 = vperm.xlu1 %2982, %v3202_v22   ;;  %v139_v45 = vmul.f32 %v132_v19, %v3343_v43  ;;  %v140_v46 = vmul.f32 %v136_v21, %v3343_v43 }
  0x89   :  { %v1748_v51 = vadd.f32 %v1744_v44, %v1727_v25  ;;  %v144_v57 = vadd.f32 %v140_v46, %v115_v54  ;;  %v143_v2 = vadd.f32 %v139_v45, %v114_v55  ;;  %v112_v46 = vmul.f32 %v3306_v60, %v3311_v62 }
  0x8a   :  { %v3352_v53 = vpop.permute.xlu0 %367  ;;  %v83_v54 = vmul.f32 %v74_v4, %v3313_v63  ;;  %v113_v55 = vmul.f32 %v107_v3, %v3311_v62 }
  0x8b   :  { %v3354_v56 = vpop.permute.xlu1 %150 }
  0x8c   :  { %5545 = vst [vmem:[#allocation20_spill] sm:$0xff] %v3354_v56  ;;  %v169_v59 = vmul.f32 %v165_v47, %v3354_v56  ;;  %v168_v9 = vmul.f32 %v161_v48, %v3354_v56  ;;  %v116_v35 = vadd.f32 %v112_v46, %v83_v54 }
  0x8e   :  { %v3358_v11 = vpop.permute.xlu0 %428  ;;  %v173_v38 = vadd.f32 %v169_v59, %v144_v57  ;;  %v172_v33 = vadd.f32 %v168_v9, %v143_v2  ;;  %v84_v57 = vmul.f32 %v78_v6, %v3313_v63  ;;  %v141_v9 = vmul.f32 %v132_v19, %v3341_v39 }
  0x8f   :  { %5546 = vst [vmem:[#allocation21_spill] sm:$0xff] %v3358_v11 }
  0x90   :  { %v3360_v26 = vpop.permute.xlu1 %178  ;;  %v117_v4 = vadd.f32 %v113_v55, %v84_v57  ;;  %v145_v41 = vadd.f32 %v141_v9, %v116_v35 }
  0x91   :  { %5547 = vst [vmem:[#allocation22_spill] sm:$0xff] %v3360_v26  ;;  %v187_v25 = vadd.f32 %v3360_v26, %v173_v38  ;;  %v186_v28 = vadd.f32 %v3360_v26, %v172_v33 }
  0x93   :  { %v3364_v31 = vpop.permute.xlu0 %242  ;;  %194 = vrot.lane.b32.xlu1 %v187_v25, %s3059_s30  ;;  %192 = vrot.lane.b32.xlu0 %v186_v28, %s3059_s30  ;;  %v3368_v24 = vadd.f32 %v187_v25, %v186_v28  ;;  %v2901_v25 = vld [vmem:[%s5361_s0 + $0x7] ss:$8 sm:$0x3]  ;;  %v142_v28 = vmul.f32 %v136_v21, %v3341_v39 }
  0x94   :  { %5548 = vst [vmem:[#allocation23_spill] sm:$0xff] %v3364_v31  ;;  %v3370_v32 = vpop.permute.xlu1 %183  ;;  %v3398_v60 = vrot.slane %v2901_v25, %v3278_v49 }
  0x95   :  { %5549 = vst [vmem:[#allocation24_spill] sm:$0xff] %v3368_v24  ;;  %5550 = vst [vmem:[#allocation25_spill] sm:$0xff] %v3370_v32  ;;  %v146_v27 = vadd.f32 %v142_v28, %v117_v4 }
  0x96   :  { %5555 = vst [vmem:[#allocation30_spill] sm:$0xff] %v3398_v60 }
  0x97   :  { %v3372_v37 = vpop.permute.xlu0 %473 }
  0x99   :  { %v3374_v44 = vpop.permute.xlu1 %219 }
  0x9a   :  { %5551 = vst [vmem:[#allocation26_spill] sm:$0xff] %v3374_v44 }
  0x9b   :  { %v3376_v45 = vpop.permute.xlu0 %665 }
  0x9c   :  { %5552 = vst [vmem:[#allocation27_spill] sm:$0xff] %v3376_v45 }
  0x9e   :  { %v3378_v38 = vpop.permute.xlu1 %288 }
  0x9f   :  { %v3380_v33 = vpop.permute.xlu0 %772 }
  0xa3   :  { %v3388_v59 = vpop.permute.xlu1 %322  ;;  %v3390_v2 = vpop.permute.xlu0 %831 }
  0xa4   :  { %5553 = vst [vmem:[#allocation28_spill] sm:$0xff] %v3388_v59  ;;  %5554 = vst [vmem:[#allocation29_spill] sm:$0xff] %v3390_v2 }
  0xa7   :  { %v3400_v3 = vpop.permute.xlu1 %365 }
  0xa8   :  { %v3402_v6 = vpop.permute.xlu0 %154 }
  0xa9   :  { %5556 = vst [vmem:[#allocation31_spill] sm:$0xff] %v3402_v6  ;;  %v1765_v19 = vmul.f32 %v3398_v60, %v3402_v6  ;;  %v170_v18 = vmul.f32 %v161_v48, %v3402_v6  ;;  %v171_v21 = vmul.f32 %v165_v47, %v3402_v6 }
  0xab   :  { %v3408_v46 = vpop.permute.xlu1 %404  ;;  %v174_v54 = vadd.f32 %v170_v18, %v145_v41  ;;  %v175_v25 = vadd.f32 %v171_v21, %v146_v27  ;;  %v3410_v20 = vadd.f32 %v1765_v19, %v1748_v51 }
  0xac   :  { %5557 = vst [vmem:[#allocation32_spill] sm:$0xff] %v3408_v46  ;;  %v3440_v21 = vpop.permute.xlu0 %914 }
  0xad   :  { %5558 = vst [vmem:[#allocation33_spill] sm:$0xff] %v3410_v20  ;;  %v188_v55 = vadd.f32 %v3370_v32, %v174_v54  ;;  %v189_v29 = vadd.f32 %v3370_v32, %v175_v25 }
  0xaf   :  { %v3414_v57 = vpop.permute.xlu1 %471  ;;  %526 = vrot.lane.b32.xlu1 %v188_v55, %s3060_s2  ;;  %v3417_v35 = vadd.f32 %v189_v29, %v188_v55 }
  0xb0   :  { %v3446_v55 = vpop.permute.xlu0 %939 }
  0xb1   :  { %5559 = vst [vmem:[#allocation34_spill] sm:$0xff] %v3417_v35 }
  0xb3   :  { %528 = vrot.lane.b32.xlu1 %v189_v29, %s3060_s2  ;;  %v3420_v47 = vpop.permute.xlu1 %553 }
  0xb4   :  { %5560 = vst [vmem:[#allocation35_spill] sm:$0xff] %v3420_v47 }
  0xb5   :  { %v3450_v40 = vpop.permute.xlu0 %973 }
  0xb6   :  { %5570 = vst [vmem:[#allocation45_spill] sm:$0xff] %v3450_v40 }
  0xb8   :  { %v3422_v48 = vpop.permute.xlu1 %575 }
  0xb9   :  { %5561 = vst [vmem:[#allocation36_spill] sm:$0xff] %v3422_v48 }
  0xba   :  { %v3454_v13 = vpop.permute.xlu0 %298 }
  0xbb   :  { %5572 = vst [vmem:[#allocation47_spill] sm:$0xff] %v3454_v13 }
  0xbd   :  { %v3424_v27 = vpop.permute.xlu1 %597 }
  0xbe   :  { %5562 = vst [vmem:[#allocation37_spill] sm:$0xff] %v3424_v27  ;;  %v3458_v30 = vpop.permute.xlu0 %1056 }
  0xc2   :  { %v3426_v41 = vpop.permute.xlu1 %620  ;;  %v3464_v10 = vpop.permute.xlu0 %1083 }
  0xc3   :  { %5563 = vst [vmem:[#allocation38_spill] sm:$0xff] %v3426_v41  ;;  %5575 = vst [vmem:[#allocation50_spill] sm:$0xff] %v3464_v10 }
  0xc7   :  { %v3428_v18 = vpop.permute.xlu1 %655 }
  0xcc   :  { %v3430_v51 = vpop.permute.xlu1 %689 }
  0xcd   :  { %5564 = vst [vmem:[#allocation39_spill] sm:$0xff] %v3430_v51 }
  0xd1   :  { %v3432_v9 = vpop.permute.xlu1 %713 }
  0xd2   :  { %5565 = vst [vmem:[#allocation40_spill] sm:$0xff] %v3432_v9 }
  0xd6   :  { %v3434_v28 = vpop.permute.xlu1 %737 }
  0xd7   :  { %5566 = vst [vmem:[#allocation41_spill] sm:$0xff] %v3434_v28 }
  0xda   :  { %v3436_v4 = vpop.permute.xlu1 %770 }
  0xde   :  { %v3438_v19 = vpop.permute.xlu1 %807 }
  0xdf   :  { %5567 = vst [vmem:[#allocation42_spill] sm:$0xff] %v3438_v19 }
  0xe3   :  { %v3442_v54 = vpop.permute.xlu1 %855 }
  0xe4   :  { %5568 = vst [vmem:[#allocation43_spill] sm:$0xff] %v3442_v54 }
  0xe8   :  { %v3444_v25 = vpop.permute.xlu1 %879 }
  0xe9   :  { %5569 = vst [vmem:[#allocation44_spill] sm:$0xff] %v3444_v25 }
  0xec   :  { %v3448_v29 = vpop.permute.xlu1 %912 }
  0xf0   :  { %v3452_v36 = vpop.permute.xlu1 %949 }
  0xf1   :  { %5571 = vst [vmem:[#allocation46_spill] sm:$0xff] %v3452_v36 }
  0xf5   :  { %v3456_v12 = vpop.permute.xlu1 %997 }
  0xf6   :  { %5573 = vst [vmem:[#allocation48_spill] sm:$0xff] %v3456_v12 }
  0xfa   :  { %v3460_v0 = vpop.permute.xlu1 %1021 }
  0xfb   :  { %5574 = vst [vmem:[#allocation49_spill] sm:$0xff] %v3460_v0 }
  0xfe   :  { %v3462_v1 = vpop.permute.xlu1 %1054 }
 0x102   :  { %v3466_v20 = vpop.permute.xlu1 %1093 }
 0x103   :  { %5576 = vst [vmem:[#allocation51_spill] sm:$0xff] %v3466_v20 }
 0x105   :  { %v193_v32 = vpop.permute.xlu0 %192 }
 0x106   :  { %201 = vst.msk [vmem:[#allocation2] sm:$0xff] %vm200_vm4, %v193_v32  ;;  %v195_v26 = vpop.permute.xlu1 %194 }
 0x107   :  { %v3470_v6 = vsel %vm51_vm0, %v193_v32, %v195_v26  ;;  %203 = vst.msk [vmem:[#allocation2 + $0x10] sm:$0xff] %vm51_vm0, %v195_v26 }
 0x108   :  { %202 = vst [vmem:[#allocation2 + $0x8] sm:$0xff] %v3470_v6 }
 0x10d   :  { %v3474_v39 = vld [vmem:[#allocation2] sm:$0xff] }
 0x10e   :  { %v222_v63 = vmul.f32 %v3374_v44, %v3474_v39  ;;  %v3478_v62 = vld [vmem:[#allocation2 + $0x10] sm:$0xff]  ;;  %v245_v56 = vmul.f32 %v3364_v31, %v3474_v39  ;;  %v325_v16 = vmul.f32 %v3388_v59, %v3474_v39 }
 0x10f   :  { %v247_v60 = vmul.f32 %v3364_v31, %v3478_v62  ;;  %v224_v26 = vmul.f32 %v3374_v44, %v3478_v62  ;;  %v303_v32 = vmul.f32 %v3454_v13, %v3478_v62 }
 0x110   :  { %228 = vrot.lane.b32.xlu1 %v222_v63, %s3061_s14  ;;  %v301_v63 = vmul.f32 %v3454_v13, %v3474_v39 }
 0x111   :  { %255 = vrot.lane.b32.xlu0 %v247_v60, %s3062_s15  ;;  %v327_v60 = vmul.f32 %v3388_v59, %v3478_v62 }
 0x114   :  { %232 = vrot.lane.b32.xlu1 %v224_v26, %s3061_s14  ;;  %v407_v26 = vmul.f32 %v3408_v46, %v3474_v39 }
 0x115   :  { %311 = vrot.lane.b32.xlu0 %v303_v32, %s3061_s14  ;;  %v433_v32 = vmul.f32 %v3358_v11, %v3478_v62 }
 0x118   :  { %251 = vrot.lane.b32.xlu1 %v245_v56, %s3062_s15  ;;  %v5399_v56 = vmov 14  }
 0x119   :  { %331 = vrot.lane.b32.xlu0 %v325_v16, %s3062_s15 }
 0x11a   :  { %2983 = vset.pattern.permute.xlu0 %v5399_v56  ;;  %v431_v56 = vmul.f32 %v3358_v11, %v3474_v39 }
 0x11c   :  { %307 = vrot.lane.b32.xlu1 %v301_v63, %s3061_s14  ;;  %v409_v63 = vmul.f32 %v3408_v46, %v3478_v62 }
 0x11d   :  { %335 = vrot.lane.b32.xlu0 %v327_v60, %s3062_s15 }
 0x120   :  { %413 = vrot.lane.b32.xlu1 %v407_v26, %s3061_s14 }
 0x121   :  { %v527_v16 = vpop.permute.xlu1 %526  ;;  %441 = vrot.lane.b32.xlu0 %v433_v32, %s3062_s15 }
 0x122   :  { %535 = vst.msk [vmem:[#allocation3] sm:$0xff] %vm534_vm5, %v527_v16 }
 0x124   :  { %417 = vrot.lane.b32.xlu1 %v409_v63, %s3061_s14 }
 0x125   :  { %v529_v60 = vpop.permute.xlu1 %528 }
 0x126   :  { %v3514_v43 = vsel %vm55_vm2, %v527_v16, %v529_v60  ;;  %537 = vst.msk [vmem:[#allocation3 + $0x10] sm:$0xff] %vm55_vm2, %v529_v60 }
 0x127   :  { %5577 = vst [vmem:[#allocation52_spill] sm:$0xff] %v3514_v43  ;;  %536 = vst [vmem:[#allocation3 + $0x8] sm:$0xff] %v3514_v43 }
 0x128   :  { %437 = vrot.lane.b32.xlu1 %v431_v56, %s3062_s15 }
 0x129   :  { %v3521_v26 = vld [vmem:[#allocation3] sm:$0xff] }
 0x12a   :  { %5578 = vst [vmem:[#allocation53_spill] sm:$0xff] %v3521_v26  ;;  %v556_v32 = vmul.f32 %v3420_v47, %v3521_v26  ;;  %v668_v63 = vmul.f32 %v3376_v45, %v3521_v26  ;;  %v810_v56 = vmul.f32 %v3438_v19, %v3521_v26  ;;  %v578_v61 = vmul.f32 %v3422_v48, %v3521_v26 }
 0x12b   :  { %v834_v52 = vmul.f32 %v3390_v2, %v3521_v26 }
 0x12c   :  { %562 = vrot.lane.b32.xlu0 %v556_v32, %s3061_s14  ;;  %674 = vrot.lane.b32.xlu1 %v668_v63, %s3061_s14 }
 0x12d   :  { %v3529_v16 = vld [vmem:[#allocation3 + $0x10] sm:$0xff] }
 0x12e   :  { %v558_v60 = vmul.f32 %v3420_v47, %v3529_v16  ;;  %v812_v32 = vmul.f32 %v3438_v19, %v3529_v16  ;;  %v580_v63 = vmul.f32 %v3422_v48, %v3529_v16 }
 0x130   :  { %566 = vrot.lane.b32.xlu0 %v558_v60, %s3061_s14  ;;  %816 = vrot.lane.b32.xlu1 %v810_v56, %s3061_s14  ;;  %v600_v60 = vmul.f32 %v3424_v27, %v3521_v26  ;;  %v952_v56 = vmul.f32 %v3452_v36, %v3521_v26 }
 0x134   :  { %584 = vrot.lane.b32.xlu0 %v578_v61, %s3062_s15  ;;  %820 = vrot.lane.b32.xlu1 %v812_v32, %s3061_s14  ;;  %v602_v61 = vmul.f32 %v3424_v27, %v3529_v16  ;;  %v954_v32 = vmul.f32 %v3452_v36, %v3529_v16 }
 0x138   :  { %588 = vrot.lane.b32.xlu0 %v580_v63, %s3062_s15  ;;  %840 = vrot.lane.b32.xlu1 %v834_v52, %s3062_s15  ;;  %v623_v52 = vmul.f32 %v3426_v41, %v3521_v26  ;;  %v976_v63 = vmul.f32 %v3450_v40, %v3521_v26 }
 0x13c   :  { %606 = vrot.lane.b32.xlu0 %v600_v60, %s3064_s16  ;;  %958 = vrot.lane.b32.xlu1 %v952_v56, %s3061_s14  ;;  %v625_v60 = vmul.f32 %v3426_v41, %v3529_v16  ;;  %v1096_v56 = vmul.f32 %v3466_v20, %v3521_v26 }
 0x140   :  { %610 = vrot.lane.b32.xlu0 %v602_v61, %s3064_s16  ;;  %962 = vrot.lane.b32.xlu1 %v954_v32, %s3061_s14  ;;  %v670_v61 = vmul.f32 %v3376_v45, %v3529_v16  ;;  %v246_v32 = vmul.f32 %v3364_v31, %v3470_v6 }
 0x144   :  { %629 = vrot.lane.b32.xlu0 %v623_v52, %s3065_s17  ;;  %982 = vrot.lane.b32.xlu1 %v976_v63, %s3062_s15  ;;  %v692_v52 = vmul.f32 %v3430_v51, %v3521_v26  ;;  %v302_v63 = vmul.f32 %v3454_v13, %v3470_v6 }
 0x148   :  { %633 = vrot.lane.b32.xlu0 %v625_v60, %s3065_s17  ;;  %1102 = vrot.lane.b32.xlu1 %v1096_v56, %s3061_s14  ;;  %v694_v60 = vmul.f32 %v3430_v51, %v3529_v16  ;;  %v326_v56 = vmul.f32 %v3388_v59, %v3470_v6 }
 0x14c   :  { %678 = vrot.lane.b32.xlu0 %v670_v61, %s3061_s14  ;;  %253 = vrot.lane.b32.xlu1 %v246_v32, %s3062_s15  ;;  %v716_v61 = vmul.f32 %v3432_v9, %v3521_v26  ;;  %v432_v32 = vmul.f32 %v3358_v11, %v3470_v6 }
 0x150   :  { %698 = vrot.lane.b32.xlu0 %v692_v52, %s3062_s15  ;;  %309 = vrot.lane.b32.xlu1 %v302_v63, %s3061_s14  ;;  %v718_v52 = vmul.f32 %v3432_v9, %v3529_v16  ;;  %v557_v63 = vmul.f32 %v3420_v47, %v3514_v43 }
 0x154   :  { %702 = vrot.lane.b32.xlu0 %v694_v60, %s3062_s15  ;;  %333 = vrot.lane.b32.xlu1 %v326_v56, %s3062_s15  ;;  %v740_v60 = vmul.f32 %v3434_v28, %v3521_v26  ;;  %v579_v56 = vmul.f32 %v3422_v48, %v3514_v43 }
 0x158   :  { %722 = vrot.lane.b32.xlu0 %v716_v61, %s3064_s16  ;;  %439 = vrot.lane.b32.xlu1 %v432_v32, %s3062_s15  ;;  %v742_v61 = vmul.f32 %v3434_v28, %v3529_v16  ;;  %v601_v32 = vmul.f32 %v3424_v27, %v3514_v43 }
 0x15c   :  { %726 = vrot.lane.b32.xlu0 %v718_v52, %s3064_s16  ;;  %564 = vrot.lane.b32.xlu1 %v557_v63, %s3061_s14  ;;  %v836_v52 = vmul.f32 %v3390_v2, %v3529_v16  ;;  %v624_v63 = vmul.f32 %v3426_v41, %v3514_v43 }
 0x160   :  { %746 = vrot.lane.b32.xlu0 %v740_v60, %s3065_s17  ;;  %586 = vrot.lane.b32.xlu1 %v579_v56, %s3062_s15  ;;  %v858_v60 = vmul.f32 %v3442_v54, %v3521_v26  ;;  %v669_v56 = vmul.f32 %v3376_v45, %v3514_v43 }
 0x164   :  { %750 = vrot.lane.b32.xlu0 %v742_v61, %s3065_s17  ;;  %608 = vrot.lane.b32.xlu1 %v601_v32, %s3064_s16  ;;  %v860_v61 = vmul.f32 %v3442_v54, %v3529_v16  ;;  %v693_v32 = vmul.f32 %v3430_v51, %v3514_v43 }
 0x168   :  { %844 = vrot.lane.b32.xlu0 %v836_v52, %s3062_s15  ;;  %631 = vrot.lane.b32.xlu1 %v624_v63, %s3065_s17  ;;  %v882_v52 = vmul.f32 %v3444_v25, %v3521_v26  ;;  %v717_v63 = vmul.f32 %v3432_v9, %v3514_v43 }
 0x16c   :  { %864 = vrot.lane.b32.xlu0 %v858_v60, %s3064_s16  ;;  %676 = vrot.lane.b32.xlu1 %v669_v56, %s3061_s14  ;;  %v884_v60 = vmul.f32 %v3444_v25, %v3529_v16  ;;  %v741_v56 = vmul.f32 %v3434_v28, %v3514_v43 }
 0x170   :  { %868 = vrot.lane.b32.xlu0 %v860_v61, %s3064_s16  ;;  %700 = vrot.lane.b32.xlu1 %v693_v32, %s3062_s15  ;;  %v978_v61 = vmul.f32 %v3450_v40, %v3529_v16  ;;  %v835_v32 = vmul.f32 %v3390_v2, %v3514_v43 }
 0x174   :  { %888 = vrot.lane.b32.xlu0 %v882_v52, %s3065_s17  ;;  %724 = vrot.lane.b32.xlu1 %v717_v63, %s3064_s16  ;;  %v1000_v52 = vmul.f32 %v3456_v12, %v3521_v26  ;;  %v859_v63 = vmul.f32 %v3442_v54, %v3514_v43 }
 0x178   :  { %892 = vrot.lane.b32.xlu0 %v884_v60, %s3065_s17  ;;  %748 = vrot.lane.b32.xlu1 %v741_v56, %s3065_s17  ;;  %v1002_v60 = vmul.f32 %v3456_v12, %v3529_v16  ;;  %v883_v56 = vmul.f32 %v3444_v25, %v3514_v43 }
 0x17c   :  { %986 = vrot.lane.b32.xlu0 %v978_v61, %s3062_s15  ;;  %842 = vrot.lane.b32.xlu1 %v835_v32, %s3062_s15  ;;  %v1024_v61 = vmul.f32 %v3460_v0, %v3521_v26  ;;  %v977_v32 = vmul.f32 %v3450_v40, %v3514_v43 }
 0x180   :  { %1006 = vrot.lane.b32.xlu0 %v1000_v52, %s3064_s16  ;;  %866 = vrot.lane.b32.xlu1 %v859_v63, %s3064_s16  ;;  %v1026_v63 = vmul.f32 %v3460_v0, %v3529_v16 }
 0x183   :  { %v3661_v41 = vpop.permute.xlu0 %255 }
 0x184   :  { %5579 = vst [vmem:[#allocation54_spill] sm:$0xff] %v3661_v41  ;;  %1010 = vrot.lane.b32.xlu0 %v1002_v60, %s3064_s16  ;;  %890 = vrot.lane.b32.xlu1 %v883_v56, %s3065_s17  ;;  %v1001_v60 = vmul.f32 %v3456_v12, %v3514_v43  ;;  %v1025_v41 = vmul.f32 %v3460_v0, %v3514_v43 }
 0x187   :  { %v3669_v52 = vpop.permute.xlu0 %311 }
 0x188   :  { %1030 = vrot.lane.b32.xlu0 %v1024_v61, %s3065_s17  ;;  %984 = vrot.lane.b32.xlu1 %v977_v32, %s3062_s15  ;;  %v223_v61 = vmul.f32 %v3374_v44, %v3470_v6  ;;  %v1098_v32 = vmul.f32 %v3466_v20, %v3529_v16 }
 0x18b   :  { %v3679_v56 = vpop.permute.xlu0 %331 }
 0x18c   :  { %1034 = vrot.lane.b32.xlu0 %v1026_v63, %s3065_s17  ;;  %1008 = vrot.lane.b32.xlu1 %v1001_v60, %s3064_s16  ;;  %5580 = vst [vmem:[#allocation55_spill] sm:$0xff] %v3679_v56  ;;  %v408_v63 = vmul.f32 %v3408_v46, %v3470_v6  ;;  %v811_v60 = vmul.f32 %v3438_v19, %v3514_v43 }
 0x18f   :  { %v3691_v27 = vpop.permute.xlu0 %335 }
 0x190   :  { %1032 = vrot.lane.b32.xlu1 %v1025_v41, %s3065_s17  ;;  %230 = vrot.lane.b32.xlu0 %v223_v61, %s3061_s14  ;;  %v953_v61 = vmul.f32 %v3452_v36, %v3514_v43 }
 0x193   :  { %v3698_v41 = vpop.permute.xlu0 %441 }
 0x194   :  { %1106 = vrot.lane.b32.xlu1 %v1098_v32, %s3061_s14  ;;  %415 = vrot.lane.b32.xlu0 %v408_v63, %s3061_s14  ;;  %v1097_v32 = vmul.f32 %v3466_v20, %v3514_v43  ;;  %v3066_v63 = vmov 19  }
 0x195   :  { %2985 = vset.pattern.permute.xlu1 %v3066_v63 }
 0x198   :  { %818 = vrot.lane.b32.xlu0 %v811_v60, %s3061_s14  ;;  %v5583_v60 = vmov 2  }
 0x19c   :  { %960 = vrot.lane.b32.xlu0 %v953_v61, %s3061_s14 }
 0x19e   :  { %v3703_v48 = vpop.permute.xlu0 %562 }
 0x19f   :  { %5581 = vst [vmem:[#allocation56_spill] sm:$0xff] %v3703_v48 }
 0x1a0   :  { %1117 = vperm.xlu0 %2983, %v3202_v22  }
 0x1a2   :  { %v3706_v47 = vpop.permute.xlu0 %566 }
 0x1a3   :  { %5582 = vst [vmem:[#allocation57_spill] sm:$0xff] %v3706_v47 }
 0x1a4   :  { %1104 = vrot.lane.b32.xlu0 %v1097_v32, %s3061_s14 }
 0x1a5   :  { %2984 = vset.pattern.permute.xlu0 %v5583_v60 }
 0x1a6   :  { %v3712_v0 = vpop.permute.xlu0 %584 }
 0x1a7   :  { %5584 = vst [vmem:[#allocation58_spill] sm:$0xff] %v3712_v0 }
 0x1a8   :  { %394 = vperm.xlu0 %2984, %v3176_v14   ;;  %v3734_v14 = vpop.permute.xlu1 %228 }
 0x1a9   :  { %5592 = vst [vmem:[#allocation66_spill] sm:$0xff] %v3734_v14 }
 0x1aa   :  { %v3715_v61 = vpop.permute.xlu0 %588 }
 0x1ab   :  { %5585 = vst [vmem:[#allocation59_spill] sm:$0xff] %v3715_v61 }
 0x1ac   :  { %797 = vperm.xlu0 %2984, %v3202_v22  }
 0x1ae   :  { %v3718_v48 = vpop.permute.xlu0 %606 }
 0x1af   :  { %5586 = vst [vmem:[#allocation60_spill] sm:$0xff] %v3718_v48  ;;  %v3740_v48 = vpop.permute.xlu1 %232 }
 0x1b0   :  { %5594 = vst [vmem:[#allocation68_spill] sm:$0xff] %v3740_v48 }
 0x1b2   :  { %v3720_v47 = vpop.permute.xlu0 %610 }
 0x1b3   :  { %5587 = vst [vmem:[#allocation61_spill] sm:$0xff] %v3720_v47 }
 0x1b6   :  { %v3722_v12 = vpop.permute.xlu0 %629 }
 0x1b7   :  { %5588 = vst [vmem:[#allocation62_spill] sm:$0xff] %v3722_v12  ;;  %v3744_v12 = vpop.permute.xlu1 %251 }
 0x1b8   :  { %5595 = vst [vmem:[#allocation69_spill] sm:$0xff] %v3744_v12 }
 0x1ba   :  { %v3724_v25 = vpop.permute.xlu0 %633 }
 0x1bb   :  { %5589 = vst [vmem:[#allocation63_spill] sm:$0xff] %v3724_v25  ;;  %v3750_v54 = vpop.permute.xlu1 %307 }
 0x1be   :  { %v3726_v32 = vpop.permute.xlu0 %678 }
 0x1bf   :  { %v3754_v36 = vpop.permute.xlu1 %413 }
 0x1c0   :  { %5597 = vst [vmem:[#allocation71_spill] sm:$0xff] %v3754_v36 }
 0x1c2   :  { %v3728_v63 = vpop.permute.xlu0 %698 }
 0x1c3   :  { %5590 = vst [vmem:[#allocation64_spill] sm:$0xff] %v3728_v63  ;;  %v3760_v9 = vpop.permute.xlu1 %417 }
 0x1c6   :  { %v3730_v60 = vpop.permute.xlu0 %702 }
 0x1c7   :  { %v3764_v19 = vpop.permute.xlu1 %437 }
 0x1c8   :  { %5599 = vst [vmem:[#allocation73_spill] sm:$0xff] %v3764_v19 }
 0x1ca   :  { %v3732_v0 = vpop.permute.xlu0 %722 }
 0x1cb   :  { %5591 = vst [vmem:[#allocation65_spill] sm:$0xff] %v3732_v0  ;;  %v3770_v45 = vpop.permute.xlu1 %674 }
 0x1cc   :  { %5601 = vst [vmem:[#allocation75_spill] sm:$0xff] %v3770_v45 }
 0x1ce   :  { %v3736_v61 = vpop.permute.xlu0 %726 }
 0x1cf   :  { %v3774_v46 = vpop.permute.xlu1 %816 }
 0x1d0   :  { %5603 = vst [vmem:[#allocation77_spill] sm:$0xff] %v3774_v46 }
 0x1d2   :  { %v3738_v20 = vpop.permute.xlu0 %746 }
 0x1d3   :  { %5593 = vst [vmem:[#allocation67_spill] sm:$0xff] %v3738_v20  ;;  %v3778_v13 = vpop.permute.xlu1 %820 }
 0x1d6   :  { %v3742_v47 = vpop.permute.xlu0 %750 }
 0x1d7   :  { %v3782_v44 = vpop.permute.xlu1 %840 }
 0x1d8   :  { %5605 = vst [vmem:[#allocation79_spill] sm:$0xff] %v3782_v44 }
 0x1da   :  { %v3746_v25 = vpop.permute.xlu0 %844 }
 0x1db   :  { %v3786_v50 = vpop.permute.xlu1 %958 }
 0x1dc   :  { %5606 = vst [vmem:[#allocation80_spill] sm:$0xff] %v3786_v50 }
 0x1de   :  { %v3748_v40 = vpop.permute.xlu0 %864 }
 0x1df   :  { %5596 = vst [vmem:[#allocation70_spill] sm:$0xff] %v3748_v40  ;;  %v3790_v15 = vpop.permute.xlu1 %962 }
 0x1e2   :  { %v3752_v28 = vpop.permute.xlu0 %868 }
 0x1e3   :  { %v3794_v34 = vpop.permute.xlu1 %982 }
 0x1e4   :  { %5609 = vst [vmem:[#allocation83_spill] sm:$0xff] %v3794_v34 }
 0x1e6   :  { %v3756_v14 = vpop.permute.xlu0 %888 }
 0x1e7   :  { %5598 = vst [vmem:[#allocation72_spill] sm:$0xff] %v3756_v14  ;;  %v3806_v35 = vpop.permute.xlu1 %1102 }
 0x1e8   :  { %5611 = vst [vmem:[#allocation85_spill] sm:$0xff] %v3806_v35 }
 0x1ea   :  { %v3758_v2 = vpop.permute.xlu0 %892 }
 0x1ee   :  { %v3762_v48 = vpop.permute.xlu0 %986 }
 0x1f2   :  { %v3766_v12 = vpop.permute.xlu0 %1006 }
 0x1f3   :  { %5600 = vst [vmem:[#allocation74_spill] sm:$0xff] %v3766_v12  ;;  %v3067_v12 = vmov 24  }
 0x1f6   :  { %v3768_v51 = vpop.permute.xlu0 %1010 }
 0x1fa   :  { %v3772_v11 = vpop.permute.xlu0 %1030 }
 0x1fb   :  { %5602 = vst [vmem:[#allocation76_spill] sm:$0xff] %v3772_v11  ;;  %v3810_v11 = vpop.permute.xlu1 %253 }
 0x1fc   :  { %5612 = vst [vmem:[#allocation86_spill] sm:$0xff] %v3810_v11 }
 0x1fe   :  { %v3776_v59 = vpop.permute.xlu0 %1034 }
 0x1ff   :  { %v3812_v14 = vpop.permute.xlu1 %309 }
 0x202   :  { %v3780_v31 = vpop.permute.xlu0 %230 }
 0x203   :  { %5604 = vst [vmem:[#allocation78_spill] sm:$0xff] %v3780_v31  ;;  %v3814_v34 = vpop.permute.xlu1 %333 }
 0x206   :  { %v3784_v58 = vpop.permute.xlu0 %415 }
 0x20a   :  { %v3788_v49 = vpop.permute.xlu0 %818 }
 0x20b   :  { %5607 = vst [vmem:[#allocation81_spill] sm:$0xff] %v3788_v49 }
 0x20e   :  { %v3792_v7 = vpop.permute.xlu0 %960 }
 0x20f   :  { %5608 = vst [vmem:[#allocation82_spill] sm:$0xff] %v3792_v7 }
 0x21b   :  { %v3796_v8 = vpop.permute.xlu0 %1117 }
 0x21c   :  { %5610 = vst [vmem:[#allocation84_spill] sm:$0xff] %v3796_v8  ;;  %v1122_v17 = vmul.f32 %v3796_v8, %v3529_v16  ;;  %v1120_v31 = vmul.f32 %v3796_v8, %v3521_v26  ;;  %v1121_v24 = vmul.f32 %v3796_v8, %v3514_v43 }
 0x21e   :  { %1130 = vrot.lane.b32.xlu0 %v1122_v17, %s3062_s15  ;;  %1126 = vrot.lane.b32.xlu1 %v1120_v31, %s3062_s15  ;;  %v3816_v17 = vpop.permute.xlu1 %439 }
 0x222   :  { %1128 = vrot.lane.b32.xlu1 %v1121_v24, %s3062_s15  ;;  %v3818_v31 = vpop.permute.xlu1 %564 }
 0x223   :  { %5613 = vst [vmem:[#allocation87_spill] sm:$0xff] %v3818_v31 }
 0x226   :  { %1141 = vperm.xlu1 %2985, %v3202_v22   ;;  %v3820_v40 = vpop.permute.xlu1 %586 }
 0x227   :  { %5614 = vst [vmem:[#allocation88_spill] sm:$0xff] %v3820_v40 }
 0x22a   :  { %2986 = vset.pattern.permute.xlu1 %v3067_v12  ;;  %v3822_v8 = vpop.permute.xlu1 %608 }
 0x22b   :  { %5615 = vst [vmem:[#allocation89_spill] sm:$0xff] %v3822_v8 }
 0x22e   :  { %v3824_v35 = vpop.permute.xlu1 %631 }
 0x22f   :  { %5616 = vst [vmem:[#allocation90_spill] sm:$0xff] %v3824_v35 }
 0x232   :  { %v3826_v24 = vpop.permute.xlu1 %676 }
 0x233   :  { %5617 = vst [vmem:[#allocation91_spill] sm:$0xff] %v3826_v24 }
 0x236   :  { %v3828_v44 = vpop.permute.xlu1 %700 }
 0x237   :  { %5618 = vst [vmem:[#allocation92_spill] sm:$0xff] %v3828_v44 }
 0x23a   :  { %v3830_v11 = vpop.permute.xlu1 %724 }
 0x23b   :  { %5619 = vst [vmem:[#allocation93_spill] sm:$0xff] %v3830_v11 }
 0x23e   :  { %v3832_v12 = vpop.permute.xlu1 %748 }
 0x242   :  { %v3834_v20 = vpop.permute.xlu1 %842 }
 0x246   :  { %v3836_v0 = vpop.permute.xlu1 %866 }
 0x24a   :  { %v3838_v50 = vpop.permute.xlu1 %890 }
 0x24e   :  { %v3840_v31 = vpop.permute.xlu1 %984 }
 0x252   :  { %v3842_v40 = vpop.permute.xlu1 %1008 }
 0x256   :  { %v3844_v8 = vpop.permute.xlu1 %1032 }
 0x25a   :  { %v3846_v35 = vpop.permute.xlu1 %1106 }
 0x25b   :  { %5620 = vst [vmem:[#allocation94_spill] sm:$0xff] %v3846_v35  ;;  %v3868_v35 = vsub.s32 4, %v3152_v5 }
 0x25d   :  { %5626 = vst [vmem:[#allocation99_spill] sm:$0xff] %v3868_v35 }
 0x290   :  { %v3848_v63 = vpop.permute.xlu1 %1126 }
 0x291   :  { %5621 = vst [vmem:[#allocation95_spill] sm:$0xff] %v3848_v63  ;;  %v5624_v63 = vmov 0  }
 0x294   :  { %v3850_v46 = vpop.permute.xlu1 %1128 }
 0x295   :  { %5622 = vst [vmem:[#allocation96_spill] sm:$0xff] %v3850_v46 }
 0x2a1   :  { %v3852_v10 = vpop.permute.xlu1 %1141 }
 0x2a2   :  { %5623 = vst [vmem:[#allocation97_spill] sm:$0xff] %v3852_v10  ;;  %v1145_v45 = vmul.f32 %v3852_v10, %v3514_v43  ;;  %v1144_v19 = vmul.f32 %v3852_v10, %v3521_v26  ;;  %v1146_v36 = vmul.f32 %v3852_v10, %v3529_v16  ;;  %v1195_v10 = vrot.slane %v3207_v23, %v3868_v35 }
 0x2a3   :  { %v5631_v23 = vmov 3  }
 0x2a4   :  { %1152 = vrot.lane.b32.xlu1 %v1145_v45, %s3064_s16  ;;  %1150 = vrot.lane.b32.xlu0 %v1144_v19, %s3064_s16 }
 0x2a8   :  { %1165 = vperm.xlu1 %2986, %v3202_v22   ;;  %1154 = vrot.lane.b32.xlu0 %v1146_v36, %s3064_s16  ;;  %v1191_v22 = vrot.slane %v3261_v42, %v3868_v35  ;;  %v5629_v42 = vmov 1  }
 0x2ac   :  { %2987 = vset.pattern.permute.xlu1 %v5624_v63  ;;  %v3888_v63 = vld [vmem:[%s5362_s9] sm:$0xf] }
 0x316   :  { %v3865_v46 = vpop.permute.xlu1 %1152 }
 0x317   :  { %5625 = vst [vmem:[#allocation98_spill] sm:$0xff] %v3865_v46  ;;  %v5635_v46 = vmov 6  }
 0x323   :  { %v3870_v56 = vpop.permute.xlu1 %1165 }
 0x324   :  { %5627 = vst [vmem:[#allocation100_spill] sm:$0xff] %v3870_v56  ;;  %v1169_v45 = vmul.f32 %v3870_v56, %v3514_v43  ;;  %v1168_v19 = vmul.f32 %v3870_v56, %v3521_v26  ;;  %v1170_v36 = vmul.f32 %v3870_v56, %v3529_v16  ;;  %v5634_v56 = vmov 11  }
 0x325   :  { %v681_v26 = vsel %vm234_vm6, %v3826_v24, %v3726_v32  ;;  %v965_v24 = vsel %vm234_vm6, %v3792_v7, %v3790_v15 }
 0x326   :  { %1176 = vrot.lane.b32.xlu1 %v1169_v45, %s3065_s17  ;;  %1174 = vrot.lane.b32.xlu0 %v1168_v19, %s3065_s17  ;;  %v3891_v45 = vpop.permute.xlu0 %1104  ;;  %v5630_v19 = vmov 5  }
 0x327   :  { %5628 = vst [vmem:[#allocation101_spill] sm:$0xff] %v3891_v45 }
 0x32a   :  { %1198 = vrot.lane.b32.xlu1 %v1191_v22, %s3068_s18  ;;  %1178 = vrot.lane.b32.xlu0 %v1170_v36, %s3065_s17  ;;  %v3897_v22 = vpop.permute.xlu0 %394  ;;  %v5633_v36 = vmov 4  }
 0x32b   :  { %v398_v5 = vmul.f32 %v3897_v22, %v3470_v6 }
 0x32e   :  { %1253 = vperm.xlu1 %2987, %v3888_v63   ;;  %1200 = vrot.lane.b32.xlu0 %v1195_v10, %s3068_s18  ;;  %v5632_v10 = vmov 8   ;;  %s3080_s18 = smov 116  }
 0x332   :  { %2988 = vset.pattern.permute.xlu1 %v5629_v42  ;;  %1285 = vperm.xlu0 %2984, %v3888_v63   ;;  %v3905_v42 = vpop.permute.xlu0 %797 }
 0x333   :  { %1269 = vperm.xlu1 %2988, %v3888_v63  }
 0x336   :  { %2991 = vset.pattern.permute.xlu0 %v5630_v19  ;;  %v314_v19 = vsel %vm234_vm6, %v3812_v14, %v3669_v52 }
 0x337   :  { %2989 = vset.pattern.permute.xlu1 %v5631_v23  ;;  %1333 = vperm.xlu0 %2991, %v3888_v63   ;;  %v292_v23 = vmul.f32 %v3378_v38, %v3470_v6  ;;  %v823_v6 = vsel %vm234_vm6, %v3788_v49, %v3778_v13  ;;  %v5637_v49 = vmov 14  }
 0x338   :  { %1301 = vperm.xlu1 %2989, %v3888_v63  }
 0x339   :  { %v319_v35 = vadd.f32 %v314_v19, %v292_v23 }
 0x33b   :  { %2994 = vset.pattern.permute.xlu0 %v5632_v10  ;;  %v338_v10 = vsel %vm257_vm7, %v3814_v34, %v3691_v27 }
 0x33c   :  { %2990 = vset.pattern.permute.xlu1 %v5633_v36  ;;  %1381 = vperm.xlu0 %2994, %v3888_v63   ;;  %v801_v36 = vmul.f32 %v3905_v42, %v3514_v43  ;;  %v343_v45 = vadd.f32 %v338_v10, %v319_v35  ;;  %v3938_v35 = vsel %vm369_vm8, %v3400_v3, %v3352_v53 }
 0x33d   :  { %1317 = vperm.xlu1 %2990, %v3888_v63   ;;  %5636 = vst [vmem:[#allocation102_spill] sm:$0xff] %v3938_v35  ;;  %v705_v10 = vsel %vm257_vm7, %v3828_v44, %v3730_v60  ;;  %v444_v44 = vsel %vm257_vm7, %v3816_v17, %v3698_v41 }
 0x33e   :  { %v828_v23 = vadd.f32 %v823_v6, %v801_v36  ;;  %v943_v36 = vmul.f32 %v3446_v55, %v3514_v43  ;;  %v375_v6 = vmul.f32 %v3938_v35, %v343_v45  ;;  %v753_v45 = vsel %vm635_vm11, %v3832_v12, %v3742_v47 }
 0x340   :  { %2997 = vset.pattern.permute.xlu0 %v5634_v56  ;;  %v420_v56 = vsel %vm234_vm6, %v3784_v58, %v3760_v9 }
 0x341   :  { %2992 = vset.pattern.permute.xlu1 %v5635_v46  ;;  %1429 = vperm.xlu0 %2997, %v3888_v63   ;;  %v659_v46 = vmul.f32 %v3428_v18, %v3514_v43  ;;  %v425_v19 = vadd.f32 %v420_v56, %v398_v5  ;;  %v5638_v56 = vmov 7  }
 0x342   :  { %1349 = vperm.xlu1 %2992, %v3888_v63  }
 0x343   :  { %v686_v5 = vadd.f32 %v681_v26, %v659_v46  ;;  %v847_v26 = vsel %vm257_vm7, %v3834_v20, %v3746_v25  ;;  %v449_v7 = vadd.f32 %v444_v44, %v425_v19  ;;  %v989_v44 = vsel %vm257_vm7, %v3840_v31, %v3762_v48 }
 0x344   :  { %v852_v43 = vadd.f32 %v847_v26, %v828_v23  ;;  %v5640_v19 = vmov 16   ;;  %v895_v26 = vsel %vm635_vm11, %v3838_v50, %v3758_v2 }
 0x345   :  { %3000 = vset.pattern.permute.xlu0 %v5637_v49  ;;  %v729_v49 = vsel %vm612_vm10, %v3830_v11, %v3736_v61  ;;  %v710_v46 = vadd.f32 %v705_v10, %v686_v5  ;;  %v3969_v11 = vsel %vm475_vm9, %v3414_v57, %v3372_v37  ;;  %v871_v10 = vsel %vm612_vm10, %v3836_v0, %v3752_v28 }
 0x346   :  { %2993 = vset.pattern.permute.xlu1 %v5638_v56  ;;  %1477 = vperm.xlu0 %3000, %v3888_v63   ;;  %v970_v56 = vadd.f32 %v965_v24, %v943_v36  ;;  %v5639_v24 = vmov 9   ;;  %v481_v36 = vmul.f32 %v3969_v11, %v449_v7 }
 0x347   :  { %1365 = vperm.xlu1 %2993, %v3888_v63   ;;  %v734_v35 = vadd.f32 %v729_v49, %v710_v46  ;;  %v3985_v49 = vsel %vm369_vm8, %v3436_v4, %v3380_v33 }
 0x348   :  { %v994_v5 = vadd.f32 %v989_v44, %v970_v56 }
 0x349   :  { %v758_v23 = vadd.f32 %v753_v45, %v734_v35  ;;  %v1013_v35 = vsel %vm612_vm10, %v3842_v40, %v3768_v51  ;;  %v4000_v45 = vsel %vm475_vm9, %v3448_v29, %v3440_v21 }
 0x34a   :  { %382 = vrot.lane.b32.xlu0 %v375_v6, %s3069_s21  ;;  %v876_v6 = vadd.f32 %v871_v10, %v852_v43  ;;  %v1018_v7 = vadd.f32 %v1013_v35, %v994_v5  ;;  %v5641_v43 = vmov 10   ;;  %v1037_v10 = vsel %vm635_vm11, %v3844_v8, %v3776_v59 }
 0x34b   :  { %2995 = vset.pattern.permute.xlu1 %v5639_v24  ;;  %3002 = vset.pattern.permute.xlu0 %v5640_v19  ;;  %v779_v46 = vmul.f32 %v3985_v49, %v758_v23  ;;  %v5642_v23 = vmov 12   ;;  %v4011_v5 = vsel %vm1058_vm12, %v3462_v1, %v3458_v30  ;;  %v399_v35 = vmul.f32 %v3897_v22, %v3478_v62 }
 0x34c   :  { %1397 = vperm.xlu1 %2995, %v3888_v63   ;;  %v900_v56 = vadd.f32 %v895_v26, %v876_v6  ;;  %v1042_v24 = vadd.f32 %v1037_v10, %v1018_v7  ;;  %v293_v6 = vmul.f32 %v3378_v38, %v3478_v62  ;;  %v5643_v26 = vmov 13  }
 0x34d   :  { %v291_v10 = vmul.f32 %v3378_v38, %v3474_v39 }
 0x34e   :  { %488 = vrot.lane.b32.xlu0 %v481_v36, %s3070_s22  ;;  %v921_v44 = vmul.f32 %v4000_v45, %v900_v56  ;;  %v1064_v36 = vmul.f32 %v4011_v5, %v1042_v24  ;;  %v5644_v56 = vmov 15   ;;  %v5645_v24 = vld [vmem:[#allocation55_spill] sm:$0xff] }
 0x350   :  { %2996 = vset.pattern.permute.xlu1 %v5641_v43  ;;  %v426_v43 = vadd.f32 %v3760_v9, %v399_v35  ;;  %v397_v9 = vmul.f32 %v3897_v22, %v3474_v39 }
 0x351   :  { %1413 = vperm.xlu1 %2996, %v3888_v63  }
 0x352   :  { %786 = vrot.lane.b32.xlu0 %v779_v46, %s3069_s21  ;;  %v320_v46 = vadd.f32 %v3669_v52, %v293_v6  ;;  %v802_v52 = vmul.f32 %v3905_v42, %v3529_v16 }
 0x354   :  { %v344_v7 = vadd.f32 %v3691_v27, %v320_v46  ;;  %v450_v27 = vadd.f32 %v3698_v41, %v426_v43  ;;  %v829_v35 = vadd.f32 %v3778_v13, %v802_v52  ;;  %v5647_v46 = vld [vmem:[#allocation73_spill] sm:$0xff]  ;;  %v944_v13 = vmul.f32 %v3446_v55, %v3529_v16 }
 0x355   :  { %2998 = vset.pattern.permute.xlu1 %v5642_v23  ;;  %v337_v23 = vsel %vm257_vm7, %v5645_v24, %v3814_v34 }
 0x356   :  { %1445 = vperm.xlu1 %2998, %v3888_v63   ;;  %928 = vrot.lane.b32.xlu0 %v921_v44, %s3070_s22  ;;  %v313_v44 = vsel %vm234_vm6, %v3750_v54, %v3812_v14  ;;  %v376_v62 = vmul.f32 %v3352_v53, %v344_v7  ;;  %v660_v54 = vmul.f32 %v3428_v18, %v3529_v16  ;;  %v5646_v14 = vld [vmem:[#allocation71_spill] sm:$0xff] }
 0x357   :  { %v419_v6 = vsel %vm234_vm6, %v5646_v14, %v3784_v58  ;;  %v443_v7 = vsel %vm257_vm7, %v5647_v46, %v3816_v17  ;;  %v971_v52 = vadd.f32 %v3790_v15, %v944_v13  ;;  %v5659_v13 = vld [vmem:[#allocation96_spill] sm:$0xff] }
 0x358   :  { %v424_v39 = vadd.f32 %v419_v6, %v397_v9  ;;  %v687_v34 = vadd.f32 %v3726_v32, %v660_v54  ;;  %v5652_v6 = vld [vmem:[#allocation94_spill] sm:$0xff] }
 0x35a   :  { %2999 = vset.pattern.permute.xlu1 %v5643_v26  ;;  %1071 = vrot.lane.b32.xlu0 %v1064_v36, %s3071_s1  ;;  %v318_v36 = vadd.f32 %v313_v44, %v291_v10  ;;  %v482_v26 = vmul.f32 %v3372_v37, %v450_v27  ;;  %v711_v58 = vadd.f32 %v3730_v60, %v687_v34  ;;  %v5655_v34 = vld [vmem:[#allocation77_spill] sm:$0xff] }
 0x35b   :  { %1461 = vperm.xlu1 %2999, %v3888_v63   ;;  %v853_v10 = vadd.f32 %v3746_v25, %v829_v35  ;;  %v995_v25 = vadd.f32 %v3762_v48, %v971_v52  ;;  %v5648_v48 = vld [vmem:[#allocation53_spill] sm:$0xff]  ;;  %v5660_v52 = vld [vmem:[#allocation82_spill] sm:$0xff] }
 0x35c   :  { %v342_v41 = vadd.f32 %v337_v23, %v318_v36  ;;  %v735_v44 = vadd.f32 %v3736_v61, %v711_v58  ;;  %v5649_v36 = vld [vmem:[#allocation91_spill] sm:$0xff]  ;;  %v5654_v35 = vld [vmem:[#allocation81_spill] sm:$0xff] }
 0x35d   :  { %v877_v17 = vadd.f32 %v3752_v28, %v853_v10  ;;  %v1019_v27 = vadd.f32 %v3768_v51, %v995_v25  ;;  %v1131_v28 = vpop.permute.xlu0 %1130  ;;  %v5650_v51 = vld [vmem:[#allocation75_spill] sm:$0xff]  ;;  %v822_v46 = vsel %vm234_vm6, %v5655_v34, %v5654_v35  ;;  %v5658_v10 = vld [vmem:[#allocation64_spill] sm:$0xff] }
 0x35e   :  { %v374_v43 = vmul.f32 %v3400_v3, %v342_v41  ;;  %v759_v32 = vadd.f32 %v3742_v47, %v735_v44  ;;  %v680_v54 = vsel %vm234_vm6, %v5650_v51, %v5649_v36  ;;  %v5653_v41 = vld [vmem:[#allocation101_spill] sm:$0xff]  ;;  %v942_v36 = vmul.f32 %v3446_v55, %v5648_v48 }
 0x35f   :  { %3001 = vset.pattern.permute.xlu1 %v5644_v56  ;;  %v448_v56 = vadd.f32 %v443_v7, %v424_v39  ;;  %v901_v61 = vadd.f32 %v3758_v2, %v877_v17  ;;  %v1043_v47 = vadd.f32 %v3776_v59, %v1019_v27  ;;  %v800_v2 = vmul.f32 %v3905_v42, %v5648_v48  ;;  %v5651_v59 = vld [vmem:[#allocation50_spill] sm:$0xff]  ;;  %v5656_v7 = vld [vmem:[#allocation52_spill] sm:$0xff] }
 0x360   :  { %1493 = vperm.xlu1 %3001, %v3888_v63   ;;  %v780_v60 = vmul.f32 %v3380_v33, %v759_v32  ;;  %v1088_v14 = vmul.f32 %v5651_v59, %v3529_v16  ;;  %v658_v39 = vmul.f32 %v3428_v18, %v5648_v48  ;;  %v1133_v32 = vsel %vm257_vm7, %v5659_v13, %v1131_v28 }
 0x361   :  { %v922_v9 = vmul.f32 %v3440_v21, %v901_v61  ;;  %v1065_v15 = vmul.f32 %v3458_v30, %v1043_v47  ;;  %v1151_v24 = vpop.permute.xlu0 %1150  ;;  %v5662_v47 = vld [vmem:[#allocation93_spill] sm:$0xff] }
 0x362   :  { %v1115_v16 = vadd.f32 %v5652_v6, %v1088_v14  ;;  %v685_v17 = vadd.f32 %v680_v54, %v658_v39  ;;  %v5664_v14 = vld [vmem:[#allocation98_spill] sm:$0xff]  ;;  %v5666_v39 = vld [vmem:[#allocation79_spill] sm:$0xff] }
 0x364   :  { %384 = vrot.lane.b32.xlu1 %v376_v62, %s3069_s21  ;;  %v480_v62 = vmul.f32 %v3414_v57, %v448_v56  ;;  %v5657_v56 = vld [vmem:[#allocation92_spill] sm:$0xff]  ;;  %v1139_v51 = vadd.f32 %v1131_v28, %v1115_v16 }
 0x365   :  { %3004 = vset.pattern.permute.xlu1 %v5640_v19  ;;  %v1155_v23 = vpop.permute.xlu0 %1154  ;;  %v704_v44 = vsel %vm257_vm7, %v5658_v10, %v5657_v56 }
 0x366   :  { %v709_v35 = vadd.f32 %v704_v44, %v685_v17  ;;  %v5667_v17 = vld [vmem:[#allocation70_spill] sm:$0xff] }
 0x368   :  { %490 = vrot.lane.b32.xlu1 %v482_v26, %s3070_s22  ;;  %v1109_v26 = vsel %vm234_vm6, %v5653_v41, %v5652_v6  ;;  %v1157_v6 = vsel %vm612_vm10, %v5664_v14, %v1155_v23 }
 0x36c   :  { %380 = vrot.lane.b32.xlu1 %v374_v43, %s3069_s21  ;;  %v1087_v43 = vmul.f32 %v5651_v59, %v5656_v7 }
 0x36e   :  { %v1114_v61 = vadd.f32 %v1109_v26, %v1087_v43  ;;  %v846_v26 = vsel %vm257_vm7, %v5666_v39, %v3834_v20  ;;  %v1163_v43 = vadd.f32 %v1155_v23, %v1139_v51  ;;  %v1086_v39 = vmul.f32 %v5651_v59, %v5648_v48 }
 0x370   :  { %486 = vrot.lane.b32.xlu1 %v480_v62, %s3070_s22  ;;  %v827_v62 = vadd.f32 %v822_v46, %v800_v2  ;;  %v5665_v2 = vld [vmem:[#allocation67_spill] sm:$0xff]  ;;  %v1138_v34 = vadd.f32 %v1133_v32, %v1114_v61 }
 0x371   :  { %v752_v54 = vsel %vm635_vm11, %v5665_v2, %v3832_v12  ;;  %v870_v12 = vsel %vm612_vm10, %v5667_v17, %v3836_v0  ;;  %v5669_v0 = vld [vmem:[#allocation72_spill] sm:$0xff] }
 0x372   :  { %v851_v10 = vadd.f32 %v846_v26, %v827_v62  ;;  %v1162_v16 = vadd.f32 %v1157_v6, %v1138_v34  ;;  %v5671_v6 = vld [vmem:[#allocation85_spill] sm:$0xff]  ;;  %v5672_v34 = vld [vmem:[#allocation95_spill] sm:$0xff] }
 0x374   :  { %788 = vrot.lane.b32.xlu1 %v780_v60, %s3069_s21  ;;  %v5661_v60 = vld [vmem:[#allocation80_spill] sm:$0xff] }
 0x375   :  { %v964_v25 = vsel %vm234_vm6, %v5661_v60, %v5660_v52  ;;  %v5668_v60 = vld [vmem:[#allocation83_spill] sm:$0xff] }
 0x376   :  { %v969_v7 = vadd.f32 %v964_v25, %v942_v36  ;;  %v988_v20 = vsel %vm257_vm7, %v5668_v60, %v3840_v31  ;;  %v894_v31 = vsel %vm635_vm11, %v5669_v0, %v3838_v50  ;;  %v5670_v36 = vld [vmem:[#allocation74_spill] sm:$0xff]  ;;  %v1132_v50 = vsel %vm257_vm7, %v5672_v34, %v5659_v13 }
 0x377   :  { %v1012_v51 = vsel %vm612_vm10, %v5670_v36, %v3842_v40  ;;  %v5673_v40 = vld [vmem:[#allocation76_spill] sm:$0xff] }
 0x378   :  { %930 = vrot.lane.b32.xlu1 %v922_v9, %s3070_s22  ;;  %v5663_v9 = vld [vmem:[#allocation65_spill] sm:$0xff]  ;;  %v993_v61 = vadd.f32 %v988_v20, %v969_v7  ;;  %v1156_v7 = vsel %vm612_vm10, %v1151_v24, %v5664_v14  ;;  %v5675_v24 = vld [vmem:[#allocation24_spill] sm:$0xff] }
 0x37c   :  { %1073 = vrot.lane.b32.xlu1 %v1065_v15, %s3071_s1  ;;  %v728_v15 = vsel %vm612_vm10, %v5663_v9, %v5662_v47  ;;  %v875_v9 = vadd.f32 %v870_v12, %v851_v10 }
 0x37d   :  { %v733_v28 = vadd.f32 %v728_v15, %v709_v35  ;;  %v1108_v35 = vsel %vm234_vm6, %v5671_v6, %v5653_v41  ;;  %v1036_v41 = vsel %vm635_vm11, %v5673_v40, %v3844_v8  ;;  %v5674_v8 = vld [vmem:[#allocation34_spill] sm:$0xff] }
 0x37e   :  { %v899_v26 = vadd.f32 %v894_v31, %v875_v9 }
 0x37f   :  { %v757_v44 = vadd.f32 %v752_v54, %v733_v28  ;;  %v1017_v54 = vadd.f32 %v1012_v51, %v993_v61 }
 0x381   :  { %v778_v2 = vmul.f32 %v3436_v4, %v757_v44  ;;  %v1041_v10 = vadd.f32 %v1036_v41, %v1017_v54 }
 0x398   :  { %v1175_v58 = vpop.permute.xlu0 %1174  ;;  %v1177_v27 = vpop.permute.xlu1 %1176 }
 0x399   :  { %v1180_v48 = vsel %vm635_vm11, %v1175_v58, %v1177_v27 }
 0x39c   :  { %v1179_v46 = vpop.permute.xlu0 %1178  ;;  %v4122_v32 = vpop.permute.xlu1 %1198 }
 0x39d   :  { %v1181_v56 = vsel %vm635_vm11, %v1177_v27, %v1179_v46  ;;  %v1187_v52 = vadd.f32 %v1179_v46, %v1163_v43  ;;  %v1113_v46 = vadd.f32 %v1108_v35, %v1086_v39 }
 0x39e   :  { %v1186_v25 = vadd.f32 %v1181_v56, %v1162_v16  ;;  %v920_v56 = vmul.f32 %v3448_v29, %v899_v26  ;;  %v1063_v16 = vmul.f32 %v3462_v1, %v1041_v10 }
 0x39f   :  { %v1137_v43 = vadd.f32 %v1132_v50, %v1113_v46 }
 0x3a0   :  { %v4124_v23 = vpop.permute.xlu0 %1200 }
 0x3a1   :  { %v4128_v62 = vsel %vm1202_vm13, %v4122_v32, %v4124_v23  ;;  %v1209_v47 = vmul.f32 %v4124_v23, %v1187_v52  ;;  %v1161_v28 = vadd.f32 %v1156_v7, %v1137_v43 }
 0x3a2   :  { %v1208_v15 = vmul.f32 %v4128_v62, %v1186_v25 }
 0x3a3   :  { %1217 = vrot.lane.b32.xlu1 %v1209_v47, %s3072_s23  ;;  %v1185_v13 = vadd.f32 %v1180_v48, %v1161_v28 }
 0x3a4   :  { %1215 = vrot.lane.b32.xlu0 %v1208_v15, %s3072_s23 }
 0x3a5   :  { %v1207_v52 = vmul.f32 %v4122_v32, %v1185_v13 }
 0x3a7   :  { %784 = vrot.lane.b32.xlu1 %v778_v2, %s3069_s21 }
 0x3a9   :  { %v4164_v14 = vpop.permute.xlu1 %1253 }
 0x3aa   :  { %5676 = vst [vmem:[#allocation55_spill] sm:$0xff] %v4164_v14 }
 0x3ab   :  { %926 = vrot.lane.b32.xlu1 %v920_v56, %s3070_s22 }
 0x3ad   :  { %v4192_v31 = vpop.permute.xlu0 %1285 }
 0x3ae   :  { %v4166_v44 = vpop.permute.xlu1 %1269  ;;  %5690 = vst [vmem:[#allocation96_spill] sm:$0xff] %v4192_v31 }
 0x3af   :  { %1069 = vrot.lane.b32.xlu1 %v1063_v16, %s3071_s1  ;;  %5677 = vst [vmem:[#allocation71_spill] sm:$0xff] %v4166_v44  ;;  %v3023_v44 = vld [vmem:[%s5361_s0 + $0x4] ss:$8 sm:$0x3] }
 0x3b2   :  { %v4194_v36 = vpop.permute.xlu0 %1333 }
 0x3b3   :  { %1213 = vrot.lane.b32.xlu1 %v1207_v52, %s3072_s23  ;;  %v4168_v58 = vpop.permute.xlu1 %1301  ;;  %5691 = vst [vmem:[#allocation82_spill] sm:$0xff] %v4194_v36  ;;  %v5710_v52 = vld [vmem:[#allocation8_spill] sm:$0xff]  ;;  %v5714_v36 = vld [vmem:[#allocation5_spill] sm:$0xff] }
 0x3b4   :  { %5678 = vst [vmem:[#allocation73_spill] sm:$0xff] %v4168_v58  ;;  %v5716_v58 = vld [vmem:[#allocation4_spill] sm:$0xff] }
 0x3b7   :  { %v4198_v6 = vpop.permute.xlu0 %1381 }
 0x3b8   :  { %v4170_v27 = vpop.permute.xlu1 %1317  ;;  %5693 = vst [vmem:[#allocation93_spill] sm:$0xff] %v4198_v6 }
 0x3b9   :  { %5679 = vst [vmem:[#allocation53_spill] sm:$0xff] %v4170_v27 }
 0x3bc   :  { %v4202_v2 = vpop.permute.xlu0 %1429 }
 0x3bd   :  { %v4172_v17 = vpop.permute.xlu1 %1349  ;;  %5695 = vst [vmem:[#allocation98_spill] sm:$0xff] %v4202_v2  ;;  %v5712_v2 = vld [vmem:[#allocation9_spill] sm:$0xff] }
 0x3be   :  { %5680 = vst [vmem:[#allocation91_spill] sm:$0xff] %v4172_v17 }
 0x3c1   :  { %v4206_v39 = vpop.permute.xlu0 %1477 }
 0x3c2   :  { %v4174_v12 = vpop.permute.xlu1 %1365  ;;  %5697 = vst [vmem:[#allocation79_spill] sm:$0xff] %v4206_v39 }
 0x3c3   :  { %1512 = vadd.xlane.f32.xlu0 %v5674_v8  ;;  %5681 = vst [vmem:[#allocation75_spill] sm:$0xff] %v4174_v12 }
 0x3c5   :  { %v4212_v50 = vpop.permute.xlu0 %382 }
 0x3c6   :  { %5700 = vst [vmem:[#allocation72_spill] sm:$0xff] %v4212_v50 }
 0x3c7   :  { %v4176_v60 = vpop.permute.xlu1 %1397 }
 0x3c8   :  { %5682 = vst [vmem:[#allocation50_spill] sm:$0xff] %v4176_v60  ;;  %v5713_v60 = vld [vmem:[#allocation99_spill] sm:$0xff] }
 0x3c9   :  { %v4216_v40 = vpop.permute.xlu0 %488 }
 0x3ca   :  { %5702 = vst [vmem:[#allocation85_spill] sm:$0xff] %v4216_v40 }
 0x3cc   :  { %v4178_v20 = vpop.permute.xlu1 %1413 }
 0x3cd   :  { %5683 = vst [vmem:[#allocation94_spill] sm:$0xff] %v4178_v20  ;;  %v4220_v7 = vpop.permute.xlu0 %786 }
 0x3ce   :  { %5704 = vst [vmem:[#allocation76_spill] sm:$0xff] %v4220_v7 }
 0x3d1   :  { %v4180_v25 = vpop.permute.xlu1 %1445  ;;  %v4224_v56 = vpop.permute.xlu0 %928 }
 0x3d2   :  { %5684 = vst [vmem:[#allocation101_spill] sm:$0xff] %v4180_v25  ;;  %5706 = vst [vmem:[#allocation24_spill] sm:$0xff] %v4224_v56  ;;  %v5725_v56 = vld [vmem:[#allocation20_spill] sm:$0xff] }
 0x3d5   :  { %v4228_v48 = vpop.permute.xlu0 %1071 }
 0x3d6   :  { %v4182_v61 = vpop.permute.xlu1 %1461  ;;  %5708 = vst [vmem:[#allocation104_spill] sm:$0xff] %v4228_v48  ;;  %v5724_v48 = vld [vmem:[#allocation17_spill] sm:$0xff] }
 0x3d7   :  { %1509 = vadd.xlane.f32.xlu1 %v5675_v24  ;;  %5685 = vst [vmem:[#allocation81_spill] sm:$0xff] %v4182_v61  ;;  %v5711_v24 = vld [vmem:[#allocation6_spill] sm:$0xff] }
 0x3d8   :  { %v1697_v14 = vrot.slane %v3023_v44, %v5711_v24  ;;  %v5723_v44 = vld [vmem:[#allocation19_spill] sm:$0xff] }
 0x3db   :  { %v4184_v47 = vpop.permute.xlu1 %1493 }
 0x3dc   :  { %5686 = vst [vmem:[#allocation77_spill] sm:$0xff] %v4184_v47 }
 0x3df   :  { %v4186_v9 = vpop.permute.xlu1 %384 }
 0x3e0   :  { %5687 = vst [vmem:[#allocation52_spill] sm:$0xff] %v4186_v9 }
 0x3e3   :  { %v4188_v15 = vpop.permute.xlu1 %490 }
 0x3e4   :  { %5688 = vst [vmem:[#allocation92_spill] sm:$0xff] %v4188_v15 }
 0x3e7   :  { %v4190_v0 = vpop.permute.xlu1 %380 }
 0x3e8   :  { %5689 = vst [vmem:[#allocation64_spill] sm:$0xff] %v4190_v0 }
 0x3eb   :  { %v4196_v51 = vpop.permute.xlu1 %486 }
 0x3ec   :  { %5692 = vst [vmem:[#allocation80_spill] sm:$0xff] %v4196_v51 }
 0x3ef   :  { %v4200_v35 = vpop.permute.xlu1 %788 }
 0x3f0   :  { %5694 = vst [vmem:[#allocation65_spill] sm:$0xff] %v4200_v35  ;;  %v5726_v35 = vld [vmem:[#allocation30_spill] sm:$0xff] }
 0x3f3   :  { %v4204_v54 = vpop.permute.xlu1 %930 }
 0x3f4   :  { %5696 = vst [vmem:[#allocation67_spill] sm:$0xff] %v4204_v54  ;;  %v1742_v54 = vmul.f32 %v5724_v48, %v5723_v44  ;;  %v1763_v48 = vmul.f32 %v5726_v35, %v5725_v56  ;;  %v5728_v35 = vld [vmem:[#allocation16_spill] sm:$0xff] }
 0x3f5   :  { %v1703_v7 = vmul.f32 %v1697_v14, %v5728_v35 }
 0x3f7   :  { %v4208_v26 = vpop.permute.xlu1 %1073 }
 0x3f8   :  { %5698 = vst [vmem:[#allocation70_spill] sm:$0xff] %v4208_v26 }
 0x415   :  { %v4210_v34 = vpop.permute.xlu1 %1217 }
 0x416   :  { %5699 = vst [vmem:[#allocation83_spill] sm:$0xff] %v4210_v34  ;;  %v4230_v13 = vpop.permute.xlu0 %1215  ;;  %v5721_v34 = vld [vmem:[#allocation12_spill] sm:$0xff] }
 0x417   :  { %5709 = vst [vmem:[#allocation105_spill] sm:$0xff] %v4230_v13 }
 0x419   :  { %v4214_v46 = vpop.permute.xlu1 %784 }
 0x41a   :  { %5701 = vst [vmem:[#allocation74_spill] sm:$0xff] %v4214_v46 }
 0x41d   :  { %v4218_v41 = vpop.permute.xlu1 %926 }
 0x41e   :  { %5703 = vst [vmem:[#allocation95_spill] sm:$0xff] %v4218_v41  ;;  %v3025_v41 = vld [vmem:[%s5361_s0 + $0x7] ss:$8 sm:$0x3] }
 0x421   :  { %v4222_v43 = vpop.permute.xlu1 %1069 }
 0x422   :  { %5705 = vst [vmem:[#allocation34_spill] sm:$0xff] %v4222_v43 }
 0x425   :  { %v4226_v10 = vpop.permute.xlu1 %1213 }
 0x426   :  { %5707 = vst [vmem:[#allocation103_spill] sm:$0xff] %v4226_v10 }
 0x44c   :  { %v1513_v39 = vpop.xlane.xlu0 %1512 }
 0x460   :  { %v1510_v28 = vpop.xlane.xlu1 %1509 }
 0x461   :  { %v4232_v16 = vmul.f32 0.00390625, %v1510_v28  ;;  %v4246_v28 = vmul.f32 0.00390625, %v1513_v39 }
 0x463   :  { %v1536_v8 = vrot.slane %v4232_v16, %v5710_v52  ;;  %v1526_v47 = vrot.slane %v4232_v16, %v5711_v24  ;;  %v1546_v20 = vrot.slane %v4232_v16, %v5712_v2  ;;  %v1556_v6 = vrot.slane %v4232_v16, %v5713_v60 }
 0x464   :  { %v1646_v26 = vrot.slane %v4246_v28, %v5714_v36 }
 0x465   :  { %v1537_v61 = vmul.f32 %v1536_v8, %v3888_v63  ;;  %v1527_v25 = vmul.f32 %v1526_v47, %v3888_v63  ;;  %v1547_v12 = vmul.f32 %v1546_v20, %v3888_v63  ;;  %v1557_v17 = vmul.f32 %v1556_v6, %v3888_v63  ;;  %v5715_v47 = vld [vmem:[#allocation7_spill] sm:$0xff]  ;;  %v5718_v6 = vld [vmem:[#allocation10_spill] sm:$0xff] }
 0x466   :  { %v1566_v8 = vrot.slane %v4232_v16, %v5714_v36  ;;  %v1576_v27 = vrot.slane %v4232_v16, %v5715_v47  ;;  %v1596_v31 = vrot.slane %v4246_v28, %v5718_v6  ;;  %v1647_v46 = vmul.f32 %v1646_v26, %v3888_v63 }
 0x467   :  { %1539 = vrot.lane.b32.xlu1 %v1537_v61, %s3070_s22  ;;  %1529 = vrot.lane.b32.xlu0 %v1527_v25, %s3069_s21  ;;  %v4257_v61 = vsub.s32 7, %v5716_v58 }
 0x468   :  { %v1567_v25 = vmul.f32 %v1566_v8, %v3888_v63  ;;  %v1577_v39 = vmul.f32 %v1576_v27, %v3888_v63  ;;  %v1597_v58 = vmul.f32 %v1596_v31, %v3888_v63  ;;  %v1616_v27 = vrot.slane %v4246_v28, %v5710_v52 }
 0x469   :  { %5717 = vst [vmem:[#allocation99_spill] sm:$0xff] %v4257_v61  ;;  %v1586_v20 = vrot.slane %v4232_v16, %v4257_v61  ;;  %v1636_v31 = vrot.slane %v4246_v28, %v5713_v60 }
 0x46b   :  { %1549 = vrot.lane.b32.xlu1 %v1547_v12, %s3071_s1  ;;  %1559 = vrot.lane.b32.xlu0 %v1557_v17, %s3072_s23  ;;  %v1587_v17 = vmul.f32 %v1586_v20, %v3888_v63  ;;  %v1606_v12 = vrot.slane %v4246_v28, %v5711_v24  ;;  %v3022_v20 = vld [vmem:[%s5361_s0 + $0x5] ss:$8 sm:$0x3]  ;;  %v1637_v13 = vmul.f32 %v1636_v31, %v3888_v63 }
 0x46c   :  { %v1701_v31 = vmul.f32 %v1697_v14, %v5721_v34 }
 0x46d   :  { %v1607_v8 = vmul.f32 %v1606_v12, %v3888_v63  ;;  %v5720_v12 = vld [vmem:[#allocation13_spill] sm:$0xff] }
 0x46f   :  { %1569 = vrot.lane.b32.xlu1 %v1567_v25, %s3073_s24  ;;  %1579 = vrot.lane.b32.xlu0 %v1577_v39, %s3074_s25  ;;  %v1617_v25 = vmul.f32 %v1616_v27, %v3888_v63  ;;  %v1626_v39 = vrot.slane %v4246_v28, %v5712_v2 }
 0x473   :  { %1589 = vrot.lane.b32.xlu1 %v1587_v17, %s3075_s26  ;;  %1599 = vrot.lane.b32.xlu0 %v1597_v58, %s3076_s27  ;;  %v1718_v17 = vrot.slane %v3022_v20, %v5711_v24  ;;  %v5719_v58 = vld [vmem:[#allocation11_spill] sm:$0xff]  ;;  %v1656_v20 = vrot.slane %v4246_v28, %v5715_v47 }
 0x474   :  { %v1721_v27 = vmul.f32 %v5720_v12, %v5719_v58  ;;  %v3024_v12 = vld [vmem:[%s5361_s0 + $0x6] ss:$8 sm:$0x3]  ;;  %s5514_s0 = smov 113  }
 0x475   :  { %v1739_v43 = vrot.slane %v3024_v12, %v5711_v24  ;;  %v1760_v12 = vrot.slane %v3025_v41, %v5711_v24 }
 0x477   :  { %1609 = vrot.lane.b32.xlu1 %v1607_v8, %s3077_s28  ;;  %1619 = vrot.lane.b32.xlu0 %v1617_v25, %s5511_s29  ;;  %v5722_v8 = vld [vmem:[#allocation14_spill] sm:$0xff]  ;;  %v1627_v25 = vmul.f32 %v1626_v39, %v3888_v63  ;;  %v1722_v39 = vmul.f32 %v1718_v17, %v5719_v58  ;;  %v1743_v58 = vmul.f32 %v1739_v43, %v5723_v44  ;;  %s3082_s29 = smov 114  }
 0x478   :  { %v1700_v10 = vmul.f32 %v5722_v8, %v5721_v34  ;;  %v1764_v26 = vmul.f32 %v1760_v12, %v5725_v56 }
 0x479   :  { %v1726_v41 = vadd.f32 %v1722_v39, %v1701_v31 }
 0x47a   :  { %v1725_v8 = vadd.f32 %v1721_v27, %v1700_v10  ;;  %v5727_v10 = vld [vmem:[#allocation15_spill] sm:$0xff] }
 0x47b   :  { %1629 = vrot.lane.b32.xlu1 %v1627_v25, %s3079_s13  ;;  %1639 = vrot.lane.b32.xlu0 %v1637_v13, %s3080_s18  ;;  %v1657_v25 = vmul.f32 %v1656_v20, %v3888_v63  ;;  %v1666_v13 = vrot.slane %v4246_v28, %v4257_v61  ;;  %v1724_v27 = vmul.f32 %v1718_v17, %v5727_v10  ;;  %v5729_v28 = vld [vmem:[#allocation18_spill] sm:$0xff] }
 0x47c   :  { %v1746_v34 = vadd.f32 %v1742_v54, %v1725_v8  ;;  %v1745_v51 = vmul.f32 %v1739_v43, %v5729_v28  ;;  %v1747_v44 = vadd.f32 %v1743_v58, %v1726_v41  ;;  %v5732_v43 = vld [vmem:[#allocation25_spill] sm:$0xff] }
 0x47d   :  { %v1667_v20 = vmul.f32 %v1666_v13, %v3888_v63  ;;  %v1728_v54 = vadd.f32 %v1724_v27, %v1703_v7 }
 0x47e   :  { %v1767_v15 = vadd.f32 %v1763_v48, %v1746_v34  ;;  %v1768_v17 = vadd.f32 %v1764_v26, %v1747_v44 }
 0x47f   :  { %1649 = vrot.lane.b32.xlu1 %v1647_v46, %s3081_s20  ;;  %1659 = vrot.lane.b32.xlu0 %v1657_v25, %s3082_s29  ;;  %v5730_v46 = vld [vmem:[#allocation31_spill] sm:$0xff]  ;;  %v5731_v25 = vld [vmem:[#allocation22_spill] sm:$0xff]  ;;  %v1749_v31 = vadd.f32 %v1745_v51, %v1728_v54 }
 0x480   :  { %v1766_v8 = vmul.f32 %v1760_v12, %v5730_v46  ;;  %v4332_v39 = vadd.f32 %v1767_v15, %v5731_v25  ;;  %v4337_v14 = vadd.f32 %v1768_v17, %v5731_v25  ;;  %v1520_v15 = vrot.slane %v4232_v16, %v5718_v6 }
 0x482   :  { %v1770_v56 = vadd.f32 %v1766_v8, %v1749_v31  ;;  %v1521_v51 = vmul.f32 %v1520_v15, %v3888_v63 }
 0x483   :  { %1669 = vrot.lane.b32.xlu1 %v1667_v20, %s5514_s0 }
 0x484   :  { %v4342_v48 = vadd.f32 %v1770_v56, %v5732_v43 }
 0x487   :  { %1777 = vrot.lane.b32.xlu1 %v4332_v39, %s3059_s30 }
 0x48b   :  { %1779 = vrot.lane.b32.xlu1 %v4337_v14, %s3059_s30 }
 0x48f   :  { %1987 = vrot.lane.b32.xlu1 %v4342_v48, %s3060_s2 }
 0x4d9   :  { %v1540_v7 = vpop.permute.xlu1 %1539  ;;  %v1530_v12 = vpop.permute.xlu0 %1529 }
 0x4da   :  { %v1532_v13 = vadd.f32 %v1530_v12, %v1521_v51 }
 0x4dc   :  { %v1542_v58 = vadd.f32 %v1540_v7, %v1532_v13 }
 0x4dd   :  { %v1550_v34 = vpop.permute.xlu1 %1549  ;;  %v1560_v41 = vpop.permute.xlu0 %1559 }
 0x4de   :  { %v1552_v10 = vadd.f32 %v1550_v34, %v1542_v58 }
 0x4e0   :  { %v1562_v27 = vadd.f32 %v1560_v41, %v1552_v10  ;;  %v4349_v10 = vld [vmem:[#allocation2] sm:$0xff] }
 0x4e1   :  { %v1570_v35 = vpop.permute.xlu1 %1569  ;;  %v1580_v26 = vpop.permute.xlu0 %1579  ;;  %5733 = vst [vmem:[#allocation4_spill] sm:$0xff] %v4349_v10 }
 0x4e2   :  { %v1572_v20 = vadd.f32 %v1570_v35, %v1562_v27  ;;  %v5734_v35 = vmov 0  }
 0x4e4   :  { %v1582_v28 = vadd.f32 %v1580_v26, %v1572_v20  ;;  %v3026_v20 = vld [vmem:[%s5357_s3] sm:$0xff] }
 0x4e5   :  { %v1590_v44 = vpop.permute.xlu1 %1589  ;;  %v1600_v54 = vpop.permute.xlu0 %1599 }
 0x4e6   :  { %v1592_v46 = vadd.f32 %v1590_v44, %v1582_v28  ;;  %v4356_v28 = vld [vmem:[#allocation2 + $0x8] sm:$0xff] }
 0x4e7   :  { %5735 = vst [vmem:[#allocation10_spill] sm:$0xff] %v4356_v28 }
 0x4e8   :  { %v1602_v8 = vadd.f32 %v1600_v54, %v1592_v46  ;;  %v45_v54 = vld [vmem:[%s5363_s4] sm:$0xff] }
 0x4e9   :  { %v1610_v25 = vpop.permute.xlu1 %1609  ;;  %v1620_v16 = vpop.permute.xlu0 %1619 }
 0x4ea   :  { %v1612_v17 = vadd.f32 %v1610_v25, %v1602_v8  ;;  %v5736_v25 = vld [vmem:[#allocation26_spill] sm:$0xff] }
 0x4ec   :  { %v1622_v63 = vadd.f32 %v1620_v16, %v1612_v17  ;;  %v3027_v17 = vld [vmem:[%s5359_s6] sm:$0xff] }
 0x4ed   :  { %v1630_v31 = vpop.permute.xlu1 %1629  ;;  %v1640_v56 = vpop.permute.xlu0 %1639 }
 0x4ee   :  { %v1632_v15 = vadd.f32 %v1630_v31, %v1622_v63  ;;  %v48_v31 = vld [vmem:[%s5364_s7] sm:$0xff] }
 0x4f0   :  { %v1642_v51 = vadd.f32 %v1640_v56, %v1632_v15  ;;  %v5737_v56 = vld [vmem:[#allocation23_spill] sm:$0xff] }
 0x4f1   :  { %v1650_v7 = vpop.permute.xlu1 %1649  ;;  %v1660_v13 = vpop.permute.xlu0 %1659 }
 0x4f2   :  { %v1652_v12 = vadd.f32 %v1650_v7, %v1642_v51  ;;  %v5738_v51 = vld [vmem:[#allocation33_spill] sm:$0xff] }
 0x4f3   :  { %v1773_v7 = vadd.f32 %v5738_v51, %v5732_v43  ;;  %v4435_v51 = vld [vmem:[#allocation3 + $0x8] sm:$0xff] }
 0x4f4   :  { %v1662_v58 = vadd.f32 %v1660_v13, %v1652_v12  ;;  %5745 = vst [vmem:[#allocation19_spill] sm:$0xff] %v4435_v51 }
 0x4f5   :  { %v1670_v34 = vpop.permute.xlu1 %1669 }
 0x4f6   :  { %v1672_v41 = vadd.f32 %v1670_v34, %v1662_v58  ;;  %v43_v58 = vld [vmem:[%s5365_s10] sm:$0xf]  ;;  %v5739_v34 = vld [vmem:[#allocation47_spill] sm:$0xff] }
 0x4f8   :  { %1675 = vperm.xlu0 %3002, %v1672_v41  }
 0x4f9   :  { %v1778_v27 = vpop.permute.xlu1 %1777 }
 0x4fa   :  { %1785 = vst.msk [vmem:[#allocation2] sm:$0xff] %vm200_vm4, %v1778_v27 }
 0x4fc   :  { %3003 = vset.pattern.permute.xlu0 %v5734_v35 }
 0x4fd   :  { %v1780_v26 = vpop.permute.xlu1 %1779  ;;  %208 = vperm.xlu0 %3003, %v3026_v20  }
 0x4fe   :  { %v4359_v44 = vsel %vm51_vm0, %v1778_v27, %v1780_v26  ;;  %1787 = vst.msk [vmem:[#allocation2 + $0x10] sm:$0xff] %vm51_vm0, %v1780_v26  ;;  %v5740_v27 = vld [vmem:[#allocation28_spill] sm:$0xff]  ;;  %vm1075_vm0 = vcmask 1022976  }
 0x4ff   :  { %1786 = vst [vmem:[#allocation2 + $0x8] sm:$0xff] %v4359_v44  ;;  %v1796_v63 = vmul.f32 %v4359_v44, %v5736_v25  ;;  %v1842_v41 = vmul.f32 %v4359_v44, %v5739_v34  ;;  %v1814_v26 = vmul.f32 %v4359_v44, %v5737_v56 }
 0x501   :  { %v1988_v46 = vpop.permute.xlu1 %1987  ;;  %501 = vperm.xlu0 %3003, %v45_v54   ;;  %v4366_v8 = vld [vmem:[#allocation2] sm:$0xff] }
 0x502   :  { %1995 = vst.msk [vmem:[#allocation3 + $0x10] sm:$0xff] %vm55_vm2, %v1988_v46  ;;  %v1795_v16 = vmul.f32 %v4366_v8, %v5736_v25  ;;  %v1813_v15 = vmul.f32 %v4366_v8, %v5737_v56  ;;  %v1861_v35 = vmul.f32 %v4366_v8, %v5740_v27  ;;  %v1841_v20 = vmul.f32 %v4366_v8, %v5739_v34 }
 0x504   :  { %1801 = vrot.lane.b32.xlu1 %v1795_v16, %s3061_s14 }
 0x505   :  { %542 = vperm.xlu0 %3003, %v3027_v17   ;;  %v4385_v12 = vld [vmem:[#allocation2 + $0x10] sm:$0xff]  ;;  %v1862_v17 = vmul.f32 %v4359_v44, %v5740_v27 }
 0x506   :  { %v1815_v13 = vmul.f32 %v4385_v12, %v5737_v56  ;;  %v1797_v43 = vmul.f32 %v4385_v12, %v5736_v25  ;;  %v1843_v54 = vmul.f32 %v4385_v12, %v5739_v34  ;;  %v2710_v25 = vadd.f32 %v4342_v48, %v1773_v7 }
 0x507   :  { %v1863_v16 = vmul.f32 %v4385_v12, %v5740_v27 }
 0x508   :  { %1803 = vrot.lane.b32.xlu1 %v1796_v63, %s3061_s14 }
 0x509   :  { %1228 = vperm.xlu0 %3003, %v48_v31  }
 0x50c   :  { %1819 = vrot.lane.b32.xlu1 %v1813_v15, %s3062_s15 }
 0x50d   :  { %1985 = vrot.lane.b32.xlu0 %v1773_v7, %s3060_s2 }
 0x510   :  { %1823 = vrot.lane.b32.xlu1 %v1815_v13, %s3062_s15 }
 0x511   :  { %1682 = vperm.xlu0 %3003, %v43_v58  }
 0x514   :  { %1849 = vrot.lane.b32.xlu1 %v1842_v41, %s3061_s14 }
 0x515   :  { %1805 = vrot.lane.b32.xlu0 %v1797_v43, %s3061_s14 }
 0x516   :  { %3005 = vset.pattern.permute.xlu0 %v5640_v19  ;;  %v2707_v19 = vadd.f32 %v4337_v14, %v4332_v39  ;;  %v4433_v14 = vld [vmem:[#allocation3] sm:$0xff] }
 0x517   :  { %5744 = vst [vmem:[#allocation14_spill] sm:$0xff] %v4433_v14  ;;  %v5749_v14 = vld [vmem:[#allocation102_spill] sm:$0xff] }
 0x518   :  { %1867 = vrot.lane.b32.xlu1 %v1861_v35, %s3062_s15 }
 0x519   :  { %1821 = vrot.lane.b32.xlu0 %v1814_v26, %s3062_s15 }
 0x51d   :  { %1847 = vrot.lane.b32.xlu0 %v1841_v20, %s3061_s14 }
 0x521   :  { %1851 = vrot.lane.b32.xlu0 %v1843_v54, %s3061_s14 }
 0x53c   :  { %2711 = vadd.xlane.f32.xlu1 %v2710_v25 }
 0x540   :  { %2708 = vadd.xlane.f32.xlu0 %v2707_v19 }
 0x54d   :  { %1871 = vrot.lane.b32.xlu1 %v1863_v16, %s3062_s15 }
 0x556   :  { %1869 = vrot.lane.b32.xlu0 %v1862_v17, %s3062_s15 }
 0x573   :  { %v4423_v63 = vpop.permute.xlu0 %1675 }
 0x574   :  { %5741 = vst [vmem:[#allocation11_spill] sm:$0xff] %v4423_v63 }
 0x576   :  { %v4442_v13 = vpop.permute.xlu1 %1801 }
 0x577   :  { %5746 = vst [vmem:[#allocation17_spill] sm:$0xff] %v4442_v13 }
 0x578   :  { %v4425_v31 = vpop.permute.xlu0 %208 }
 0x57a   :  { %v4444_v58 = vpop.permute.xlu1 %1803 }
 0x57c   :  { %v4427_v48 = vpop.permute.xlu0 %501 }
 0x57d   :  { %5742 = vst [vmem:[#allocation13_spill] sm:$0xff] %v4427_v48 }
 0x57e   :  { %v4448_v41 = vpop.permute.xlu1 %1819 }
 0x57f   :  { %5748 = vst [vmem:[#allocation30_spill] sm:$0xff] %v4448_v41 }
 0x580   :  { %v4429_v56 = vpop.permute.xlu0 %542 }
 0x582   :  { %v4452_v27 = vpop.permute.xlu1 %1823 }
 0x584   :  { %v4431_v39 = vpop.permute.xlu0 %1228 }
 0x585   :  { %5743 = vst [vmem:[#allocation12_spill] sm:$0xff] %v4431_v39  ;;  %v1837_v39 = vmul.f32 %v4385_v12, %v3378_v38 }
 0x588   :  { %v1986_v15 = vpop.permute.xlu0 %1985 }
 0x589   :  { %v4438_v7 = vsel %vm55_vm2, %v1986_v15, %v1988_v46  ;;  %1993 = vst.msk [vmem:[#allocation3] sm:$0xff] %vm534_vm5, %v1986_v15  ;;  %v1850_v46 = vpop.permute.xlu1 %1849  ;;  %v1835_v15 = vmul.f32 %v4366_v8, %v3378_v38  ;;  %vm2886_vm2 = vcmask 1043456  }
 0x58a   :  { %1994 = vst [vmem:[#allocation3 + $0x8] sm:$0xff] %v4438_v7 }
 0x58c   :  { %v4446_v34 = vpop.permute.xlu0 %1682 }
 0x58d   :  { %5747 = vst [vmem:[#allocation20_spill] sm:$0xff] %v4446_v34  ;;  %v1868_v20 = vpop.permute.xlu1 %1867  ;;  %v1836_v34 = vmul.f32 %v4359_v44, %v3378_v38 }
 0x590   :  { %v4450_v43 = vpop.permute.xlu0 %1805 }
 0x594   :  { %v4454_v35 = vpop.permute.xlu0 %1821 }
 0x598   :  { %v1848_v26 = vpop.permute.xlu0 %1847 }
 0x599   :  { %v1853_v16 = vsel %vm234_vm6, %v1848_v26, %v1850_v46 }
 0x59a   :  { %v1858_v63 = vadd.f32 %v1853_v16, %v1835_v15 }
 0x59c   :  { %v1852_v54 = vpop.permute.xlu0 %1851 }
 0x59d   :  { %v1854_v17 = vsel %vm234_vm6, %v1850_v46, %v1852_v54  ;;  %v1860_v26 = vadd.f32 %v1852_v54, %v1837_v39  ;;  %v4497_v39 = vld [vmem:[#allocation3 + $0x10] sm:$0xff]  ;;  %v5754_v54 = vld [vmem:[#allocation42_spill] sm:$0xff] }
 0x59e   :  { %v1859_v41 = vadd.f32 %v1854_v17, %v1836_v34  ;;  %v5750_v34 = vld [vmem:[#allocation32_spill] sm:$0xff] }
 0x59f   :  { %v1905_v16 = vmul.f32 %v4366_v8, %v5750_v34 }
 0x5c5   :  { %v4456_v25 = vpop.xlane.xlu1 %2711 }
 0x5c9   :  { %v4458_v19 = vpop.xlane.xlu0 %2708  ;;  %v1872_v13 = vpop.permute.xlu1 %1871 }
 0x5ca   :  { %v1880_v0 = vadd.f32 %v1872_v13, %v1860_v26  ;;  %v2191_v26 = vmul.f32 %v4497_v39, %v5754_v54 }
 0x5cc   :  { %v1883_v38 = vmul.f32 %v1880_v0, %v3352_v53 }
 0x5cd   :  { %v1870_v48 = vpop.permute.xlu0 %1869 }
 0x5ce   :  { %v1873_v40 = vsel %vm257_vm7, %v1868_v20, %v1870_v48  ;;  %v1874_v9 = vsel %vm257_vm7, %v1870_v48, %v1872_v13  ;;  %v5753_v13 = vld [vmem:[#allocation39_spill] sm:$0xff] }
 0x5cf   :  { %v1878_v51 = vadd.f32 %v1873_v40, %v1858_v63  ;;  %v1879_v46 = vadd.f32 %v1874_v9, %v1859_v41  ;;  %v1907_v9 = vmul.f32 %v4385_v12, %v5750_v34  ;;  %v4489_v40 = vld [vmem:[#allocation3] sm:$0xff]  ;;  %v2106_v41 = vmul.f32 %v4438_v7, %v5753_v13 }
 0x5d0   :  { %v2105_v20 = vmul.f32 %v4489_v40, %v5753_v13  ;;  %v2189_v17 = vmul.f32 %v4489_v40, %v5754_v54  ;;  %v2107_v15 = vmul.f32 %v4497_v39, %v5753_v13 }
 0x5d1   :  { %v1881_v50 = vmul.f32 %v1878_v51, %v3400_v3  ;;  %v1882_v28 = vmul.f32 %v1879_v46, %v5749_v14  ;;  %v1906_v3 = vmul.f32 %v4359_v44, %v5750_v34  ;;  %v2190_v46 = vmul.f32 %v4438_v7, %v5754_v54  ;;  %v5759_v54 = vld [vmem:[#allocation43_spill] sm:$0xff] }
 0x5d3   :  { %1889 = vrot.lane.b32.xlu1 %v1882_v28, %s3069_s21  ;;  %1887 = vrot.lane.b32.xlu0 %v1881_v50, %s3069_s21  ;;  %v5751_v50 = vld [vmem:[#allocation21_spill] sm:$0xff]  ;;  %v5752_v28 = vld [vmem:[#allocation27_spill] sm:$0xff] }
 0x5d4   :  { %v1926_v53 = vmul.f32 %v4359_v44, %v5751_v50  ;;  %v1925_v0 = vmul.f32 %v4366_v8, %v5751_v50  ;;  %v2085_v63 = vmul.f32 %v4489_v40, %v5752_v28  ;;  %v1927_v48 = vmul.f32 %v4385_v12, %v5751_v50 }
 0x5d5   :  { %v2087_v14 = vmul.f32 %v4497_v39, %v5752_v28  ;;  %v2086_v51 = vmul.f32 %v4438_v7, %v5752_v28  ;;  %v5757_v28 = vld [vmem:[#allocation46_spill] sm:$0xff] }
 0x5d6   :  { %v2295_v13 = vmul.f32 %v4497_v39, %v5757_v28 }
 0x5d7   :  { %1911 = vrot.lane.b32.xlu1 %v1905_v16, %s3061_s14  ;;  %1891 = vrot.lane.b32.xlu0 %v1883_v38, %s3069_s21  ;;  %v5755_v38 = vld [vmem:[#allocation40_spill] sm:$0xff] }
 0x5d8   :  { %v2126_v34 = vmul.f32 %v4438_v7, %v5755_v38  ;;  %v2125_v16 = vmul.f32 %v4489_v40, %v5755_v38  ;;  %v2127_v50 = vmul.f32 %v4497_v39, %v5755_v38  ;;  %v2231_v38 = vmul.f32 %v4497_v39, %v5759_v54 }
 0x5db   :  { %1915 = vrot.lane.b32.xlu1 %v1907_v9, %s3061_s14  ;;  %1913 = vrot.lane.b32.xlu0 %v1906_v3, %s3061_s14  ;;  %v5756_v9 = vld [vmem:[#allocation29_spill] sm:$0xff] }
 0x5dc   :  { %v2209_v3 = vmul.f32 %v4489_v40, %v5756_v9 }
 0x5df   :  { %1933 = vrot.lane.b32.xlu1 %v1926_v53, %s3062_s15  ;;  %1931 = vrot.lane.b32.xlu0 %v1925_v0, %s3062_s15  ;;  %v2211_v53 = vmul.f32 %v4497_v39, %v5756_v9  ;;  %v2210_v0 = vmul.f32 %v4438_v7, %v5756_v9  ;;  %v5761_v9 = vld [vmem:[#allocation51_spill] sm:$0xff] }
 0x5e3   :  { %2091 = vrot.lane.b32.xlu1 %v2085_v63, %s3061_s14  ;;  %1935 = vrot.lane.b32.xlu0 %v1927_v48, %s3062_s15  ;;  %v2294_v63 = vmul.f32 %v4438_v7, %v5757_v28  ;;  %v2293_v48 = vmul.f32 %v4489_v40, %v5757_v28  ;;  %v2399_v28 = vmul.f32 %v4497_v39, %v5761_v9 }
 0x5e7   :  { %2095 = vrot.lane.b32.xlu1 %v2087_v14, %s3061_s14  ;;  %2093 = vrot.lane.b32.xlu0 %v2086_v51, %s3061_s14  ;;  %v5758_v14 = vld [vmem:[#allocation41_spill] sm:$0xff] }
 0x5e8   :  { %v2145_v51 = vmul.f32 %v4489_v40, %v5758_v14 }
 0x5eb   :  { %2113 = vrot.lane.b32.xlu1 %v2106_v41, %s3062_s15  ;;  %2111 = vrot.lane.b32.xlu0 %v2105_v20, %s3062_s15  ;;  %v2147_v41 = vmul.f32 %v4497_v39, %v5758_v14  ;;  %v2146_v20 = vmul.f32 %v4438_v7, %v5758_v14  ;;  %v5763_v14 = vld [vmem:[#allocation48_spill] sm:$0xff] }
 0x5ef   :  { %2195 = vrot.lane.b32.xlu1 %v2189_v17, %s3061_s14  ;;  %2115 = vrot.lane.b32.xlu0 %v2107_v15, %s3062_s15  ;;  %v2230_v17 = vmul.f32 %v4438_v7, %v5759_v54  ;;  %v2229_v15 = vmul.f32 %v4489_v40, %v5759_v54  ;;  %v2335_v54 = vmul.f32 %v4497_v39, %v5763_v14 }
 0x5f3   :  { %2199 = vrot.lane.b32.xlu1 %v2191_v26, %s3061_s14  ;;  %2197 = vrot.lane.b32.xlu0 %v2190_v46, %s3061_s14  ;;  %v5760_v26 = vld [vmem:[#allocation45_spill] sm:$0xff] }
 0x5f4   :  { %v2313_v46 = vmul.f32 %v4489_v40, %v5760_v26 }
 0x5f7   :  { %2133 = vrot.lane.b32.xlu1 %v2126_v34, %s3064_s16  ;;  %2131 = vrot.lane.b32.xlu0 %v2125_v16, %s3064_s16  ;;  %v2315_v34 = vmul.f32 %v4497_v39, %v5760_v26  ;;  %v2314_v16 = vmul.f32 %v4438_v7, %v5760_v26  ;;  %v5765_v26 = vld [vmem:[#allocation49_spill] sm:$0xff] }
 0x5fb   :  { %2215 = vrot.lane.b32.xlu1 %v2209_v3, %s3062_s15  ;;  %2135 = vrot.lane.b32.xlu0 %v2127_v50, %s3064_s16  ;;  %v2398_v3 = vmul.f32 %v4438_v7, %v5761_v9  ;;  %v2397_v50 = vmul.f32 %v4489_v40, %v5761_v9  ;;  %v2355_v9 = vmul.f32 %v4497_v39, %v5765_v26 }
 0x5ff   :  { %2219 = vrot.lane.b32.xlu1 %v2211_v53, %s3062_s15  ;;  %2217 = vrot.lane.b32.xlu0 %v2210_v0, %s3062_s15  ;;  %v5762_v53 = vld [vmem:[#allocation44_spill] sm:$0xff] }
 0x600   :  { %v2249_v0 = vmul.f32 %v4489_v40, %v5762_v53 }
 0x603   :  { %2301 = vrot.lane.b32.xlu1 %v2294_v63, %s3061_s14  ;;  %2299 = vrot.lane.b32.xlu0 %v2293_v48, %s3061_s14  ;;  %v2251_v63 = vmul.f32 %v4497_v39, %v5762_v53  ;;  %v2250_v48 = vmul.f32 %v4438_v7, %v5762_v53 }
 0x607   :  { %2151 = vrot.lane.b32.xlu1 %v2145_v51, %s3065_s17  ;;  %2303 = vrot.lane.b32.xlu0 %v2295_v13, %s3061_s14  ;;  %v2334_v51 = vmul.f32 %v4438_v7, %v5763_v14  ;;  %v2333_v13 = vmul.f32 %v4489_v40, %v5763_v14 }
 0x60b   :  { %2155 = vrot.lane.b32.xlu1 %v2147_v41, %s3065_s17  ;;  %2153 = vrot.lane.b32.xlu0 %v2146_v20, %s3065_s17  ;;  %v5764_v41 = vld [vmem:[#allocation84_spill] sm:$0xff] }
 0x60c   :  { %v2417_v20 = vmul.f32 %v4489_v40, %v5764_v41 }
 0x60f   :  { %2237 = vrot.lane.b32.xlu1 %v2230_v17, %s3064_s16  ;;  %2235 = vrot.lane.b32.xlu0 %v2229_v15, %s3064_s16  ;;  %v2419_v17 = vmul.f32 %v4497_v39, %v5764_v41  ;;  %v2418_v15 = vmul.f32 %v4438_v7, %v5764_v41 }
 0x613   :  { %2319 = vrot.lane.b32.xlu1 %v2313_v46, %s3062_s15  ;;  %2239 = vrot.lane.b32.xlu0 %v2231_v38, %s3064_s16  ;;  %v2354_v46 = vmul.f32 %v4438_v7, %v5765_v26  ;;  %v2353_v38 = vmul.f32 %v4489_v40, %v5765_v26 }
 0x617   :  { %2323 = vrot.lane.b32.xlu1 %v2315_v34, %s3062_s15  ;;  %2321 = vrot.lane.b32.xlu0 %v2314_v16, %s3062_s15  ;;  %v5766_v34 = vld [vmem:[#allocation97_spill] sm:$0xff] }
 0x618   :  { %v2437_v16 = vmul.f32 %v4489_v40, %v5766_v34  ;;  %v2438_v53 = vmul.f32 %v4438_v7, %v5766_v34 }
 0x61b   :  { %2405 = vrot.lane.b32.xlu1 %v2398_v3, %s3061_s14  ;;  %2403 = vrot.lane.b32.xlu0 %v2397_v50, %s3061_s14  ;;  %v4628_v3 = vmul.f32 0.00390625, %v4458_v19  ;;  %v2439_v50 = vmul.f32 %v4497_v39, %v5766_v34 }
 0x61d   :  { %v2724_v19 = vrot.slane %v4628_v3, %v5711_v24  ;;  %v2734_v41 = vrot.slane %v4628_v3, %v5710_v52  ;;  %v2764_v26 = vrot.slane %v4628_v3, %v5714_v36 }
 0x61f   :  { %2255 = vrot.lane.b32.xlu1 %v2249_v0, %s3065_s17  ;;  %2407 = vrot.lane.b32.xlu0 %v2399_v28, %s3061_s14  ;;  %v5767_v0 = vld [vmem:[#allocation100_spill] sm:$0xff] }
 0x620   :  { %v2458_v28 = vmul.f32 %v4438_v7, %v5767_v0 }
 0x623   :  { %2259 = vrot.lane.b32.xlu1 %v2251_v63, %s3065_s17  ;;  %2257 = vrot.lane.b32.xlu0 %v2250_v48, %s3065_s17  ;;  %v2457_v63 = vmul.f32 %v4489_v40, %v5767_v0  ;;  %v4647_v48 = vld [vmem:[%s5362_s9] sm:$0xf]  ;;  %s5771_s9 = smov 118  }
 0x624   :  { %v2725_v14 = vmul.f32 %v4647_v48, %v2724_v19 }
 0x627   :  { %2341 = vrot.lane.b32.xlu1 %v2334_v51, %s3064_s16  ;;  %2339 = vrot.lane.b32.xlu0 %v2333_v13, %s3064_s16  ;;  %v2459_v51 = vmul.f32 %v4497_v39, %v5767_v0  ;;  %v2744_v13 = vrot.slane %v4628_v3, %v5712_v2  ;;  %v2774_v0 = vrot.slane %v4628_v3, %v5715_v47 }
 0x629   :  { %v2775_v19 = vmul.f32 %v4647_v48, %v2774_v0 }
 0x62b   :  { %2423 = vrot.lane.b32.xlu1 %v2417_v20, %s3062_s15  ;;  %2343 = vrot.lane.b32.xlu0 %v2335_v54, %s3064_s16 }
 0x62f   :  { %2427 = vrot.lane.b32.xlu1 %v2419_v17, %s3062_s15  ;;  %2425 = vrot.lane.b32.xlu0 %v2418_v15, %s3062_s15  ;;  %v2745_v17 = vmul.f32 %v4647_v48, %v2744_v13  ;;  %v2735_v15 = vmul.f32 %v4647_v48, %v2734_v41 }
 0x633   :  { %2361 = vrot.lane.b32.xlu1 %v2354_v46, %s3065_s17  ;;  %2359 = vrot.lane.b32.xlu0 %v2353_v38, %s3065_s17  ;;  %v2754_v46 = vrot.slane %v4628_v3, %v5713_v60  ;;  %v4671_v38 = vmul.f32 0.00390625, %v4456_v25 }
 0x637   :  { %2443 = vrot.lane.b32.xlu1 %v2437_v16, %s3064_s16  ;;  %2363 = vrot.lane.b32.xlu0 %v2355_v9, %s3065_s17  ;;  %v2765_v9 = vmul.f32 %v4647_v48, %v2764_v26  ;;  %v2824_v26 = vrot.slane %v4671_v38, %v5712_v2 }
 0x63b   :  { %2447 = vrot.lane.b32.xlu1 %v2439_v50, %s3064_s16  ;;  %2445 = vrot.lane.b32.xlu0 %v2438_v53, %s3064_s16  ;;  %v2755_v50 = vmul.f32 %v4647_v48, %v2754_v46  ;;  %v2784_v53 = vrot.slane %v4628_v3, %v4257_v61  ;;  %v2814_v46 = vrot.slane %v4671_v38, %v5710_v52 }
 0x63d   :  { %v2815_v0 = vmul.f32 %v4647_v48, %v2814_v46 }
 0x63f   :  { %2465 = vrot.lane.b32.xlu1 %v2458_v28, %s3065_s17  ;;  %2463 = vrot.lane.b32.xlu0 %v2457_v63, %s3065_s17  ;;  %v2785_v63 = vmul.f32 %v4647_v48, %v2784_v53  ;;  %v2825_v53 = vmul.f32 %v4647_v48, %v2824_v26 }
 0x643   :  { %2727 = vrot.lane.b32.xlu1 %v2725_v14, %s3069_s21  ;;  %2467 = vrot.lane.b32.xlu0 %v2459_v51, %s3065_s17  ;;  %v2804_v14 = vrot.slane %v4671_v38, %v5711_v24  ;;  %v2794_v51 = vrot.slane %v4671_v38, %v5718_v6 }
 0x645   :  { %v4658_v20 = vpop.permute.xlu1 %1889  ;;  %v4660_v54 = vpop.permute.xlu0 %1887 }
 0x646   :  { %5768 = vst [vmem:[#allocation15_spill] sm:$0xff] %v4658_v20  ;;  %5769 = vst [vmem:[#allocation16_spill] sm:$0xff] %v4660_v54 }
 0x647   :  { %2747 = vrot.lane.b32.xlu1 %v2745_v17, %s3071_s1  ;;  %2737 = vrot.lane.b32.xlu0 %v2735_v15, %s3070_s22  ;;  %v2805_v17 = vmul.f32 %v4647_v48, %v2804_v14  ;;  %v2795_v15 = vmul.f32 %v4647_v48, %v2794_v51  ;;  %v1899_v14 = vmul.f32 %v4366_v8, %v3897_v22 }
 0x648   :  { %v1900_v8 = vmul.f32 %v4359_v44, %v3897_v22 }
 0x649   :  { %v1912_v34 = vpop.permute.xlu1 %1911  ;;  %v4673_v16 = vpop.permute.xlu0 %1891 }
 0x64a   :  { %5770 = vst [vmem:[#allocation18_spill] sm:$0xff] %v4673_v16 }
 0x64b   :  { %2767 = vrot.lane.b32.xlu1 %v2765_v9, %s3073_s24  ;;  %2757 = vrot.lane.b32.xlu0 %v2755_v50, %s3072_s23 }
 0x64d   :  { %v1916_v28 = vpop.permute.xlu1 %1915  ;;  %v1914_v25 = vpop.permute.xlu0 %1913 }
 0x64f   :  { %2787 = vrot.lane.b32.xlu1 %v2785_v63, %s3075_s26  ;;  %2777 = vrot.lane.b32.xlu0 %v2775_v19, %s3074_s25  ;;  %v2834_v63 = vrot.slane %v4671_v38, %v5713_v60  ;;  %v1917_v19 = vsel %vm234_vm6, %v1912_v34, %v1914_v25  ;;  %v1901_v34 = vmul.f32 %v4385_v12, %v3897_v22 }
 0x650   :  { %v1922_v52 = vadd.f32 %v1917_v19, %v1899_v14  ;;  %v2844_v19 = vrot.slane %v4671_v38, %v5714_v36 }
 0x651   :  { %v1934_v13 = vpop.permute.xlu1 %1933  ;;  %v1932_v41 = vpop.permute.xlu0 %1931  ;;  %v2835_v46 = vmul.f32 %v4647_v48, %v2834_v63  ;;  %v1924_v12 = vadd.f32 %v1916_v28, %v1901_v34 }
 0x652   :  { %v1937_v2 = vsel %vm257_vm7, %v1932_v41, %v1934_v13 }
 0x653   :  { %2807 = vrot.lane.b32.xlu1 %v2805_v17, %s3077_s28  ;;  %2797 = vrot.lane.b32.xlu0 %v2795_v15, %s3076_s27  ;;  %v5772_v15 = vld [vmem:[#allocation35_spill] sm:$0xff] }
 0x654   :  { %v2003_v26 = vmul.f32 %v4489_v40, %v5772_v15  ;;  %v2005_v63 = vmul.f32 %v4497_v39, %v5772_v15  ;;  %v2004_v41 = vmul.f32 %v4438_v7, %v5772_v15  ;;  %v2845_v15 = vmul.f32 %v4647_v48, %v2844_v19 }
 0x655   :  { %v4699_v9 = vpop.permute.xlu1 %2091  ;;  %v1936_v50 = vpop.permute.xlu0 %1935 }
 0x656   :  { %v1938_v14 = vsel %vm257_vm7, %v1934_v13, %v1936_v50 }
 0x657   :  { %2827 = vrot.lane.b32.xlu1 %v2825_v53, %s3079_s13  ;;  %2817 = vrot.lane.b32.xlu0 %v2815_v0, %s5771_s9  ;;  %v1918_v53 = vsel %vm234_vm6, %v1914_v25, %v1916_v28  ;;  %v1942_v0 = vadd.f32 %v1937_v2, %v1922_v52  ;;  %v1944_v52 = vadd.f32 %v1936_v50, %v1924_v12 }
 0x659   :  { %v4710_v51 = vpop.permute.xlu1 %2095  ;;  %v2094_v17 = vpop.permute.xlu0 %2093  ;;  %v1945_v22 = vmul.f32 %v1942_v0, %v3414_v57  ;;  %v1947_v13 = vmul.f32 %v1944_v52, %v3372_v37 }
 0x65b   :  { %2009 = vrot.lane.b32.xlu1 %v2003_v26, %s3061_s14  ;;  %2837 = vrot.lane.b32.xlu0 %v2835_v46, %s3080_s18  ;;  %v1923_v26 = vadd.f32 %v1918_v53, %v1900_v8  ;;  %v5773_v53 = vld [vmem:[#allocation36_spill] sm:$0xff] }
 0x65c   :  { %v2022_v0 = vmul.f32 %v4438_v7, %v5773_v53 }
 0x65d   :  { %v2114_v24 = vpop.permute.xlu1 %2113  ;;  %v2112_v54 = vpop.permute.xlu0 %2111  ;;  %v1943_v2 = vadd.f32 %v1938_v14, %v1923_v26  ;;  %v2023_v14 = vmul.f32 %v4497_v39, %v5773_v53 }
 0x65f   :  { %2013 = vrot.lane.b32.xlu1 %v2005_v63, %s3061_s14  ;;  %2011 = vrot.lane.b32.xlu0 %v2004_v41, %s3061_s14  ;;  %v1946_v28 = vmul.f32 %v1943_v2, %v3969_v11  ;;  %v2021_v63 = vmul.f32 %v4489_v40, %v5773_v53  ;;  %v2854_v11 = vrot.slane %v4671_v38, %v5715_v47  ;;  %s5775_s14 = smov 113  }
 0x661   :  { %v4733_v25 = vpop.permute.xlu1 %2195  ;;  %v2116_v46 = vpop.permute.xlu0 %2115  ;;  %v2855_v19 = vmul.f32 %v4647_v48, %v2854_v11  ;;  %v2098_v11 = vsel %vm234_vm6, %v2094_v17, %v4710_v51 }
 0x663   :  { %2847 = vrot.lane.b32.xlu0 %v2845_v15, %s3081_s20  ;;  %1951 = vrot.lane.b32.xlu1 %v1945_v22, %s3070_s22  ;;  %v5774_v22 = vld [vmem:[#allocation37_spill] sm:$0xff]  ;;  %v2864_v15 = vrot.slane %v4671_v38, %v4257_v61  ;;  %v2079_v38 = vmul.f32 %v4489_v40, %v3428_v18  ;;  %v5776_v61 = vld [vmem:[#allocation38_spill] sm:$0xff] }
 0x664   :  { %v2040_v2 = vmul.f32 %v4438_v7, %v5774_v22  ;;  %v2039_v52 = vmul.f32 %v4489_v40, %v5774_v22  ;;  %v2058_v47 = vmul.f32 %v4438_v7, %v5776_v61  ;;  %v2059_v20 = vmul.f32 %v4497_v39, %v5776_v61 }
 0x665   :  { %v4740_v34 = vpop.permute.xlu1 %2199  ;;  %v4742_v8 = vpop.permute.xlu0 %2197  ;;  %v2865_v53 = vmul.f32 %v4647_v48, %v2864_v15 }
 0x667   :  { %1955 = vrot.lane.b32.xlu1 %v1947_v13, %s3070_s22  ;;  %1953 = vrot.lane.b32.xlu0 %v1946_v28, %s3070_s22 }
 0x669   :  { %v2134_v57 = vpop.permute.xlu1 %2133  ;;  %v2132_v50 = vpop.permute.xlu0 %2131 }
 0x66b   :  { %2029 = vrot.lane.b32.xlu1 %v2022_v0, %s3062_s15  ;;  %2027 = vrot.lane.b32.xlu0 %v2021_v63, %s3062_s15  ;;  %v2041_v0 = vmul.f32 %v4497_v39, %v5774_v22  ;;  %v2097_v63 = vsel %vm234_vm6, %v4699_v9, %v2094_v17  ;;  %v2117_v22 = vsel %vm257_vm7, %v2112_v54, %v2114_v24 }
 0x66c   :  { %v2118_v9 = vsel %vm257_vm7, %v2114_v24, %v2116_v46 }
 0x66d   :  { %v4754_v37 = vpop.permute.xlu1 %2215  ;;  %v2136_v41 = vpop.permute.xlu0 %2135 }
 0x66e   :  { %v2138_v36 = vsel %vm612_vm10, %v2134_v57, %v2136_v41 }
 0x66f   :  { %2857 = vrot.lane.b32.xlu1 %v2855_v19, %s3082_s29  ;;  %2031 = vrot.lane.b32.xlu0 %v2023_v14, %s3062_s15  ;;  %v2080_v19 = vmul.f32 %v4438_v7, %v3428_v18  ;;  %v2081_v14 = vmul.f32 %v4497_v39, %v3428_v18 }
 0x671   :  { %v4761_v12 = vpop.permute.xlu1 %2219  ;;  %v4763_v26 = vpop.permute.xlu0 %2217  ;;  %v2104_v18 = vadd.f32 %v4710_v51, %v2081_v14 }
 0x673   :  { %2047 = vrot.lane.b32.xlu1 %v2040_v2, %s3064_s16  ;;  %2045 = vrot.lane.b32.xlu0 %v2039_v52, %s3064_s16  ;;  %v2102_v2 = vadd.f32 %v2097_v63, %v2079_v38  ;;  %v2103_v52 = vadd.f32 %v2098_v11, %v2080_v19  ;;  %v2124_v24 = vadd.f32 %v2116_v46, %v2104_v18 }
 0x675   :  { %v4773_v28 = vpop.permute.xlu1 %2301  ;;  %v4775_v13 = vpop.permute.xlu0 %2299  ;;  %v2122_v54 = vadd.f32 %v2117_v22, %v2102_v2  ;;  %v2123_v10 = vadd.f32 %v2118_v9, %v2103_v52  ;;  %v2144_v16 = vadd.f32 %v2136_v41, %v2124_v24 }
 0x677   :  { %2867 = vrot.lane.b32.xlu1 %v2865_v53, %s5775_s14  ;;  %2049 = vrot.lane.b32.xlu0 %v2041_v0, %s3064_s16  ;;  %v2057_v53 = vmul.f32 %v4489_v40, %v5776_v61  ;;  %v2137_v0 = vsel %vm612_vm10, %v2132_v50, %v2134_v57  ;;  %v2143_v11 = vadd.f32 %v2138_v36, %v2123_v10 }
 0x678   :  { %v2142_v63 = vadd.f32 %v2137_v0, %v2122_v54  ;;  %v2222_v0 = vsel %vm257_vm7, %v4763_v26, %v4761_v12 }
 0x679   :  { %v2152_v17 = vpop.permute.xlu1 %2151  ;;  %v4794_v15 = vpop.permute.xlu0 %2303 }
 0x67b   :  { %2065 = vrot.lane.b32.xlu1 %v2058_v47, %s3065_s17  ;;  %2063 = vrot.lane.b32.xlu0 %v2057_v53, %s3065_s17  ;;  %v2221_v53 = vsel %vm257_vm7, %v4754_v37, %v4763_v26 }
 0x67d   :  { %v2156_v38 = vpop.permute.xlu1 %2155  ;;  %v2154_v19 = vpop.permute.xlu0 %2153 }
 0x67e   :  { %v2157_v50 = vsel %vm635_vm11, %v2152_v17, %v2154_v19  ;;  %v2158_v57 = vsel %vm635_vm11, %v2154_v19, %v2156_v38  ;;  %v2164_v47 = vadd.f32 %v2156_v38, %v2144_v16  ;;  %v2184_v17 = vmul.f32 %v4438_v7, %v3905_v42 }
 0x67f   :  { %v2162_v51 = vadd.f32 %v2157_v50, %v2142_v63  ;;  %v2163_v14 = vadd.f32 %v2158_v57, %v2143_v11  ;;  %2067 = vrot.lane.b32.xlu0 %v2059_v20, %s3065_s17 }
 0x680   :  { %v2167_v61 = vmul.f32 %v2164_v47, %v3380_v33  ;;  %v2183_v33 = vmul.f32 %v4489_v40, %v3905_v42 }
 0x681   :  { %v2165_v22 = vmul.f32 %v2162_v51, %v3436_v4  ;;  %v2166_v46 = vmul.f32 %v2163_v14, %v3985_v49  ;;  %v2238_v36 = vpop.permute.xlu1 %2237  ;;  %v2236_v10 = vpop.permute.xlu0 %2235  ;;  %v2201_v4 = vsel %vm234_vm6, %v4733_v25, %v4742_v8  ;;  %v2202_v49 = vsel %vm234_vm6, %v4742_v8, %v4740_v34 }
 0x682   :  { %v2185_v25 = vmul.f32 %v4497_v39, %v3905_v42  ;;  %v2206_v18 = vadd.f32 %v2201_v4, %v2183_v33  ;;  %v2207_v54 = vadd.f32 %v2202_v49, %v2184_v17  ;;  %v2241_v63 = vsel %vm612_vm10, %v2236_v10, %v2238_v36 }
 0x683   :  { %2173 = vrot.lane.b32.xlu0 %v2166_v46, %s3069_s21  ;;  %2171 = vrot.lane.b32.xlu1 %v2165_v22, %s3069_s21 }
 0x684   :  { %v2208_v38 = vadd.f32 %v4740_v34, %v2185_v25  ;;  %v2226_v19 = vadd.f32 %v2221_v53, %v2206_v18  ;;  %v2227_v37 = vadd.f32 %v2222_v0, %v2207_v54  ;;  %v2287_v53 = vmul.f32 %v4489_v40, %v3446_v55 }
 0x685   :  { %v2320_v9 = vpop.permute.xlu1 %2319  ;;  %v2240_v2 = vpop.permute.xlu0 %2239  ;;  %v2289_v18 = vmul.f32 %v4497_v39, %v3446_v55 }
 0x686   :  { %v2242_v11 = vsel %vm612_vm10, %v2238_v36, %v2240_v2  ;;  %v2228_v50 = vadd.f32 %v4761_v12, %v2208_v38  ;;  %v2246_v57 = vadd.f32 %v2241_v63, %v2226_v19 }
 0x687   :  { %2175 = vrot.lane.b32.xlu1 %v2167_v61, %s3069_s21  ;;  %v2247_v26 = vadd.f32 %v2242_v11, %v2227_v37  ;;  %v2312_v63 = vadd.f32 %v4794_v15, %v2289_v18 }
 0x688   :  { %v2248_v22 = vadd.f32 %v2240_v2, %v2228_v50  ;;  %v2305_v2 = vsel %vm234_vm6, %v4775_v13, %v4773_v28  ;;  %v2288_v13 = vmul.f32 %v4438_v7, %v3446_v55 }
 0x689   :  { %v2324_v41 = vpop.permute.xlu1 %2323  ;;  %v2322_v52 = vpop.permute.xlu0 %2321 }
 0x68a   :  { %v2332_v50 = vadd.f32 %v2324_v41, %v2312_v63 }
 0x68d   :  { %v4816_v20 = vpop.permute.xlu1 %2405  ;;  %v4818_v16 = vpop.permute.xlu0 %2403 }
 0x691   :  { %v2256_v8 = vpop.permute.xlu1 %2255  ;;  %v4838_v24 = vpop.permute.xlu0 %2407 }
 0x695   :  { %v2260_v51 = vpop.permute.xlu1 %2259  ;;  %v2258_v14 = vpop.permute.xlu0 %2257 }
 0x696   :  { %v2261_v42 = vsel %vm635_vm11, %v2256_v8, %v2258_v14  ;;  %v2262_v47 = vsel %vm635_vm11, %v2258_v14, %v2260_v51  ;;  %v2268_v10 = vadd.f32 %v2260_v51, %v2248_v22 }
 0x697   :  { %v2266_v46 = vadd.f32 %v2261_v42, %v2246_v57  ;;  %v2267_v61 = vadd.f32 %v2262_v47, %v2247_v26 }
 0x698   :  { %v2271_v12 = vmul.f32 %v2268_v10, %v3440_v21  ;;  %v2306_v21 = vsel %vm234_vm6, %v4773_v28, %v4794_v15  ;;  %v2409_v15 = vsel %vm234_vm6, %v4818_v16, %v4816_v20  ;;  %v2393_v16 = vmul.f32 %v4497_v39, %v5651_v59 }
 0x699   :  { %v2269_v36 = vmul.f32 %v2266_v46, %v3448_v29  ;;  %v2270_v34 = vmul.f32 %v2267_v61, %v4000_v45  ;;  %v2342_v4 = vpop.permute.xlu1 %2341  ;;  %v2340_v49 = vpop.permute.xlu0 %2339  ;;  %v2325_v29 = vsel %vm257_vm7, %v2320_v9, %v2322_v52  ;;  %v2310_v45 = vadd.f32 %v2305_v2, %v2287_v53 }
 0x69a   :  { %v2345_v54 = vsel %vm612_vm10, %v2340_v49, %v2342_v4  ;;  %v2326_v9 = vsel %vm257_vm7, %v2322_v52, %v2324_v41  ;;  %v2311_v11 = vadd.f32 %v2306_v21, %v2288_v13  ;;  %v2391_v41 = vmul.f32 %v4489_v40, %v5651_v59 }
 0x69b   :  { %2277 = vrot.lane.b32.xlu1 %v2270_v34, %s3070_s22  ;;  %2275 = vrot.lane.b32.xlu0 %v2269_v36, %s3070_s22  ;;  %v2330_v8 = vadd.f32 %v2325_v29, %v2310_v45  ;;  %v2392_v2 = vmul.f32 %v4438_v7, %v5651_v59 }
 0x69c   :  { %v2331_v28 = vadd.f32 %v2326_v9, %v2311_v11 }
 0x69d   :  { %v2424_v33 = vpop.permute.xlu1 %2423  ;;  %v2344_v17 = vpop.permute.xlu0 %2343  ;;  %v2350_v38 = vadd.f32 %v2345_v54, %v2330_v8  ;;  %v2718_v8 = vrot.slane %v4628_v3, %v5718_v6 }
 0x69e   :  { %v2346_v57 = vsel %vm612_vm10, %v2342_v4, %v2344_v17  ;;  %v2352_v14 = vadd.f32 %v2344_v17, %v2332_v50 }
 0x69f   :  { %2279 = vrot.lane.b32.xlu0 %v2271_v12, %s3070_s22  ;;  %v2351_v42 = vadd.f32 %v2346_v57, %v2331_v28  ;;  %v2410_v12 = vsel %vm234_vm6, %v4816_v20, %v4838_v24 }
 0x6a0   :  { %v2415_v53 = vadd.f32 %v2410_v12, %v2392_v2  ;;  %v1998_v12 = vmul.f32 %v4489_v40, %v4429_v56  ;;  %v5778_v40 = vld [vmem:[#allocation15_spill] sm:$0xff] }
 0x6a1   :  { %v2428_v0 = vpop.permute.xlu1 %2427  ;;  %v2426_v25 = vpop.permute.xlu0 %2425 }
 0x6a2   :  { %v2429_v10 = vsel %vm257_vm7, %v2424_v33, %v2426_v25 }
 0x6a5   :  { %v2362_v19 = vpop.permute.xlu1 %2361  ;;  %v2360_v37 = vpop.permute.xlu0 %2359 }
 0x6a6   :  { %v2365_v26 = vsel %vm635_vm11, %v2360_v37, %v2362_v19 }
 0x6a7   :  { %v2370_v51 = vadd.f32 %v2365_v26, %v2350_v38 }
 0x6a9   :  { %v2373_v55 = vmul.f32 %v2370_v51, %v3462_v1  ;;  %v2444_v47 = vpop.permute.xlu1 %2443  ;;  %v2364_v22 = vpop.permute.xlu0 %2363  ;;  %v2414_v1 = vadd.f32 %v2409_v15, %v2391_v41 }
 0x6aa   :  { %v2366_v52 = vsel %vm635_vm11, %v2362_v19, %v2364_v22  ;;  %v2372_v46 = vadd.f32 %v2364_v22, %v2352_v14 }
 0x6ab   :  { %v2371_v61 = vadd.f32 %v2366_v52, %v2351_v42  ;;  %2379 = vrot.lane.b32.xlu1 %v2373_v55, %s3071_s1  ;;  %v2434_v33 = vadd.f32 %v2429_v10, %v2414_v1  ;;  %v1791_v10 = vmul.f32 %v4359_v44, %v4425_v31 }
 0x6ac   :  { %v2375_v36 = vmul.f32 %v2372_v46, %v3458_v30  ;;  %v2416_v30 = vadd.f32 %v4838_v24, %v2393_v16 }
 0x6ad   :  { %v2374_v34 = vmul.f32 %v2371_v61, %v4011_v5  ;;  %v2448_v4 = vpop.permute.xlu1 %2447  ;;  %v2446_v49 = vpop.permute.xlu0 %2445  ;;  %v2430_v5 = vsel %vm257_vm7, %v2426_v25, %v2428_v0  ;;  %v1808_v61 = vsel %vm234_vm6, %v4444_v58, %v4450_v43  ;;  %v1999_v43 = vmul.f32 %v4438_v7, %v4429_v56  ;;  %v5779_v7 = vld [vmem:[#allocation4_spill] sm:$0xff] }
 0x6ae   :  { %v2449_v17 = vsel %vm612_vm10, %v2444_v47, %v2446_v49  ;;  %v2436_v18 = vadd.f32 %v2428_v0, %v2416_v30  ;;  %v2450_v20 = vsel %vm612_vm10, %v2446_v49, %v2448_v4  ;;  %v2435_v54 = vadd.f32 %v2430_v5, %v2415_v53 }
 0x6af   :  { %2383 = vrot.lane.b32.xlu1 %v2375_v36, %s3071_s1  ;;  %2381 = vrot.lane.b32.xlu0 %v2374_v34, %s3071_s1  ;;  %v2454_v39 = vadd.f32 %v2449_v17, %v2434_v33  ;;  %v2719_v0 = vmul.f32 %v4647_v48, %v2718_v8  ;;  %v1826_v36 = vsel %vm257_vm7, %v4454_v35, %v4452_v27 }
 0x6b0   :  { %v2456_v13 = vadd.f32 %v2448_v4, %v2436_v18  ;;  %v2455_v63 = vadd.f32 %v2450_v20, %v2435_v54  ;;  %v1812_v34 = vadd.f32 %v1808_v61, %v1791_v10  ;;  %v3029_v4 = vld [vmem:[%s5356_s5] sm:$0x77]  ;;  %v211_v20 = vmul.f32 %v4425_v31, %v5779_v7  ;;  %v5792_v7 = vld [vmem:[#allocation87_spill] sm:$0xff] }
 0x6b1   :  { %v2466_v29 = vpop.permute.xlu1 %2465  ;;  %v2464_v45 = vpop.permute.xlu0 %2463  ;;  %v272_v49 = vrot.slane %v3029_v4, %v5713_v60  ;;  %v5780_v54 = vld [vmem:[#allocation10_spill] sm:$0xff] }
 0x6b2   :  { %v2469_v21 = vsel %vm635_vm11, %v2464_v45, %v2466_v29  ;;  %v1830_v2 = vadd.f32 %v1826_v36, %v1812_v34  ;;  %v5777_v45 = vld [vmem:[#allocation18_spill] sm:$0xff] }
 0x6b3   :  { %v2474_v59 = vadd.f32 %v2469_v21, %v2454_v39  ;;  %v282_v53 = vrot.slane %v272_v49, %v5718_v6  ;;  %v1894_v18 = vsel %vm386_vm14, %v5778_v40, %v5777_v45 }
 0x6b5   :  { %v2477_v24 = vmul.f32 %v2474_v59, %v4122_v32  ;;  %v2728_v9 = vpop.permute.xlu1 %2727  ;;  %v2468_v25 = vpop.permute.xlu0 %2467  ;;  %v1832_v21 = vmul.f32 %v1830_v2, %v282_v53  ;;  %v212_v59 = vmul.f32 %v4425_v31, %v5780_v54 }
 0x6b6   :  { %v2470_v11 = vsel %vm635_vm11, %v2466_v29, %v2468_v25  ;;  %v2476_v38 = vadd.f32 %v2468_v25, %v2456_v13  ;;  %v2730_v3 = vadd.f32 %v2728_v9, %v2719_v0  ;;  %v5781_v9 = vld [vmem:[#allocation78_spill] sm:$0xff] }
 0x6b7   :  { %v2475_v19 = vadd.f32 %v2470_v11, %v2455_v63  ;;  %2483 = vrot.lane.b32.xlu0 %v2477_v24, %s3072_s23  ;;  %v1898_v8 = vadd.f32 %v1894_v18, %v1832_v21  ;;  %v5782_v25 = vld [vmem:[#allocation66_spill] sm:$0xff]  ;;  %v5791_v18 = vld [vmem:[#allocation52_spill] sm:$0xff] }
 0x6b8   :  { %v2479_v37 = vmul.f32 %v2476_v38, %v4124_v23  ;;  %v235_v11 = vsel %vm234_vm6, %v5782_v25, %v5781_v9  ;;  %v5796_v25 = vld [vmem:[#allocation80_spill] sm:$0xff] }
 0x6b9   :  { %v2478_v50 = vmul.f32 %v2475_v19, %v4128_v62  ;;  %v2748_v57 = vpop.permute.xlu1 %2747  ;;  %v2738_v26 = vpop.permute.xlu0 %2737  ;;  %v5783_v19 = vld [vmem:[#allocation68_spill] sm:$0xff] }
 0x6ba   :  { %v2740_v32 = vadd.f32 %v2738_v26, %v2730_v3  ;;  %v236_v0 = vsel %vm234_vm6, %v5781_v9, %v5783_v19  ;;  %v5795_v9 = vld [vmem:[#allocation85_spill] sm:$0xff] }
 0x6bb   :  { %2487 = vrot.lane.b32.xlu0 %v2479_v37, %s3072_s23  ;;  %2485 = vrot.lane.b32.xlu1 %v2478_v50, %s3072_s23  ;;  %v239_v37 = vadd.f32 %v235_v11, %v211_v20  ;;  %v268_v50 = vrot.slane %v3029_v4, %v5718_v6  ;;  %v240_v26 = vadd.f32 %v236_v0, %v212_v59  ;;  %v5793_v20 = vld [vmem:[#allocation56_spill] sm:$0xff] }
 0x6bc   :  { %v2750_v14 = vadd.f32 %v2748_v57, %v2740_v32  ;;  %v568_v21 = vsel %vm234_vm6, %v5793_v20, %v5792_v7  ;;  %v493_v11 = vsel %vm492_vm15, %v5796_v25, %v5795_v9  ;;  %v3032_v20 = vld [vmem:[%s5360_s8 + $0x8] sm:$0x1f] }
 0x6bd   :  { %v2768_v28 = vpop.permute.xlu1 %2767  ;;  %v2758_v51 = vpop.permute.xlu0 %2757 }
 0x6be   :  { %v2760_v47 = vadd.f32 %v2758_v51, %v2750_v14  ;;  %v5784_v51 = vld [vmem:[#allocation86_spill] sm:$0xff]  ;;  %v5785_v14 = vld [vmem:[#allocation69_spill] sm:$0xff] }
 0x6c0   :  { %v2770_v15 = vadd.f32 %v2768_v28, %v2760_v47  ;;  %v5786_v47 = vld [vmem:[#allocation54_spill] sm:$0xff] }
 0x6c1   :  { %v2788_v42 = vpop.permute.xlu1 %2787  ;;  %v2778_v55 = vpop.permute.xlu0 %2777 }
 0x6c2   :  { %v2780_v62 = vadd.f32 %v2778_v55, %v2770_v15  ;;  %v4954_v15 = vrot.slane %v268_v50, %v5718_v6 }
 0x6c4   :  { %v2790_v1 = vadd.f32 %v2788_v42, %v2780_v62  ;;  %v258_v42 = vsel %vm257_vm7, %v5785_v14, %v5784_v51 }
 0x6c5   :  { %v2808_v22 = vpop.permute.xlu1 %2807  ;;  %v2798_v48 = vpop.permute.xlu0 %2797 }
 0x6c6   :  { %v2800_v5 = vadd.f32 %v2798_v48, %v2790_v1  ;;  %v262_v48 = vadd.f32 %v258_v42, %v239_v37  ;;  %v5797_v37 = vld [vmem:[#allocation92_spill] sm:$0xff]  ;;  %v5800_v42 = vld [vmem:[#allocation59_spill] sm:$0xff] }
 0x6c7   :  { %v494_v50 = vsel %vm492_vm15, %v5795_v9, %v5797_v37  ;;  %v5813_v37 = vld [vmem:[#allocation65_spill] sm:$0xff] }
 0x6c8   :  { %v2810_v13 = vadd.f32 %v2808_v22, %v2800_v5  ;;  %v259_v22 = vsel %vm257_vm7, %v5784_v51, %v5786_v47  ;;  %v283_v1 = vmul.f32 %v4954_v15, %v262_v48  ;;  %v3030_v48 = vld [vmem:[#allocation2] sm:$0xff] }
 0x6c9   :  { %v2828_v23 = vpop.permute.xlu1 %2827  ;;  %v2818_v52 = vpop.permute.xlu0 %2817  ;;  %v263_v62 = vadd.f32 %v259_v22, %v240_v26 }
 0x6ca   :  { %v2820_v3 = vadd.f32 %v2818_v52, %v2810_v13  ;;  %v5794_v13 = vld [vmem:[#allocation57_spill] sm:$0xff] }
 0x6cb   :  { %v284_v4 = vmul.f32 %v282_v53, %v263_v62  ;;  %v1790_v62 = vmul.f32 %v3030_v48, %v4425_v31  ;;  %v5806_v31 = vld [vmem:[#allocation30_spill] sm:$0xff] }
 0x6cd   :  { %v2010_v46 = vpop.permute.xlu1 %2009  ;;  %v2838_v41 = vpop.permute.xlu0 %2837 }
 0x6d1   :  { %v2014_v16 = vpop.permute.xlu1 %2013  ;;  %v2012_v44 = vpop.permute.xlu0 %2011 }
 0x6d2   :  { %v2015_v17 = vsel %vm234_vm6, %v2010_v46, %v2012_v44  ;;  %v2016_v27 = vsel %vm234_vm6, %v2012_v44, %v2014_v16  ;;  %v2830_v46 = vadd.f32 %v2828_v23, %v2820_v3  ;;  %v5787_v16 = vld [vmem:[#allocation14_spill] sm:$0xff]  ;;  %v5790_v23 = vld [vmem:[#allocation19_spill] sm:$0xff] }
 0x6d3   :  { %v2019_v33 = vadd.f32 %v2015_v17, %v1998_v12  ;;  %v2020_v30 = vadd.f32 %v2016_v27, %v1999_v43  ;;  %v545_v12 = vmul.f32 %v4429_v56, %v5787_v16  ;;  %v5788_v17 = vld [vmem:[#allocation72_spill] sm:$0xff] }
 0x6d4   :  { %v2840_v49 = vadd.f32 %v2838_v41, %v2830_v46  ;;  %v5789_v27 = vld [vmem:[#allocation64_spill] sm:$0xff]  ;;  %v5801_v46 = vld [vmem:[#allocation13_spill] sm:$0xff] }
 0x6d5   :  { %v4924_v39 = vpop.permute.xlu1 %1951  ;;  %v2848_v29 = vpop.permute.xlu0 %2847  ;;  %v387_v2 = vsel %vm386_vm14, %v5789_v27, %v5788_v17 }
 0x6d6   :  { %v2850_v5 = vadd.f32 %v2848_v29, %v2840_v49  ;;  %v391_v41 = vadd.f32 %v387_v2, %v283_v1  ;;  %v572_v29 = vadd.f32 %v568_v21, %v545_v12  ;;  %v5804_v1 = vld [vmem:[#allocation17_spill] sm:$0xff]  ;;  %v5807_v2 = vld [vmem:[#allocation90_spill] sm:$0xff]  ;;  %v5029_v21 = vrot.slane %v3032_v20, %v5718_v6 }
 0x6d7   :  { %v5805_v49 = vld [vmem:[#allocation61_spill] sm:$0xff] }
 0x6d8   :  { %v497_v26 = vadd.f32 %v493_v11, %v391_v41 }
 0x6d9   :  { %v1956_v63 = vpop.permute.xlu1 %1955  ;;  %v4933_v24 = vpop.permute.xlu0 %1953 }
 0x6da   :  { %v1958_v38 = vsel %vm492_vm15, %v4933_v24, %v1956_v63 }
 0x6db   :  { %v4944_v57 = vadd.f32 %v1958_v38, %v1898_v8 }
 0x6dd   :  { %v2030_v32 = vpop.permute.xlu1 %2029  ;;  %v2028_v28 = vpop.permute.xlu0 %2027  ;;  %v5063_v48 = vadd.f32 %v4944_v57, %v5801_v46  ;;  %v5820_v57 = vld [vmem:[#allocation105_spill] sm:$0xff] }
 0x6de   :  { %v2033_v55 = vsel %vm257_vm7, %v2028_v28, %v2030_v32  ;;  %v5799_v28 = vld [vmem:[#allocation58_spill] sm:$0xff] }
 0x6df   :  { %v2037_v61 = vadd.f32 %v2033_v55, %v2019_v33  ;;  %v546_v33 = vmul.f32 %v4429_v56, %v5790_v23  ;;  %v569_v56 = vsel %vm234_vm6, %v5792_v7, %v5794_v13  ;;  %v5808_v23 = vld [vmem:[#allocation62_spill] sm:$0xff] }
 0x6e1   :  { %v2858_v52 = vpop.permute.xlu1 %2857  ;;  %v2032_v10 = vpop.permute.xlu0 %2031  ;;  %v573_v38 = vadd.f32 %v569_v56, %v546_v33 }
 0x6e2   :  { %v2034_v36 = vsel %vm257_vm7, %v2030_v32, %v2032_v10  ;;  %v2860_v59 = vadd.f32 %v2858_v52, %v2850_v5  ;;  %v5798_v32 = vld [vmem:[#allocation88_spill] sm:$0xff]  ;;  %v5802_v52 = vld [vmem:[#allocation89_spill] sm:$0xff]  ;;  %v5809_v5 = vld [vmem:[#allocation63_spill] sm:$0xff] }
 0x6e3   :  { %v2038_v34 = vadd.f32 %v2034_v36, %v2020_v30  ;;  %v388_v30 = vsel %vm386_vm14, %v5788_v17, %v5791_v18  ;;  %v590_v51 = vsel %vm257_vm7, %v5799_v28, %v5798_v32  ;;  %v591_v55 = vsel %vm257_vm7, %v5798_v32, %v5800_v42  ;;  %v5803_v10 = vld [vmem:[#allocation60_spill] sm:$0xff]  ;;  %v5815_v28 = vld [vmem:[#allocation95_spill] sm:$0xff] }
 0x6e4   :  { %v392_v54 = vadd.f32 %v388_v30, %v284_v4  ;;  %v594_v47 = vadd.f32 %v590_v51, %v572_v29  ;;  %v595_v22 = vadd.f32 %v591_v55, %v573_v38  ;;  %v613_v36 = vsel %vm612_vm10, %v5803_v10, %v5802_v52  ;;  %v5811_v38 = vld [vmem:[#allocation76_spill] sm:$0xff]  ;;  %v5816_v42 = vld [vmem:[#allocation67_spill] sm:$0xff] }
 0x6e5   :  { %v2048_v43 = vpop.permute.xlu1 %2047  ;;  %v2046_v44 = vpop.permute.xlu0 %2045  ;;  %v614_v16 = vsel %vm612_vm10, %v5802_v52, %v5805_v49  ;;  %v5817_v10 = vld [vmem:[#allocation104_spill] sm:$0xff]  ;;  %v5819_v49 = vld [vmem:[#allocation70_spill] sm:$0xff] }
 0x6e6   :  { %v2051_v45 = vsel %vm612_vm10, %v2046_v44, %v2048_v43  ;;  %v498_v14 = vadd.f32 %v494_v50, %v392_v54  ;;  %v617_v12 = vadd.f32 %v613_v36, %v594_v47  ;;  %v618_v44 = vadd.f32 %v614_v16, %v595_v22  ;;  %v5818_v36 = vld [vmem:[#allocation34_spill] sm:$0xff] }
 0x6e7   :  { %v4969_v53 = vadd.f32 %v2051_v45, %v2037_v61  ;;  %v4994_v61 = vadd.f32 %v5801_v46, %v497_v26  ;;  %v637_v45 = vsel %vm635_vm11, %v5807_v2, %v5809_v5  ;;  %v1077_v16 = vsel %vm1075_vm0, %v5817_v10, %v5819_v49 }
 0x6e8   :  { %v5003_v4 = vadd.f32 %v5801_v46, %v498_v14  ;;  %v641_v7 = vadd.f32 %v637_v45, %v618_v44 }
 0x6e9   :  { %v2868_v8 = vpop.permute.xlu1 %2867  ;;  %v2050_v63 = vpop.permute.xlu0 %2049  ;;  %v508_v27 = vmul.f32 0.044715, %v4994_v61 }
 0x6ea   :  { %v2870_v19 = vadd.f32 %v2868_v8, %v2860_v59  ;;  %v2052_v0 = vsel %vm612_vm10, %v2048_v43, %v2050_v63  ;;  %v1825_v43 = vsel %vm257_vm7, %v5806_v31, %v4454_v35  ;;  %v509_v33 = vmul.f32 0.044715, %v5003_v4  ;;  %v3031_v35 = vld [vmem:[%s5360_s8] sm:$0x1f]  ;;  %v5810_v59 = vld [vmem:[#allocation16_spill] sm:$0xff] }
 0x6eb   :  { %v4984_v3 = vadd.f32 %v2052_v0, %v2038_v34  ;;  %v1807_v34 = vsel %vm234_vm6, %v5804_v1, %v4444_v58  ;;  %v636_v58 = vsel %vm635_vm11, %v5808_v23, %v5807_v2  ;;  %v5023_v41 = vrot.slane %v3031_v35, %v5718_v6 }
 0x6ec   :  { %2873 = vperm.xlu1 %3004, %v2870_v19   ;;  %v1811_v17 = vadd.f32 %v1807_v34, %v1790_v62  ;;  %v640_v30 = vadd.f32 %v636_v58, %v617_v12  ;;  %v510_v54 = vmul.f32 %v508_v27, %v4994_v61  ;;  %v1893_v13 = vsel %vm386_vm14, %v5810_v59, %v5778_v40  ;;  %v5812_v19 = vld [vmem:[#allocation74_spill] sm:$0xff]  ;;  %v5822_v27 = vld [vmem:[#allocation83_spill] sm:$0xff] }
 0x6ed   :  { %v511_v56 = vmul.f32 %v509_v33, %v5003_v4  ;;  %v1957_v63 = vsel %vm492_vm15, %v4924_v39, %v4933_v24  ;;  %v651_v9 = vmul.f32 %v5029_v21, %v641_v7  ;;  %v790_v0 = vsel %vm386_vm14, %v5812_v19, %v5811_v38  ;;  %v5814_v24 = vld [vmem:[#allocation24_spill] sm:$0xff]  ;;  %v2064_v45 = vpop.permute.xlu0 %2063 }
 0x6ee   :  { %v1829_v18 = vadd.f32 %v1825_v43, %v1811_v17  ;;  %v650_v8 = vmul.f32 %v5023_v41, %v640_v30  ;;  %v512_v25 = vmul.f32 %v510_v54, %v4994_v61  ;;  %v932_v51 = vsel %vm492_vm15, %v5815_v28, %v5814_v24  ;;  %v5823_v30 = vld [vmem:[#allocation12_spill] sm:$0xff]  ;;  %v2066_v54 = vpop.permute.xlu1 %2065 }
 0x6ef   :  { %v513_v40 = vmul.f32 %v511_v56, %v5003_v4  ;;  %v933_v55 = vsel %vm492_vm15, %v5814_v24, %v5816_v42  ;;  %v1076_v1 = vsel %vm1075_vm0, %v5818_v36, %v5817_v10  ;;  %v1968_v43 = vmul.f32 0.044715, %v5063_v48 }
 0x6f0   :  { %v1831_v29 = vmul.f32 %v1829_v18, %v4954_v15  ;;  %v791_v15 = vsel %vm386_vm14, %v5811_v38, %v5813_v37  ;;  %v794_v26 = vadd.f32 %v790_v0, %v650_v8  ;;  %v514_v39 = vadd.f32 %v512_v25, %v4994_v61 }
 0x6f1   :  { %v795_v32 = vadd.f32 %v791_v15, %v651_v9  ;;  %v515_v14 = vadd.f32 %v513_v40, %v5003_v4  ;;  %v1221_v2 = vsel %vm1219_vm1, %v5820_v57, %v5822_v27  ;;  %v1970_v33 = vmul.f32 %v1968_v43, %v5063_v48 }
 0x6f2   :  { %v1897_v11 = vadd.f32 %v1893_v13, %v1831_v29  ;;  %v936_v22 = vadd.f32 %v932_v51, %v794_v26  ;;  %v516_v52 = vmul.f32 0.7978846, %v514_v39  ;;  %v2068_v13 = vpop.permute.xlu0 %2067  ;;  %v507_v39 = vmul.f32 0.5, %v5003_v4 }
 0x6f3   :  { %v937_v62 = vadd.f32 %v933_v55, %v795_v32  ;;  %v517_v34 = vmul.f32 0.7978846, %v515_v14  ;;  %v1972_v7 = vmul.f32 %v1970_v33, %v5063_v48  ;;  %v2069_v4 = vsel %vm635_vm11, %v2064_v45, %v2066_v54 }
 0x6f4   :  { %v1961_v50 = vadd.f32 %v1957_v63, %v1897_v11  ;;  %v1080_v31 = vadd.f32 %v1076_v1, %v936_v22  ;;  %3006 = vtanh.f32 %v516_v52  ;;  %v2070_v10 = vsel %vm635_vm11, %v2066_v54, %v2068_v13  ;;  %v5828_v13 = vld [vmem:[#allocation96_spill] sm:$0xff] }
 0x6f5   :  { %v1081_v44 = vadd.f32 %v1077_v16, %v937_v62  ;;  %3008 = vtanh.f32 %v517_v34  ;;  %v1974_v29 = vadd.f32 %v1972_v7, %v5063_v48  ;;  %v2172_v63 = vpop.permute.xlu1 %2171  ;;  %v5824_v62 = vld [vmem:[#allocation6_spill] sm:$0xff]  ;;  %v2074_v43 = vadd.f32 %v2070_v10, %v4984_v3 }
 0x6f6   :  { %v5059_v47 = vadd.f32 %v1961_v50, %v5801_v46  ;;  %v5821_v46 = vld [vmem:[#allocation103_spill] sm:$0xff]  ;;  %v2174_v37 = vpop.permute.xlu0 %2173  ;;  %v506_v50 = vmul.f32 0.5, %v4994_v61 }
 0x6f7   :  { %v1220_v17 = vsel %vm1219_vm1, %v5821_v46, %v5820_v57  ;;  %v1225_v5 = vadd.f32 %v1221_v2, %v1081_v44  ;;  %v1976_v19 = vmul.f32 0.7978846, %v1974_v29  ;;  %v5825_v44 = vld [vmem:[#allocation8_spill] sm:$0xff]  ;;  %v2076_v54 = vmul.f32 %v2074_v43, %v5029_v21 }
 0x6f8   :  { %v1967_v12 = vmul.f32 0.044715, %v5059_v47  ;;  %v1224_v58 = vadd.f32 %v1220_v17, %v1080_v31  ;;  %v2073_v31 = vadd.f32 %v2069_v4, %v4969_v53  ;;  %v5826_v17 = vld [vmem:[#allocation55_spill] sm:$0xff]  ;;  %v2177_v53 = vsel %vm386_vm14, %v2172_v63, %v2174_v37 }
 0x6f9   :  { %v5087_v20 = vadd.f32 %v5823_v30, %v1225_v5  ;;  %v2176_v32 = vpop.permute.xlu1 %2175 }
 0x6fa   :  { %v1969_v23 = vmul.f32 %v1967_v12, %v5059_v47  ;;  %v5083_v35 = vadd.f32 %v5823_v30, %v1224_v58  ;;  %v2178_v3 = vsel %vm386_vm14, %v2174_v37, %v2176_v32  ;;  %v2075_v7 = vmul.f32 %v2073_v31, %v5023_v41 }
 0x6fb   :  { %v1236_v8 = vmul.f32 0.044715, %v5087_v20 }
 0x6fc   :  { %v1971_v18 = vmul.f32 %v1969_v23, %v5059_v47  ;;  %v1235_v56 = vmul.f32 0.044715, %v5083_v35  ;;  %v5827_v23 = vld [vmem:[#allocation71_spill] sm:$0xff] }
 0x6fd   :  { %v1238_v0 = vmul.f32 %v1236_v8, %v5087_v20 }
 0x6fe   :  { %v1973_v59 = vadd.f32 %v1971_v18, %v5059_v47  ;;  %v1237_v38 = vmul.f32 %v1235_v56, %v5083_v35 }
 0x6ff   :  { %v1240_v24 = vmul.f32 %v1238_v0, %v5087_v20 }
 0x700   :  { %v1975_v11 = vmul.f32 0.7978846, %v1973_v59  ;;  %v1239_v26 = vmul.f32 %v1237_v38, %v5083_v35  ;;  %v2181_v38 = vadd.f32 %v2177_v53, %v2075_v7 }
 0x701   :  { %v3007_v9 = vpop.eup %3006  ;;  %v1242_v22 = vadd.f32 %v1240_v24, %v5087_v20 }
 0x702   :  { %v3009_v25 = vpop.eup %3008  ;;  %v520_v40 = vadd.f32 1.0, %v3007_v9  ;;  %3010 = vtanh.f32 %v1975_v11  ;;  %v1241_v42 = vadd.f32 %v1239_v26, %v5083_v35  ;;  %v1965_v26 = vmul.f32 0.5, %v5059_v47 }
 0x703   :  { %v521_v15 = vadd.f32 1.0, %v3009_v25  ;;  %3012 = vtanh.f32 %v1976_v19  ;;  %v1244_v12 = vmul.f32 0.7978846, %v1242_v22  ;;  %v2182_v19 = vadd.f32 %v2178_v3, %v2076_v54 }
 0x704   :  { %v5099_v28 = vmul.f32 %v520_v40, %v506_v50  ;;  %v1243_v34 = vmul.f32 0.7978846, %v1241_v42  ;;  %v5829_v40 = vld [vmem:[#allocation9_spill] sm:$0xff] }
 0x705   :  { %v5101_v14 = vmul.f32 %v521_v15, %v507_v39 }
 0x706   :  { %v1259_v61 = vrot.slane %v5099_v28, %v5718_v6  ;;  %v1275_v52 = vrot.slane %v5099_v28, %v5824_v62  ;;  %v1291_v57 = vrot.slane %v5099_v28, %v5825_v44  ;;  %3014 = vtanh.f32 %v1243_v34 }
 0x707   :  { %v1263_v36 = vrot.slane %v5101_v14, %v5718_v6  ;;  %v1279_v1 = vrot.slane %v5101_v14, %v5824_v62  ;;  %v1295_v46 = vrot.slane %v5101_v14, %v5825_v44  ;;  %3016 = vtanh.f32 %v1244_v12 }
 0x708   :  { %v1264_v27 = vmul.f32 %v1259_v61, %v5826_v17  ;;  %v1280_v58 = vmul.f32 %v1275_v52, %v5827_v23  ;;  %v1296_v56 = vmul.f32 %v1291_v57, %v5828_v13  ;;  %v1307_v41 = vrot.slane %v5099_v28, %v5829_v40 }
 0x709   :  { %v1265_v2 = vmul.f32 %v1263_v36, %v5826_v17  ;;  %v1281_v33 = vmul.f32 %v1279_v1, %v5827_v23  ;;  %v1297_v29 = vmul.f32 %v1295_v46, %v5828_v13  ;;  %v1311_v50 = vrot.slane %v5101_v14, %v5829_v40  ;;  %v5830_v1 = vld [vmem:[#allocation73_spill] sm:$0xff] }
 0x70a   :  { %v1282_v25 = vadd.f32 %v1280_v58, %v1264_v27  ;;  %v1323_v24 = vrot.slane %v5099_v28, %v5713_v60  ;;  %v1327_v22 = vrot.slane %v5101_v14, %v5713_v60  ;;  %v1312_v47 = vmul.f32 %v1307_v41, %v5830_v1 }
 0x70b   :  { %v1283_v11 = vadd.f32 %v1281_v33, %v1265_v2 }
 0x70c   :  { %v1298_v42 = vadd.f32 %v1296_v56, %v1282_v25  ;;  %v5832_v56 = vld [vmem:[#allocation5_spill] sm:$0xff] }
 0x70d   :  { %v2276_v51 = vpop.permute.xlu0 %2275  ;;  %v2278_v55 = vpop.permute.xlu1 %2277 }
 0x70e   :  { %v2281_v8 = vsel %vm492_vm15, %v2276_v51, %v2278_v55  ;;  %v1966_v51 = vmul.f32 0.5, %v5063_v48  ;;  %v1313_v48 = vmul.f32 %v1311_v50, %v5830_v1  ;;  %v1314_v43 = vadd.f32 %v1312_v47, %v1298_v42  ;;  %v5833_v50 = vld [vmem:[#allocation82_spill] sm:$0xff] }
 0x70f   :  { %v3011_v45 = vpop.eup %3010  ;;  %v2285_v32 = vadd.f32 %v2281_v8, %v2181_v38  ;;  %v1234_v8 = vmul.f32 0.5, %v5087_v20 }
 0x710   :  { %v3013_v18 = vpop.eup %3012  ;;  %v1979_v63 = vadd.f32 1.0, %v3011_v45 }
 0x711   :  { %v2280_v49 = vpop.permute.xlu0 %2279  ;;  %v1980_v37 = vadd.f32 1.0, %v3013_v18 }
 0x712   :  { %v2282_v9 = vsel %vm492_vm15, %v2278_v55, %v2280_v49  ;;  %v1299_v55 = vadd.f32 %v1297_v29, %v1283_v11  ;;  %v5145_v61 = vmul.f32 %v1979_v63, %v1965_v26  ;;  %v1339_v29 = vrot.slane %v5099_v28, %v5832_v56 }
 0x713   :  { %v2286_v39 = vadd.f32 %v2282_v9, %v2182_v19  ;;  %v5148_v34 = vmul.f32 %v1980_v37, %v1966_v51  ;;  %v3015_v33 = vpop.eup %3014  ;;  %v1343_v11 = vrot.slane %v5101_v14, %v5832_v56 }
 0x714   :  { %v1315_v57 = vadd.f32 %v1313_v48, %v1299_v55  ;;  %v2518_v2 = vrot.slane %v5145_v61, %v5718_v6  ;;  %v2530_v58 = vrot.slane %v5145_v61, %v5824_v62  ;;  %v3017_v7 = vpop.eup %3016  ;;  %v1344_v26 = vmul.f32 %v1339_v29, %v5833_v50 }
 0x715   :  { %v2522_v3 = vrot.slane %v5148_v34, %v5718_v6  ;;  %v2534_v18 = vrot.slane %v5148_v34, %v5824_v62  ;;  %v1248_v41 = vadd.f32 1.0, %v3017_v7  ;;  %v2566_v29 = vrot.slane %v5145_v61, %v5713_v60 }
 0x716   :  { %v2535_v19 = vmul.f32 %v2530_v58, %v5827_v23  ;;  %v2558_v58 = vrot.slane %v5148_v34, %v5829_v40 }
 0x717   :  { %v2524_v37 = vmul.f32 %v2522_v3, %v5826_v17 }
 0x71d   :  { %v2380_v16 = vpop.permute.xlu1 %2379 }
 0x721   :  { %v2382_v5 = vpop.permute.xlu0 %2381  ;;  %v2384_v59 = vpop.permute.xlu1 %2383 }
 0x722   :  { %v2385_v21 = vsel %vm1075_vm0, %v2380_v16, %v2382_v5  ;;  %v2386_v15 = vsel %vm1075_vm0, %v2382_v5, %v2384_v59  ;;  %v5831_v5 = vld [vmem:[#allocation53_spill] sm:$0xff] }
 0x723   :  { %v2389_v52 = vadd.f32 %v2385_v21, %v2285_v32  ;;  %v2390_v4 = vadd.f32 %v2386_v15, %v2286_v39  ;;  %v1328_v45 = vmul.f32 %v1323_v24, %v5831_v5  ;;  %v1329_v53 = vmul.f32 %v1327_v22, %v5831_v5  ;;  %v5834_v24 = vld [vmem:[#allocation7_spill] sm:$0xff] }
 0x724   :  { %v2536_v21 = vmul.f32 %v2534_v18, %v5827_v23  ;;  %v2542_v32 = vrot.slane %v5145_v61, %v5825_v44  ;;  %v1345_v39 = vmul.f32 %v1343_v11, %v5833_v50  ;;  %v1355_v51 = vrot.slane %v5099_v28, %v5834_v24 }
 0x725   :  { %v1330_v9 = vadd.f32 %v1328_v45, %v1314_v43  ;;  %v1331_v25 = vadd.f32 %v1329_v53, %v1315_v57  ;;  %v1359_v42 = vrot.slane %v5101_v14, %v5834_v24 }
 0x726   :  { %v2538_v47 = vadd.f32 %v2536_v21, %v2524_v37  ;;  %v2547_v48 = vmul.f32 %v2542_v32, %v5828_v13  ;;  %v2571_v37 = vmul.f32 %v2566_v29, %v5831_v5 }
 0x727   :  { %v1346_v22 = vadd.f32 %v1344_v26, %v1330_v9  ;;  %v2582_v26 = vrot.slane %v5148_v34, %v5832_v56 }
 0x729   :  { %v2484_v0 = vpop.permute.xlu0 %2483 }
 0x72d   :  { %v2486_v10 = vpop.permute.xlu1 %2485  ;;  %v2488_v36 = vpop.permute.xlu0 %2487 }
 0x72e   :  { %v2489_v49 = vsel %vm1219_vm1, %v2484_v0, %v2486_v10  ;;  %v2490_v16 = vsel %vm1219_vm1, %v2486_v10, %v2488_v36  ;;  %v1247_v0 = vadd.f32 1.0, %v3015_v33  ;;  %v5199_v10 = vmul.f32 %v1248_v41, %v1234_v8  ;;  %v5836_v33 = vld [vmem:[#allocation99_spill] sm:$0xff] }
 0x72f   :  { %v2493_v12 = vadd.f32 %v2489_v49, %v2389_v52  ;;  %v2494_v31 = vadd.f32 %v2490_v16, %v2390_v4  ;;  %v1347_v36 = vadd.f32 %v1345_v39, %v1331_v25  ;;  %v1371_v45 = vrot.slane %v5099_v28, %v5836_v33  ;;  %v5837_v8 = vld [vmem:[#allocation75_spill] sm:$0xff] }
 0x730   :  { %v1375_v53 = vrot.slane %v5101_v14, %v5836_v33  ;;  %v1391_v7 = vrot.slane %v5199_v10, %v5718_v6  ;;  %v2560_v28 = vmul.f32 %v2558_v58, %v5830_v1  ;;  %v2570_v14 = vrot.slane %v5148_v34, %v5713_v60 }
 0x731   :  { %v5154_v46 = vadd.f32 %v2493_v12, %v5823_v30  ;;  %v5157_v27 = vadd.f32 %v2494_v31, %v5823_v30  ;;  %v1233_v30 = vmul.f32 0.5, %v5083_v35  ;;  %v2523_v35 = vmul.f32 %v2518_v2, %v5826_v17  ;;  %v5835_v31 = vld [vmem:[#allocation91_spill] sm:$0xff] }
 0x732   :  { %v2546_v17 = vrot.slane %v5148_v34, %v5825_v44  ;;  %v2554_v12 = vrot.slane %v5145_v61, %v5829_v40  ;;  %v1360_v43 = vmul.f32 %v1355_v51, %v5835_v31  ;;  %v1361_v57 = vmul.f32 %v1359_v42, %v5835_v31 }
 0x733   :  { %v2499_v54 = vmul.f32 0.044715, %v5154_v46  ;;  %v2500_v59 = vmul.f32 0.044715, %v5157_v27  ;;  %v2537_v52 = vadd.f32 %v2535_v19, %v2523_v35  ;;  %v5197_v4 = vmul.f32 %v1247_v0, %v1233_v30 }
 0x734   :  { %v2548_v2 = vmul.f32 %v2546_v17, %v5828_v13  ;;  %v1362_v13 = vadd.f32 %v1360_v43, %v1346_v22  ;;  %v1376_v9 = vmul.f32 %v1371_v45, %v5837_v8  ;;  %v1377_v25 = vmul.f32 %v1375_v53, %v5837_v8 }
 0x735   :  { %v2501_v63 = vmul.f32 %v2499_v54, %v5154_v46  ;;  %v2502_v38 = vmul.f32 %v2500_v59, %v5157_v27  ;;  %v2549_v3 = vadd.f32 %v2547_v48, %v2537_v52  ;;  %v1387_v18 = vrot.slane %v5197_v4, %v5718_v6 }
 0x736   :  { %v2550_v30 = vadd.f32 %v2548_v2, %v2538_v47  ;;  %v1363_v54 = vadd.f32 %v1361_v57, %v1347_v36  ;;  %v2559_v59 = vmul.f32 %v2554_v12, %v5830_v1  ;;  %v1378_v0 = vadd.f32 %v1376_v9, %v1362_v13  ;;  %v5839_v36 = vld [vmem:[#allocation50_spill] sm:$0xff] }
 0x737   :  { %v2503_v20 = vmul.f32 %v2501_v63, %v5154_v46  ;;  %v2504_v15 = vmul.f32 %v2502_v38, %v5157_v27  ;;  %v5838_v63 = vld [vmem:[#allocation93_spill] sm:$0xff]  ;;  %v2578_v1 = vrot.slane %v5145_v61, %v5832_v56  ;;  %v1403_v21 = vrot.slane %v5197_v4, %v5824_v62  ;;  %v5840_v12 = vld [vmem:[#allocation94_spill] sm:$0xff] }
 0x738   :  { %v2561_v11 = vadd.f32 %v2559_v59, %v2549_v3  ;;  %v1392_v38 = vmul.f32 %v1387_v18, %v5838_v63  ;;  %v1393_v35 = vmul.f32 %v1391_v7, %v5838_v63  ;;  %v2562_v19 = vadd.f32 %v2560_v28, %v2550_v30  ;;  %v5841_v2 = vld [vmem:[#allocation98_spill] sm:$0xff] }
 0x739   :  { %v2505_v23 = vadd.f32 %v2503_v20, %v5154_v46  ;;  %v2506_v55 = vadd.f32 %v2504_v15, %v5157_v27  ;;  %v1379_v41 = vadd.f32 %v1377_v25, %v1363_v54  ;;  %v1407_v20 = vrot.slane %v5199_v10, %v5824_v62 }
 0x73a   :  { %v2572_v15 = vmul.f32 %v2570_v14, %v5831_v5  ;;  %v1419_v32 = vrot.slane %v5197_v4, %v5825_v44  ;;  %v1423_v39 = vrot.slane %v5199_v10, %v5825_v44  ;;  %v1435_v51 = vrot.slane %v5197_v4, %v5829_v40 }
 0x73b   :  { %v2507_v49 = vmul.f32 0.7978846, %v2505_v23  ;;  %v2508_v16 = vmul.f32 0.7978846, %v2506_v55  ;;  %v2573_v42 = vadd.f32 %v2571_v37, %v2561_v11  ;;  %v1394_v17 = vadd.f32 %v1392_v38, %v1378_v0 }
 0x73c   :  { %v1395_v23 = vadd.f32 %v1393_v35, %v1379_v41  ;;  %v1439_v55 = vrot.slane %v5199_v10, %v5829_v40  ;;  %v2574_v22 = vadd.f32 %v2572_v15, %v2562_v19  ;;  %v2583_v5 = vmul.f32 %v2578_v1, %v5833_v50 }
 0x73d   :  { %3018 = vtanh.f32 %v2507_v49  ;;  %v2590_v52 = vrot.slane %v5145_v61, %v5834_v24  ;;  %v1408_v47 = vmul.f32 %v1403_v21, %v5839_v36  ;;  %v1409_v49 = vmul.f32 %v1407_v20, %v5839_v36 }
 0x73e   :  { %3020 = vtanh.f32 %v2508_v16  ;;  %v2584_v16 = vmul.f32 %v2582_v26, %v5833_v50  ;;  %v2594_v48 = vrot.slane %v5148_v34, %v5834_v24  ;;  %v1424_v43 = vmul.f32 %v1419_v32, %v5840_v12 }
 0x73f   :  { %v1425_v57 = vmul.f32 %v1423_v39, %v5840_v12  ;;  %v1440_v58 = vmul.f32 %v1435_v51, %v5841_v2  ;;  %v2585_v45 = vadd.f32 %v2583_v5, %v2573_v42  ;;  %v1410_v3 = vadd.f32 %v1408_v47, %v1394_v17 }
 0x740   :  { %v1411_v18 = vadd.f32 %v1409_v49, %v1395_v23  ;;  %v1441_v7 = vmul.f32 %v1439_v55, %v5841_v2  ;;  %v2586_v30 = vadd.f32 %v2584_v16, %v2574_v22  ;;  %v2497_v54 = vmul.f32 0.5, %v5154_v46  ;;  %v5842_v16 = vld [vmem:[#allocation101_spill] sm:$0xff] }
 0x741   :  { %v2595_v59 = vmul.f32 %v2590_v52, %v5835_v31  ;;  %v2602_v29 = vrot.slane %v5145_v61, %v5836_v33  ;;  %v2498_v28 = vmul.f32 0.5, %v5157_v27  ;;  %v2596_v9 = vmul.f32 %v2594_v48, %v5835_v31 }
 0x742   :  { %v2606_v25 = vrot.slane %v5148_v34, %v5836_v33  ;;  %v1451_v38 = vrot.slane %v5197_v4, %v5713_v60  ;;  %v1455_v46 = vrot.slane %v5199_v10, %v5713_v60  ;;  %v1467_v61 = vrot.slane %v5197_v4, %v5832_v56 }
 0x743   :  { %v2597_v35 = vadd.f32 %v2595_v59, %v2585_v45  ;;  %v1471_v27 = vrot.slane %v5199_v10, %v5832_v56  ;;  %v2598_v31 = vadd.f32 %v2596_v9, %v2586_v30  ;;  %v1426_v0 = vadd.f32 %v1424_v43, %v1410_v3 }
 0x744   :  { %v2607_v34 = vmul.f32 %v2602_v29, %v5837_v8  ;;  %v1427_v1 = vadd.f32 %v1425_v57, %v1411_v18  ;;  %v2608_v21 = vmul.f32 %v2606_v25, %v5837_v8  ;;  %v1483_v26 = vrot.slane %v5197_v4, %v5834_v24 }
 0x745   :  { %v1487_v42 = vrot.slane %v5199_v10, %v5834_v24  ;;  %v1442_v23 = vadd.f32 %v1440_v58, %v1426_v0  ;;  %v1456_v48 = vmul.f32 %v1451_v38, %v5842_v16  ;;  %v1457_v57 = vmul.f32 %v1455_v46, %v5842_v16  ;;  %v5844_v0 = vld [vmem:[#allocation79_spill] sm:$0xff] }
 0x746   :  { %v2609_v32 = vadd.f32 %v2607_v34, %v2597_v35  ;;  %v2610_v17 = vadd.f32 %v2608_v21, %v2598_v31  ;;  %v1443_v5 = vadd.f32 %v1441_v7, %v1427_v1  ;;  %v1488_v34 = vmul.f32 %v1483_v26, %v5844_v0 }
 0x747   :  { %v1499_v1 = vrot.slane %v5197_v4, %v5836_v33 }
 0x748   :  { %v1459_v7 = vadd.f32 %v1457_v57, %v1443_v5 }
 0x74a   :  { %v3019_v53 = vpop.eup %3018 }
 0x74b   :  { %v3021_v13 = vpop.eup %3020  ;;  %v2511_v50 = vadd.f32 1.0, %v3019_v53 }
 0x74c   :  { %v2512_v14 = vadd.f32 1.0, %v3021_v13 }
 0x74d   :  { %v5265_v11 = vmul.f32 %v2511_v50, %v2497_v54  ;;  %v5843_v50 = vld [vmem:[#allocation81_spill] sm:$0xff] }
 0x74e   :  { %v5271_v19 = vmul.f32 %v2512_v14, %v2498_v28  ;;  %v1472_v59 = vmul.f32 %v1467_v61, %v5843_v50  ;;  %v1473_v28 = vmul.f32 %v1471_v27, %v5843_v50 }
 0x74f   :  { %v2614_v41 = vrot.slane %v5265_v11, %v5718_v6  ;;  %v2626_v37 = vrot.slane %v5265_v11, %v5824_v62  ;;  %v2638_v51 = vrot.slane %v5265_v11, %v5825_v44  ;;  %v2650_v22 = vrot.slane %v5265_v11, %v5829_v40 }
 0x750   :  { %v2618_v20 = vrot.slane %v5271_v19, %v5718_v6  ;;  %v2630_v15 = vrot.slane %v5271_v19, %v5824_v62  ;;  %v2642_v6 = vrot.slane %v5271_v19, %v5825_v44  ;;  %v2654_v49 = vrot.slane %v5271_v19, %v5829_v40 }
 0x751   :  { %v2619_v39 = vmul.f32 %v2614_v41, %v5838_v63  ;;  %v2631_v55 = vmul.f32 %v2626_v37, %v5839_v36  ;;  %v2643_v43 = vmul.f32 %v2638_v51, %v5840_v12  ;;  %v2662_v44 = vrot.slane %v5265_v11, %v5713_v60 }
 0x752   :  { %v2620_v8 = vmul.f32 %v2618_v20, %v5838_v63  ;;  %v2632_v47 = vmul.f32 %v2630_v15, %v5839_v36  ;;  %v2644_v45 = vmul.f32 %v2642_v6, %v5840_v12  ;;  %v2666_v53 = vrot.slane %v5271_v19, %v5713_v60 }
 0x753   :  { %v2621_v62 = vadd.f32 %v2619_v39, %v2609_v32  ;;  %v1458_v36 = vadd.f32 %v1456_v48, %v1442_v23  ;;  %v2655_v40 = vmul.f32 %v2650_v22, %v5841_v2  ;;  %v2674_v18 = vrot.slane %v5265_v11, %v5832_v56  ;;  %v5845_v32 = vld [vmem:[#allocation77_spill] sm:$0xff] }
 0x754   :  { %v2622_v52 = vadd.f32 %v2620_v8, %v2610_v17  ;;  %v2656_v13 = vmul.f32 %v2654_v49, %v5841_v2  ;;  %v2678_v54 = vrot.slane %v5271_v19, %v5832_v56  ;;  %v2667_v29 = vmul.f32 %v2662_v44, %v5842_v16 }
 0x755   :  { %v2633_v63 = vadd.f32 %v2631_v55, %v2621_v62  ;;  %v2686_v60 = vrot.slane %v5265_v11, %v5834_v24  ;;  %v2668_v9 = vmul.f32 %v2666_v53, %v5842_v16  ;;  %v2690_v25 = vrot.slane %v5271_v19, %v5834_v24 }
 0x756   :  { %v2634_v58 = vadd.f32 %v2632_v47, %v2622_v52  ;;  %v1474_v2 = vadd.f32 %v1472_v59, %v1458_v36  ;;  %v2679_v56 = vmul.f32 %v2674_v18, %v5843_v50  ;;  %v2698_v46 = vrot.slane %v5265_v11, %v5836_v33  ;;  %v5847_v47 = vld [vmem:[#allocation20_spill] sm:$0xff] }
 0x757   :  { %v2645_v3 = vadd.f32 %v2643_v43, %v2633_v63  ;;  %v1475_v35 = vadd.f32 %v1473_v28, %v1459_v7  ;;  %v2680_v31 = vmul.f32 %v2678_v54, %v5843_v50  ;;  %v2702_v27 = vrot.slane %v5271_v19, %v5836_v33 }
 0x758   :  { %v2646_v30 = vadd.f32 %v2644_v45, %v2634_v58  ;;  %v1489_v41 = vmul.f32 %v1487_v42, %v5844_v0  ;;  %v2691_v24 = vmul.f32 %v2686_v60, %v5844_v0  ;;  %v1503_v11 = vrot.slane %v5199_v10, %v5836_v33  ;;  %v5846_v33 = vld [vmem:[#allocation11_spill] sm:$0xff] }
 0x759   :  { %v2657_v12 = vadd.f32 %v2655_v40, %v2645_v3  ;;  %v2692_v20 = vmul.f32 %v2690_v25, %v5844_v0  ;;  %v2703_v39 = vmul.f32 %v2698_v46, %v5845_v32  ;;  %v1490_v19 = vadd.f32 %v1488_v34, %v1474_v2 }
 0x75a   :  { %v2658_v14 = vadd.f32 %v2656_v13, %v2646_v30  ;;  %v1491_v51 = vadd.f32 %v1489_v41, %v1475_v35  ;;  %v2704_v42 = vmul.f32 %v2702_v27, %v5845_v32  ;;  %v1504_v8 = vmul.f32 %v1499_v1, %v5845_v32 }
 0x75b   :  { %v2669_v38 = vadd.f32 %v2667_v29, %v2657_v12  ;;  %v1505_v6 = vmul.f32 %v1503_v11, %v5845_v32 }
 0x75c   :  { %v2670_v61 = vadd.f32 %v2668_v9, %v2658_v14  ;;  %v1506_v23 = vadd.f32 %v1504_v8, %v1490_v19 }
 0x75d   :  { %v2681_v37 = vadd.f32 %v2679_v56, %v2669_v38  ;;  %v1507_v62 = vadd.f32 %v1505_v6, %v1491_v51 }
 0x75e   :  { %v2682_v21 = vadd.f32 %v2680_v31, %v2670_v61  ;;  %v1678_v55 = vadd.f32 %v5846_v33, %v1506_v23 }
 0x75f   :  { %v2693_v15 = vadd.f32 %v2691_v24, %v2681_v37  ;;  %v1679_v22 = vadd.f32 %v5846_v33, %v1507_v62 }
 0x760   :  { %v2694_v26 = vadd.f32 %v2692_v20, %v2682_v21  ;;  %v1685_v48 = vadd.f32 %v5847_v47, %v1678_v55 }
 0x761   :  { %v2705_v17 = vadd.f32 %v2703_v39, %v2693_v15  ;;  %v1686_v63 = vadd.f32 %v5847_v47, %v1679_v22 }
 0x762   :  { %v2706_v4 = vadd.f32 %v2704_v42, %v2694_v26 }
 0x767   :  { %v2874_v10 = vpop.permute.xlu1 %2873 }
 0x768   :  { %v2876_v5 = vadd.f32 %v2874_v10, %v2705_v17  ;;  %v2877_v52 = vadd.f32 %v2874_v10, %v2706_v4 }
 0x76a   :  { %v2878_v49 = vadd.f32 %v2876_v5, %v5847_v47  ;;  %v2879_v16 = vadd.f32 %v2877_v52, %v5847_v47 }
 0x76c   :  { %v2882_v43 = vrot.slane %v2878_v49, 4  ;;  %v2883_v44 = vrot.slane %v2879_v16, 4 }
 0x76e   :  { %v2887_v57 = vsel %vm2886_vm2, %v1685_v48, %v2882_v43  ;;  %v2888_v58 = vsel %vm2886_vm2, %v1686_v63, %v2883_v44 }
 0x76f   :  { %2889 = vst [vmem:[%s5366_s11] sm:$0xff] %v2887_v57  ;;  %2890 = vst [vmem:[%s5366_s11 + $0x8] sm:$0xff] %v2888_v58 }

</bundles_post_ra>
